<compile_context>
chip_gen: v7x
topology: tpu7x:2x2x1
jax: 0.10.0
libtpu: 0.0.40
codegen_flags: <defaults>
</compile_context>

<pallas_src>
import math
import functools

import jax
import jax.numpy as jnp
from jax.experimental import pallas as pl
from jax.experimental.pallas import tpu as pltpu


# -----------------------------------------------------------------------------
# helpers
# -----------------------------------------------------------------------------
def _layer_norm(h, gamma, beta, eps=1e-5):
    """Two-pass LayerNorm in f32 (centre first -> no cancellation)."""
    mu = jnp.mean(h, axis=-1, keepdims=True)
    d = h - mu
    var = jnp.mean(d * d, axis=-1, keepdims=True)
    return d * jax.lax.rsqrt(var + eps) * gamma + beta


def _ceil_to(n, m):
    return ((n + m - 1) // m) * m


def _choose_q_tile(seq_len: int, num_heads: int) -> int:
    """Largest query tile (<=256, divides S) whose (H,TQ,S) f32 scores fit a
    small VMEM budget; prefer 256 to fill the 256-wide v6e/v7x MXU."""
    budget = 12 << 20
    for t in (256, 128, 64, 32, 16, 8):
        if seq_len % t == 0 and num_heads * t * _ceil_to(seq_len, 128) * 4 <= budget:
            return t
    for t in (256, 128, 64, 32, 16, 8):
        if seq_len % t == 0:
            return t
    return seq_len


# -----------------------------------------------------------------------------
# Pallas kernel: one full EncoderLayer, one (batch row, query tile) per step
# -----------------------------------------------------------------------------
def encoder_layer_kernel(
    x_ref,                                   # (1, S, D)  f32  full sequence (resident per batch row)
    wq_ref, bq_ref, wk_ref, bk_ref, wv_ref, bv_ref, wo_ref, bo_ref,
    g1_ref, beta1_ref,
    w1_ref, b1_ref, w2_ref, b2_ref,
    g2_ref, beta2_ref,
    o_ref,                                   # (1, TQ, D) f32  output query tile
    xbf_sc,                                  # (S, D)     bf16 VMEM scratch (x, cast once)
    k_sc, v_sc,                              # (H, S, d_k) bf16 VMEM scratch (K / V, head-major)
    *,
    num_heads: int,
    q_tile: int,
):
    S, D = x_ref.shape[1], x_ref.shape[2]
    H = num_heads
    d_k = D // H
    scale = 1.0 / math.sqrt(d_k)
    bf16, f32 = jnp.bfloat16, jnp.float32

    qi = pl.program_id(1)

    # ---- once per batch row (first query tile): cast x to bf16 and compute
    #      K / V projections, kept resident in VMEM for later query tiles ----
    @pl.when(qi == 0)
    def _():
        xs = x_ref[0].astype(bf16)                                            # (S, D)
        xbf_sc[...] = xs
        k = jnp.dot(xs, wk_ref[...], preferred_element_type=f32) + bk_ref[...]
        v = jnp.dot(xs, wv_ref[...], preferred_element_type=f32) + bv_ref[...]
        k_sc[...] = k.reshape(S, H, d_k).transpose(1, 0, 2).astype(bf16)      # (H, S, d_k)
        v_sc[...] = v.reshape(S, H, d_k).transpose(1, 0, 2).astype(bf16)

    # ---- Q projection for this query tile ----
    row0 = pl.multiple_of(qi * q_tile, q_tile)
    x_q_f32 = x_ref[0, pl.ds(row0, q_tile), :]                                # (TQ, D) f32 residual
    x_q_bf = xbf_sc[pl.ds(row0, q_tile), :]                                   # (TQ, D) bf16 operand
    q = jnp.dot(x_q_bf, wq_ref[...], preferred_element_type=f32) + bq_ref[...]
    q = (q * scale).reshape(q_tile, H, d_k).transpose(1, 0, 2).astype(bf16)   # (H, TQ, d_k)

    # ---- head-batched scaled dot-product attention (deferred normalisation) ----
    s = jnp.einsum("hqd,hkd->hqk", q, k_sc[...],
                   preferred_element_type=f32)                                # (H, TQ, S)
    s = s - jnp.max(s, axis=-1, keepdims=True)                                # stable softmax
    p = jnp.exp(s)                                                            # unnormalised, <= 1
    l = jnp.sum(p, axis=-1, keepdims=True)                                    # (H, TQ, 1)
    ctx = jnp.einsum("hqk,hkd->hqd", p.astype(bf16), v_sc[...],
                     preferred_element_type=f32)                              # (H, TQ, d_k)
    ctx = ctx * pl.reciprocal(l, approx=True)                                 # normalise small tensor
    attn = ctx.transpose(1, 0, 2).reshape(q_tile, D)                          # merge heads

    attn_out = jnp.dot(attn.astype(bf16), wo_ref[...],
                       preferred_element_type=f32) + bo_ref[...]

    # ---- residual + LayerNorm 1 ----
    h1 = _layer_norm(x_q_f32 + attn_out, g1_ref[...], beta1_ref[...])

    # ---- position-wise feed-forward (dropout = identity in eval mode) ----
    f = jnp.dot(h1.astype(bf16), w1_ref[...], preferred_element_type=f32) + b1_ref[...]
    f = jnp.maximum(f, 0.0)                                                   # ReLU
    f = jnp.dot(f.astype(bf16), w2_ref[...], preferred_element_type=f32) + b2_ref[...]

    # ---- residual + LayerNorm 2 ----
    o_ref[0] = _layer_norm(h1 + f, g2_ref[...], beta2_ref[...]).astype(o_ref.dtype)


# -----------------------------------------------------------------------------
# wrapper: pallas_call with BlockSpecs / grid
# -----------------------------------------------------------------------------
def encoder_layer_pallas(x, params, num_heads, *, q_tile=None,
                         single_buffer_constants=True):
    """x: (B, S, D) float32; params: dict of bf16 weights + f32 biases/LN params."""
    B, S, D = x.shape
    assert D % num_heads == 0, "d_model must be divisible by num_heads"
    d_k = D // num_heads
    d_ff = params["w1"].shape[1]

    if q_tile is None:
        q_tile = _choose_q_tile(S, num_heads)
    assert S % q_tile == 0
    n_q = S // q_tile

    def const_spec(shape):
        # Constant-index operands: same block every grid step.  Single-buffer
        # them so the (potentially ~24 MiB) resident weights are not doubled.
        if single_buffer_constants:
            return pl.BlockSpec(shape, lambda b, qi: (0, 0),
                                pipeline_mode=pl.Buffered(1))
        return pl.BlockSpec(shape, lambda b, qi: (0, 0))

    in_specs = [
        pl.BlockSpec((1, S, D), lambda b, qi: (b, 0, 0)),       # x (resident across query tiles)
        const_spec((D, D)), const_spec((1, D)),                 # Wq, bq
        const_spec((D, D)), const_spec((1, D)),                 # Wk, bk
        const_spec((D, D)), const_spec((1, D)),                 # Wv, bv
        const_spec((D, D)), const_spec((1, D)),                 # Wo, bo
        const_spec((1, D)), const_spec((1, D)),                 # ln1 gamma, beta
        const_spec((D, d_ff)), const_spec((1, d_ff)),           # W1, b1
        const_spec((d_ff, D)), const_spec((1, D)),              # W2, b2
        const_spec((1, D)), const_spec((1, D)),                 # ln2 gamma, beta
    ]

    # ---- VMEM budget (now includes scores, FFN hidden, scratch lane padding) ----
    nbuf_w = 1 if single_buffer_constants else 2
    w_bytes = nbuf_w * 2 * (4 * D * D + 2 * D * d_ff)                     # bf16 weights
    x_bytes = 2 * 4 * S * D                                               # f32 x block (dbl-buf)
    o_bytes = 2 * 4 * q_tile * D                                          # f32 out block (dbl-buf)
    scr_bytes = 2 * S * D                                                 # bf16 x scratch
    scr_bytes += 2 * 2 * num_heads * _ceil_to(S, 8) * _ceil_to(d_k, 128)  # K/V scratch (lane-padded)
    tmp_bytes = (4 + 2) * num_heads * q_tile * _ceil_to(S, 128)           # f32 scores + bf16 probs
    tmp_bytes += 4 * q_tile * _ceil_to(d_ff, 128)                         # f32 FFN hidden
    tmp_bytes += 8 * 4 * q_tile * max(D, 128)                             # q/ctx/h1/residual temps
    need = w_bytes + x_bytes + o_bytes + scr_bytes + tmp_bytes + (8 << 20)

    vmem_cap = 64 << 20
    try:
        vmem_cap = pltpu.get_tpu_info().vmem_capacity_bytes
    except Exception:
        pass
    vmem_limit = int(min(int(vmem_cap * 0.9), max(32 << 20, need)))

    kernel = functools.partial(encoder_layer_kernel, num_heads=num_heads, q_tile=q_tile)
    return pl.pallas_call(
        kernel,
        out_shape=jax.ShapeDtypeStruct((B, S, D), x.dtype),
        grid=(B, n_q),
        in_specs=in_specs,
        out_specs=pl.BlockSpec((1, q_tile, D), lambda b, qi: (b, qi, 0)),
        scratch_shapes=[
            pltpu.VMEM((S, D), jnp.bfloat16),                   # x, bf16, cast once per row
            pltpu.VMEM((num_heads, S, d_k), jnp.bfloat16),      # K, head-major
            pltpu.VMEM((num_heads, S, d_k), jnp.bfloat16),      # V, head-major
        ],
        compiler_params=pltpu.CompilerParams(
            # batch axis megacore-parallel; query-tile axis must stay sequential
            # so the x/K/V scratch computed at qi == 0 is valid for later tiles.
            dimension_semantics=("parallel", "arbitrary"),
            vmem_limit_bytes=vmem_limit,
        ),
    )(
        x,
        params["wq"], params["bq"], params["wk"], params["bk"],
        params["wv"], params["bv"], params["wo"], params["bo"],
        params["ln1_g"], params["ln1_b"],
        params["w1"], params["b1"], params["w2"], params["b2"],
        params["ln2_g"], params["ln2_b"],
    )


# -----------------------------------------------------------------------------
# parameter init (weights bf16 in HBM; biases / LayerNorm params f32)
# -----------------------------------------------------------------------------
def init_encoder_layer_params(key, d_model, d_ff):
    ks = jax.random.split(key, 12)
    s_in = 1.0 / math.sqrt(d_model)
    s_ff = 1.0 / math.sqrt(d_ff)
    bf16, f32 = jnp.bfloat16, jnp.float32

    def w(k, shape, scale):
        return (jax.random.normal(k, shape, f32) * scale).astype(bf16)

    def b(k, n):
        return (jax.random.normal(k, (1, n), f32) * 0.01).astype(f32)

    return {
        "wq": w(ks[0], (d_model, d_model), s_in), "bq": b(ks[1], d_model),
        "wk": w(ks[2], (d_model, d_model), s_in), "bk": b(ks[3], d_model),
        "wv": w(ks[4], (d_model, d_model), s_in), "bv": b(ks[5], d_model),
        "wo": w(ks[6], (d_model, d_model), s_in), "bo": b(ks[7], d_model),
        "ln1_g": jnp.ones((1, d_model), f32), "ln1_b": jnp.zeros((1, d_model), f32),
        "w1": w(ks[8], (d_model, d_ff), s_in), "b1": b(ks[9], d_ff),
        "w2": w(ks[10], (d_ff, d_model), s_ff), "b2": b(ks[11], d_model),
        "ln2_g": jnp.ones((1, d_model), f32), "ln2_b": jnp.zeros((1, d_model), f32),
    }


# -----------------------------------------------------------------------------
# pure-JAX reference mirroring the PyTorch EncoderLayer (eval mode) with the
# same bf16-operand / f32-accumulate matmul precision as the kernel
# -----------------------------------------------------------------------------
def encoder_layer_ref(x, params, num_heads):
    B, S, D = x.shape
    H = num_heads
    d_k = D // H
    bf16, f32 = jnp.bfloat16, jnp.float32

    def mm(a, w):
        return jnp.dot(a.astype(bf16), w, preferred_element_type=f32)

    def layer_norm(h, g, b, eps=1e-5):
        mu = h.mean(-1, keepdims=True)
        var = ((h - mu) ** 2).mean(-1, keepdims=True)
        return (h - mu) / jnp.sqrt(var + eps) * g + b

    q = mm(x, params["wq"]) + params["bq"]
    k = mm(x, params["wk"]) + params["bk"]
    v = mm(x, params["wv"]) + params["bv"]
    q = (q * (1.0 / math.sqrt(d_k))).reshape(B, S, H, d_k).transpose(0, 2, 1, 3).astype(bf16)
    k = k.reshape(B, S, H, d_k).transpose(0, 2, 1, 3).astype(bf16)
    v = v.reshape(B, S, H, d_k).transpose(0, 2, 1, 3).astype(bf16)
    s = jnp.einsum("bhqd,bhkd->bhqk", q, k, preferred_element_type=f32)
    s = s - s.max(-1, keepdims=True)
    e = jnp.exp(s)
    p = e / e.sum(-1, keepdims=True)
    ctx = jnp.einsum("bhqk,bhkd->bhqd", p.astype(bf16), v, preferred_element_type=f32)
    attn = ctx.transpose(0, 2, 1, 3).reshape(B, S, D)
    attn = mm(attn, params["wo"]) + params["bo"]
    h1 = layer_norm(x + attn, params["ln1_g"], params["ln1_b"])
    f = jnp.maximum(mm(h1, params["w1"]) + params["b1"], 0.0)
    f = mm(f, params["w2"]) + params["b2"]
    return layer_norm(h1 + f, params["ln2_g"], params["ln2_b"])


if __name__ == "__main__":
    # Small, module-consistent shapes: (B, S, d_model) with num_heads | d_model.
    B, S = 2, 8
    d_model, num_heads, d_ff = 32, 4, 64

    key = jax.random.PRNGKey(0)
    kx, kp = jax.random.split(key)
    x = jax.random.normal(kx, (B, S, d_model), jnp.float32)
    params = init_encoder_layer_params(kp, d_model, d_ff)

    ref = encoder_layer_ref(x, params, num_heads)

    def run(single_buffer_constants):
        out = encoder_layer_pallas(x, params, num_heads,
                                   single_buffer_constants=single_buffer_constants)
        out = jax.block_until_ready(out)
        assert out.shape == (B, S, d_model)
        max_err = float(jnp.max(jnp.abs(out - ref)))
        # tolerance accounts for bf16 matmul operands + approx EUP reciprocal
        assert jnp.allclose(out, ref, atol=1e-2, rtol=1e-2), (
            f"mismatch vs JAX reference (max abs err = {max_err})")
        return out

    try:
        # Preferred path: single-buffered constant operands (pl.Buffered(1)).
        out = run(True)
    except Exception:
        # Fall back to default (double) buffering if this jax build rejects
        # a buffer count of 1 for constant-index blocks.
        out = run(False)

    print("KERNEL_OK")
</pallas_src>

<mosaic_0001>
module attributes {stable_mosaic.version = 11 : i64} {
  func.func @encoder_layer_kernel(%arg0: i32, %arg1: i32, %arg2: memref<1x8x32xf32, #tpu.memory_space<vmem>>, %arg3: memref<32x32xbf16, #tpu.memory_space<vmem>>, %arg4: memref<1x32xf32, #tpu.memory_space<vmem>>, %arg5: memref<32x32xbf16, #tpu.memory_space<vmem>>, %arg6: memref<1x32xf32, #tpu.memory_space<vmem>>, %arg7: memref<32x32xbf16, #tpu.memory_space<vmem>>, %arg8: memref<1x32xf32, #tpu.memory_space<vmem>>, %arg9: memref<32x32xbf16, #tpu.memory_space<vmem>>, %arg10: memref<1x32xf32, #tpu.memory_space<vmem>>, %arg11: memref<1x32xf32, #tpu.memory_space<vmem>>, %arg12: memref<1x32xf32, #tpu.memory_space<vmem>>, %arg13: memref<32x64xbf16, #tpu.memory_space<vmem>>, %arg14: memref<1x64xf32, #tpu.memory_space<vmem>>, %arg15: memref<64x32xbf16, #tpu.memory_space<vmem>>, %arg16: memref<1x32xf32, #tpu.memory_space<vmem>>, %arg17: memref<1x32xf32, #tpu.memory_space<vmem>>, %arg18: memref<1x32xf32, #tpu.memory_space<vmem>>, %arg19: memref<1x8x32xf32, #tpu.memory_space<vmem>>, %arg20: memref<8x32xbf16, #tpu.memory_space<vmem>>, %arg21: memref<4x8x8xbf16, #tpu.memory_space<vmem>>, %arg22: memref<4x8x8xbf16, #tpu.memory_space<vmem>>) attributes {dimension_semantics = [#tpu.dimension_semantics<parallel>, #tpu.dimension_semantics<arbitrary>], iteration_bounds = array<i64: 2, 1>, scalar_prefetch = 0 : i64, scratch_operands = 3 : i64, tpu.core_type = #tpu.core_type<tc>, window_params = [{transform_indices = @transform_0, window_bounds = array<i64: 1, 8, 32>}, {pipeline_mode = #tpu.pipeline_mode<synchronous>, transform_indices = @transform_1, window_bounds = array<i64: 32, 32>}, {pipeline_mode = #tpu.pipeline_mode<synchronous>, transform_indices = @transform_2, window_bounds = array<i64: 1, 32>}, {pipeline_mode = #tpu.pipeline_mode<synchronous>, transform_indices = @transform_3, window_bounds = array<i64: 32, 32>}, {pipeline_mode = #tpu.pipeline_mode<synchronous>, transform_indices = @transform_4, window_bounds = array<i64: 1, 32>}, {pipeline_mode = #tpu.pipeline_mode<synchronous>, transform_indices = @transform_5, window_bounds = array<i64: 32, 32>}, {pipeline_mode = #tpu.pipeline_mode<synchronous>, transform_indices = @transform_6, window_bounds = array<i64: 1, 32>}, {pipeline_mode = #tpu.pipeline_mode<synchronous>, transform_indices = @transform_7, window_bounds = array<i64: 32, 32>}, {pipeline_mode = #tpu.pipeline_mode<synchronous>, transform_indices = @transform_8, window_bounds = array<i64: 1, 32>}, {pipeline_mode = #tpu.pipeline_mode<synchronous>, transform_indices = @transform_9, window_bounds = array<i64: 1, 32>}, {pipeline_mode = #tpu.pipeline_mode<synchronous>, transform_indices = @transform_10, window_bounds = array<i64: 1, 32>}, {pipeline_mode = #tpu.pipeline_mode<synchronous>, transform_indices = @transform_11, window_bounds = array<i64: 32, 64>}, {pipeline_mode = #tpu.pipeline_mode<synchronous>, transform_indices = @transform_12, window_bounds = array<i64: 1, 64>}, {pipeline_mode = #tpu.pipeline_mode<synchronous>, transform_indices = @transform_13, window_bounds = array<i64: 64, 32>}, {pipeline_mode = #tpu.pipeline_mode<synchronous>, transform_indices = @transform_14, window_bounds = array<i64: 1, 32>}, {pipeline_mode = #tpu.pipeline_mode<synchronous>, transform_indices = @transform_15, window_bounds = array<i64: 1, 32>}, {pipeline_mode = #tpu.pipeline_mode<synchronous>, transform_indices = @transform_16, window_bounds = array<i64: 1, 32>}, {transform_indices = @transform_17, window_bounds = array<i64: 1, 8, 32>}]} {
    %c0_i32 = arith.constant 0 : i32
    %0 = arith.cmpi eq, %arg1, %c0_i32 : i32
    %1 = arith.extui %0 : i1 to i32
    %c0_i32_0 = arith.constant 0 : i32
    %2 = arith.cmpi ne, %1, %c0_i32_0 : i32
    scf.if %2 {
      %c0_55 = arith.constant 0 : index
      %c0_56 = arith.constant 0 : index
      %c0_57 = arith.constant 0 : index
      %106 = vector.load %arg2[%c0_55, %c0_56, %c0_57] : memref<1x8x32xf32, #tpu.memory_space<vmem>>, vector<1x8x32xf32>
      %107 = vector.shape_cast %106 : vector<1x8x32xf32> to vector<8x32xf32>
      %108 = arith.truncf %107 : vector<8x32xf32> to vector<8x32xbf16>
      %c0_58 = arith.constant 0 : index
      %c0_59 = arith.constant 0 : index
      %109 = vector.load %arg20[%c0_58, %c0_59] : memref<8x32xbf16, #tpu.memory_space<vmem>>, vector<8x32xbf16>
      tpu.vector_store %arg20[%c0_58, %c0_59], %108 {strides = array<i32>} : memref<8x32xbf16, #tpu.memory_space<vmem>>, vector<8x32xbf16>,
      %c0_60 = arith.constant 0 : index
      %c0_61 = arith.constant 0 : index
      %110 = vector.load %arg5[%c0_60, %c0_61] : memref<32x32xbf16, #tpu.memory_space<vmem>>, vector<32x32xbf16>
      %cst_62 = arith.constant dense<0.000000e+00> : vector<8x32xf32>
      %111 = tpu.matmul %108, %110, %cst_62 {dimension_numbers = #tpu.dot_dimension_numbers<[1], [0], [0], [1], [0, 0, 1, 1], [], []>} : vector<8x32xbf16>, vector<32x32xbf16>, vector<8x32xf32> -> vector<8x32xf32>
      %c0_63 = arith.constant 0 : index
      %c0_64 = arith.constant 0 : index
      %112 = vector.load %arg6[%c0_63, %c0_64] : memref<1x32xf32, #tpu.memory_space<vmem>>, vector<1x32xf32>
      %113 = vector.broadcast %112 : vector<1x32xf32> to vector<8x32xf32>
      %114 = arith.addf %111, %113 : vector<8x32xf32>
      %c0_65 = arith.constant 0 : index
      %c0_66 = arith.constant 0 : index
      %115 = vector.load %arg7[%c0_65, %c0_66] : memref<32x32xbf16, #tpu.memory_space<vmem>>, vector<32x32xbf16>
      %cst_67 = arith.constant dense<0.000000e+00> : vector<8x32xf32>
      %116 = tpu.matmul %108, %115, %cst_67 {dimension_numbers = #tpu.dot_dimension_numbers<[1], [0], [0], [1], [0, 0, 1, 1], [], []>} : vector<8x32xbf16>, vector<32x32xbf16>, vector<8x32xf32> -> vector<8x32xf32>
      %c0_68 = arith.constant 0 : index
      %c0_69 = arith.constant 0 : index
      %117 = vector.load %arg8[%c0_68, %c0_69] : memref<1x32xf32, #tpu.memory_space<vmem>>, vector<1x32xf32>
      %118 = vector.broadcast %117 : vector<1x32xf32> to vector<8x32xf32>
      %119 = arith.addf %116, %118 : vector<8x32xf32>
      %120 = vector.shape_cast %114 : vector<8x32xf32> to vector<8x4x8xf32>
      %121 = tpu.transpose %120, [1, 0, 2] : vector<8x4x8xf32> -> vector<4x8x8xf32>
      %122 = arith.truncf %121 : vector<4x8x8xf32> to vector<4x8x8xbf16>
      %c0_70 = arith.constant 0 : index
      %c0_71 = arith.constant 0 : index
      %c0_72 = arith.constant 0 : index
      %123 = vector.load %arg21[%c0_70, %c0_71, %c0_72] : memref<4x8x8xbf16, #tpu.memory_space<vmem>>, vector<4x8x8xbf16>
      tpu.vector_store %arg21[%c0_70, %c0_71, %c0_72], %122 {strides = array<i32>} : memref<4x8x8xbf16, #tpu.memory_space<vmem>>, vector<4x8x8xbf16>,
      %124 = vector.shape_cast %119 : vector<8x32xf32> to vector<8x4x8xf32>
      %125 = tpu.transpose %124, [1, 0, 2] : vector<8x4x8xf32> -> vector<4x8x8xf32>
      %126 = arith.truncf %125 : vector<4x8x8xf32> to vector<4x8x8xbf16>
      %c0_73 = arith.constant 0 : index
      %c0_74 = arith.constant 0 : index
      %c0_75 = arith.constant 0 : index
      %127 = vector.load %arg22[%c0_73, %c0_74, %c0_75] : memref<4x8x8xbf16, #tpu.memory_space<vmem>>, vector<4x8x8xbf16>
      tpu.vector_store %arg22[%c0_73, %c0_74, %c0_75], %126 {strides = array<i32>} : memref<4x8x8xbf16, #tpu.memory_space<vmem>>, vector<4x8x8xbf16>,
    } else {
    }
    %c8_i32 = arith.constant 8 : i32
    %3 = arith.muli %arg1, %c8_i32 : i32
    %4 = tpu.assume_multiple %3, 8 : i32
    %c0 = arith.constant 0 : index
    %5 = arith.index_cast %4 : i32 to index
    %c0_1 = arith.constant 0 : index
    %6 = vector.load %arg2[%c0, %5, %c0_1] : memref<1x8x32xf32, #tpu.memory_space<vmem>>, vector<1x8x32xf32>
    %7 = vector.shape_cast %6 : vector<1x8x32xf32> to vector<8x32xf32>
    %8 = arith.index_cast %4 : i32 to index
    %c0_2 = arith.constant 0 : index
    %9 = vector.load %arg20[%8, %c0_2] : memref<8x32xbf16, #tpu.memory_space<vmem>>, vector<8x32xbf16>
    %c0_3 = arith.constant 0 : index
    %c0_4 = arith.constant 0 : index
    %10 = vector.load %arg3[%c0_3, %c0_4] : memref<32x32xbf16, #tpu.memory_space<vmem>>, vector<32x32xbf16>
    %cst = arith.constant dense<0.000000e+00> : vector<8x32xf32>
    %11 = tpu.matmul %9, %10, %cst {dimension_numbers = #tpu.dot_dimension_numbers<[1], [0], [0], [1], [0, 0, 1, 1], [], []>} : vector<8x32xbf16>, vector<32x32xbf16>, vector<8x32xf32> -> vector<8x32xf32>
    %c0_5 = arith.constant 0 : index
    %c0_6 = arith.constant 0 : index
    %12 = vector.load %arg4[%c0_5, %c0_6] : memref<1x32xf32, #tpu.memory_space<vmem>>, vector<1x32xf32>
    %13 = vector.broadcast %12 : vector<1x32xf32> to vector<8x32xf32>
    %14 = arith.addf %11, %13 : vector<8x32xf32>
    %cst_7 = arith.constant 0.353553385 : f32
    %15 = vector.broadcast %cst_7 : f32 to vector<8x32xf32>
    %16 = arith.mulf %14, %15 : vector<8x32xf32>
    %17 = vector.shape_cast %16 : vector<8x32xf32> to vector<8x4x8xf32>
    %18 = tpu.transpose %17, [1, 0, 2] : vector<8x4x8xf32> -> vector<4x8x8xf32>
    %19 = arith.truncf %18 : vector<4x8x8xf32> to vector<4x8x8xbf16>
    %c0_8 = arith.constant 0 : index
    %c0_9 = arith.constant 0 : index
    %c0_10 = arith.constant 0 : index
    %20 = vector.load %arg21[%c0_8, %c0_9, %c0_10] : memref<4x8x8xbf16, #tpu.memory_space<vmem>>, vector<4x8x8xbf16>
    "tpu.trace_start"() <{level = 10 : i32, message = "hqd,hkd->hqk"}> : () -> ()
    %cst_11 = arith.constant dense<0.000000e+00> : vector<4x8x8xf32>
    %21 = tpu.matmul %19, %20, %cst_11 {dimension_numbers = #tpu.dot_dimension_numbers<[2], [2], [1], [1], [0, 0, 0, 1, 1, 1], [0], [0]>} : vector<4x8x8xbf16>, vector<4x8x8xbf16>, vector<4x8x8xf32> -> vector<4x8x8xf32>
    "tpu.trace_stop"() : () -> ()
    %cst_12 = arith.constant dense<0xFF800000> : vector<4x8xf32>
    %22 = vector.multi_reduction <maximumf>, %21, %cst_12 [2] : vector<4x8x8xf32> to vector<4x8xf32>
    %23 = vector.shape_cast %22 : vector<4x8xf32> to vector<4x8x1xf32>
    %24 = vector.broadcast %23 : vector<4x8x1xf32> to vector<4x8x8xf32>
    %25 = arith.subf %21, %24 : vector<4x8x8xf32>
    %26 = math.exp %25 : vector<4x8x8xf32>
    %cst_13 = arith.constant dense<0.000000e+00> : vector<4x8xf32>
    %27 = vector.multi_reduction <add>, %26, %cst_13 [2] : vector<4x8x8xf32> to vector<4x8xf32>
    %28 = vector.shape_cast %27 : vector<4x8xf32> to vector<4x8x1xf32>
    %29 = arith.truncf %26 : vector<4x8x8xf32> to vector<4x8x8xbf16>
    %c0_14 = arith.constant 0 : index
    %c0_15 = arith.constant 0 : index
    %c0_16 = arith.constant 0 : index
    %30 = vector.load %arg22[%c0_14, %c0_15, %c0_16] : memref<4x8x8xbf16, #tpu.memory_space<vmem>>, vector<4x8x8xbf16>
    "tpu.trace_start"() <{level = 10 : i32, message = "hqk,hkd->hqd"}> : () -> ()
    %cst_17 = arith.constant dense<0.000000e+00> : vector<4x8x8xf32>
    %31 = tpu.matmul %29, %30, %cst_17 {dimension_numbers = #tpu.dot_dimension_numbers<[2], [1], [1], [2], [0, 0, 0, 1, 1, 2], [0], [0]>} : vector<4x8x8xbf16>, vector<4x8x8xbf16>, vector<4x8x8xf32> -> vector<4x8x8xf32>
    "tpu.trace_stop"() : () -> ()
    %32 = tpu.reciprocal %28 {approx = true} : vector<4x8x1xf32> -> vector<4x8x1xf32>
    %33 = vector.broadcast %32 : vector<4x8x1xf32> to vector<4x8x8xf32>
    %34 = arith.mulf %31, %33 : vector<4x8x8xf32>
    %35 = tpu.transpose %34, [1, 0, 2] : vector<4x8x8xf32> -> vector<8x4x8xf32>
    %36 = vector.shape_cast %35 : vector<8x4x8xf32> to vector<8x32xf32>
    %37 = arith.truncf %36 : vector<8x32xf32> to vector<8x32xbf16>
    %c0_18 = arith.constant 0 : index
    %c0_19 = arith.constant 0 : index
    %38 = vector.load %arg9[%c0_18, %c0_19] : memref<32x32xbf16, #tpu.memory_space<vmem>>, vector<32x32xbf16>
    %cst_20 = arith.constant dense<0.000000e+00> : vector<8x32xf32>
    %39 = tpu.matmul %37, %38, %cst_20 {dimension_numbers = #tpu.dot_dimension_numbers<[1], [0], [0], [1], [0, 0, 1, 1], [], []>} : vector<8x32xbf16>, vector<32x32xbf16>, vector<8x32xf32> -> vector<8x32xf32>
    %c0_21 = arith.constant 0 : index
    %c0_22 = arith.constant 0 : index
    %40 = vector.load %arg10[%c0_21, %c0_22] : memref<1x32xf32, #tpu.memory_space<vmem>>, vector<1x32xf32>
    %41 = vector.broadcast %40 : vector<1x32xf32> to vector<8x32xf32>
    %42 = arith.addf %39, %41 : vector<8x32xf32>
    %43 = arith.addf %7, %42 : vector<8x32xf32>
    %c0_23 = arith.constant 0 : index
    %c0_24 = arith.constant 0 : index
    %44 = vector.load %arg11[%c0_23, %c0_24] : memref<1x32xf32, #tpu.memory_space<vmem>>, vector<1x32xf32>
    %c0_25 = arith.constant 0 : index
    %c0_26 = arith.constant 0 : index
    %45 = vector.load %arg12[%c0_25, %c0_26] : memref<1x32xf32, #tpu.memory_space<vmem>>, vector<1x32xf32>
    %cst_27 = arith.constant dense<0.000000e+00> : vector<8xf32>
    %46 = vector.multi_reduction <add>, %43, %cst_27 [1] : vector<8x32xf32> to vector<8xf32>
    %47 = vector.shape_cast %46 : vector<8xf32> to vector<8x1xf32>
    %cst_28 = arith.constant 3.200000e+01 : f32
    %48 = vector.broadcast %cst_28 : f32 to vector<8x1xf32>
    %49 = arith.divf %47, %48 : vector<8x1xf32>
    %50 = vector.broadcast %49 : vector<8x1xf32> to vector<8x32xf32>
    %51 = arith.subf %43, %50 : vector<8x32xf32>
    %52 = arith.mulf %51, %51 : vector<8x32xf32>
    %cst_29 = arith.constant dense<0.000000e+00> : vector<8xf32>
    %53 = vector.multi_reduction <add>, %52, %cst_29 [1] : vector<8x32xf32> to vector<8xf32>
    %54 = vector.shape_cast %53 : vector<8xf32> to vector<8x1xf32>
    %cst_30 = arith.constant 3.200000e+01 : f32
    %55 = vector.broadcast %cst_30 : f32 to vector<8x1xf32>
    %56 = arith.divf %54, %55 : vector<8x1xf32>
    %cst_31 = arith.constant 9.99999974E-6 : f32
    %57 = vector.broadcast %cst_31 : f32 to vector<8x1xf32>
    %58 = arith.addf %56, %57 : vector<8x1xf32>
    %59 = math.rsqrt %58 : vector<8x1xf32>
    %60 = vector.broadcast %59 : vector<8x1xf32> to vector<8x32xf32>
    %61 = arith.mulf %51, %60 : vector<8x32xf32>
    %62 = vector.broadcast %44 : vector<1x32xf32> to vector<8x32xf32>
    %63 = arith.mulf %61, %62 : vector<8x32xf32>
    %64 = vector.broadcast %45 : vector<1x32xf32> to vector<8x32xf32>
    %65 = arith.addf %63, %64 : vector<8x32xf32>
    %66 = arith.truncf %65 : vector<8x32xf32> to vector<8x32xbf16>
    %c0_32 = arith.constant 0 : index
    %c0_33 = arith.constant 0 : index
    %67 = vector.load %arg13[%c0_32, %c0_33] : memref<32x64xbf16, #tpu.memory_space<vmem>>, vector<32x64xbf16>
    %cst_34 = arith.constant dense<0.000000e+00> : vector<8x64xf32>
    %68 = tpu.matmul %66, %67, %cst_34 {dimension_numbers = #tpu.dot_dimension_numbers<[1], [0], [0], [1], [0, 0, 1, 1], [], []>} : vector<8x32xbf16>, vector<32x64xbf16>, vector<8x64xf32> -> vector<8x64xf32>
    %c0_35 = arith.constant 0 : index
    %c0_36 = arith.constant 0 : index
    %69 = vector.load %arg14[%c0_35, %c0_36] : memref<1x64xf32, #tpu.memory_space<vmem>>, vector<1x64xf32>
    %70 = vector.broadcast %69 : vector<1x64xf32> to vector<8x64xf32>
    %71 = arith.addf %68, %70 : vector<8x64xf32>
    %cst_37 = arith.constant 0.000000e+00 : f32
    %72 = vector.broadcast %cst_37 : f32 to vector<8x64xf32>
    %73 = arith.maximumf %71, %72 : vector<8x64xf32>
    %74 = arith.truncf %73 : vector<8x64xf32> to vector<8x64xbf16>
    %c0_38 = arith.constant 0 : index
    %c0_39 = arith.constant 0 : index
    %75 = vector.load %arg15[%c0_38, %c0_39] : memref<64x32xbf16, #tpu.memory_space<vmem>>, vector<64x32xbf16>
    %cst_40 = arith.constant dense<0.000000e+00> : vector<8x32xf32>
    %76 = tpu.matmul %74, %75, %cst_40 {dimension_numbers = #tpu.dot_dimension_numbers<[1], [0], [0], [1], [0, 0, 1, 1], [], []>} : vector<8x64xbf16>, vector<64x32xbf16>, vector<8x32xf32> -> vector<8x32xf32>
    %c0_41 = arith.constant 0 : index
    %c0_42 = arith.constant 0 : index
    %77 = vector.load %arg16[%c0_41, %c0_42] : memref<1x32xf32, #tpu.memory_space<vmem>>, vector<1x32xf32>
    %78 = vector.broadcast %77 : vector<1x32xf32> to vector<8x32xf32>
    %79 = arith.addf %76, %78 : vector<8x32xf32>
    %80 = arith.addf %65, %79 : vector<8x32xf32>
    %c0_43 = arith.constant 0 : index
    %c0_44 = arith.constant 0 : index
    %81 = vector.load %arg17[%c0_43, %c0_44] : memref<1x32xf32, #tpu.memory_space<vmem>>, vector<1x32xf32>
    %c0_45 = arith.constant 0 : index
    %c0_46 = arith.constant 0 : index
    %82 = vector.load %arg18[%c0_45, %c0_46] : memref<1x32xf32, #tpu.memory_space<vmem>>, vector<1x32xf32>
    %cst_47 = arith.constant dense<0.000000e+00> : vector<8xf32>
    %83 = vector.multi_reduction <add>, %80, %cst_47 [1] : vector<8x32xf32> to vector<8xf32>
    %84 = vector.shape_cast %83 : vector<8xf32> to vector<8x1xf32>
    %cst_48 = arith.constant 3.200000e+01 : f32
    %85 = vector.broadcast %cst_48 : f32 to vector<8x1xf32>
    %86 = arith.divf %84, %85 : vector<8x1xf32>
    %87 = vector.broadcast %86 : vector<8x1xf32> to vector<8x32xf32>
    %88 = arith.subf %80, %87 : vector<8x32xf32>
    %89 = arith.mulf %88, %88 : vector<8x32xf32>
    %cst_49 = arith.constant dense<0.000000e+00> : vector<8xf32>
    %90 = vector.multi_reduction <add>, %89, %cst_49 [1] : vector<8x32xf32> to vector<8xf32>
    %91 = vector.shape_cast %90 : vector<8xf32> to vector<8x1xf32>
    %cst_50 = arith.constant 3.200000e+01 : f32
    %92 = vector.broadcast %cst_50 : f32 to vector<8x1xf32>
    %93 = arith.divf %91, %92 : vector<8x1xf32>
    %cst_51 = arith.constant 9.99999974E-6 : f32
    %94 = vector.broadcast %cst_51 : f32 to vector<8x1xf32>
    %95 = arith.addf %93, %94 : vector<8x1xf32>
    %96 = math.rsqrt %95 : vector<8x1xf32>
    %97 = vector.broadcast %96 : vector<8x1xf32> to vector<8x32xf32>
    %98 = arith.mulf %88, %97 : vector<8x32xf32>
    %99 = vector.broadcast %81 : vector<1x32xf32> to vector<8x32xf32>
    %100 = arith.mulf %98, %99 : vector<8x32xf32>
    %101 = vector.broadcast %82 : vector<1x32xf32> to vector<8x32xf32>
    %102 = arith.addf %100, %101 : vector<8x32xf32>
    %c0_52 = arith.constant 0 : index
    %c0_53 = arith.constant 0 : index
    %c0_54 = arith.constant 0 : index
    %103 = vector.load %arg19[%c0_52, %c0_53, %c0_54] : memref<1x8x32xf32, #tpu.memory_space<vmem>>, vector<1x8x32xf32>
    %104 = vector.shape_cast %103 : vector<1x8x32xf32> to vector<8x32xf32>
    %105 = vector.shape_cast %102 : vector<8x32xf32> to vector<1x8x32xf32>
    tpu.vector_store %arg19[%c0_52, %c0_53, %c0_54], %105 {strides = array<i32>} : memref<1x8x32xf32, #tpu.memory_space<vmem>>, vector<1x8x32xf32>,
    return
  }
  func.func @transform_0(%arg0: i32, %arg1: i32) -> (i32, i32, i32) {
    %c0_i32 = arith.constant 0 : i32
    %c0_i32_0 = arith.constant 0 : i32
    %c0_i32_1 = arith.constant 0 : i32
    return %arg0, %c0_i32, %c0_i32_0 : i32, i32, i32
  }
  func.func @transform_1(%arg0: i32, %arg1: i32) -> (i32, i32) {
    %c0_i32 = arith.constant 0 : i32
    %c0_i32_0 = arith.constant 0 : i32
    %c0_i32_1 = arith.constant 0 : i32
    return %c0_i32, %c0_i32_0 : i32, i32
  }
  func.func @transform_2(%arg0: i32, %arg1: i32) -> (i32, i32) {
    %c0_i32 = arith.constant 0 : i32
    %c0_i32_0 = arith.constant 0 : i32
    %c0_i32_1 = arith.constant 0 : i32
    return %c0_i32, %c0_i32_0 : i32, i32
  }
  func.func @transform_3(%arg0: i32, %arg1: i32) -> (i32, i32) {
    %c0_i32 = arith.constant 0 : i32
    %c0_i32_0 = arith.constant 0 : i32
    %c0_i32_1 = arith.constant 0 : i32
    return %c0_i32, %c0_i32_0 : i32, i32
  }
  func.func @transform_4(%arg0: i32, %arg1: i32) -> (i32, i32) {
    %c0_i32 = arith.constant 0 : i32
    %c0_i32_0 = arith.constant 0 : i32
    %c0_i32_1 = arith.constant 0 : i32
    return %c0_i32, %c0_i32_0 : i32, i32
  }
  func.func @transform_5(%arg0: i32, %arg1: i32) -> (i32, i32) {
    %c0_i32 = arith.constant 0 : i32
    %c0_i32_0 = arith.constant 0 : i32
    %c0_i32_1 = arith.constant 0 : i32
    return %c0_i32, %c0_i32_0 : i32, i32
  }
  func.func @transform_6(%arg0: i32, %arg1: i32) -> (i32, i32) {
    %c0_i32 = arith.constant 0 : i32
    %c0_i32_0 = arith.constant 0 : i32
    %c0_i32_1 = arith.constant 0 : i32
    return %c0_i32, %c0_i32_0 : i32, i32
  }
  func.func @transform_7(%arg0: i32, %arg1: i32) -> (i32, i32) {
    %c0_i32 = arith.constant 0 : i32
    %c0_i32_0 = arith.constant 0 : i32
    %c0_i32_1 = arith.constant 0 : i32
    return %c0_i32, %c0_i32_0 : i32, i32
  }
  func.func @transform_8(%arg0: i32, %arg1: i32) -> (i32, i32) {
    %c0_i32 = arith.constant 0 : i32
    %c0_i32_0 = arith.constant 0 : i32
    %c0_i32_1 = arith.constant 0 : i32
    return %c0_i32, %c0_i32_0 : i32, i32
  }
  func.func @transform_9(%arg0: i32, %arg1: i32) -> (i32, i32) {
    %c0_i32 = arith.constant 0 : i32
    %c0_i32_0 = arith.constant 0 : i32
    %c0_i32_1 = arith.constant 0 : i32
    return %c0_i32, %c0_i32_0 : i32, i32
  }
  func.func @transform_10(%arg0: i32, %arg1: i32) -> (i32, i32) {
    %c0_i32 = arith.constant 0 : i32
    %c0_i32_0 = arith.constant 0 : i32
    %c0_i32_1 = arith.constant 0 : i32
    return %c0_i32, %c0_i32_0 : i32, i32
  }
  func.func @transform_11(%arg0: i32, %arg1: i32) -> (i32, i32) {
    %c0_i32 = arith.constant 0 : i32
    %c0_i32_0 = arith.constant 0 : i32
    %c0_i32_1 = arith.constant 0 : i32
    return %c0_i32, %c0_i32_0 : i32, i32
  }
  func.func @transform_12(%arg0: i32, %arg1: i32) -> (i32, i32) {
    %c0_i32 = arith.constant 0 : i32
    %c0_i32_0 = arith.constant 0 : i32
    %c0_i32_1 = arith.constant 0 : i32
    return %c0_i32, %c0_i32_0 : i32, i32
  }
  func.func @transform_13(%arg0: i32, %arg1: i32) -> (i32, i32) {
    %c0_i32 = arith.constant 0 : i32
    %c0_i32_0 = arith.constant 0 : i32
    %c0_i32_1 = arith.constant 0 : i32
    return %c0_i32, %c0_i32_0 : i32, i32
  }
  func.func @transform_14(%arg0: i32, %arg1: i32) -> (i32, i32) {
    %c0_i32 = arith.constant 0 : i32
    %c0_i32_0 = arith.constant 0 : i32
    %c0_i32_1 = arith.constant 0 : i32
    return %c0_i32, %c0_i32_0 : i32, i32
  }
  func.func @transform_15(%arg0: i32, %arg1: i32) -> (i32, i32) {
    %c0_i32 = arith.constant 0 : i32
    %c0_i32_0 = arith.constant 0 : i32
    %c0_i32_1 = arith.constant 0 : i32
    return %c0_i32, %c0_i32_0 : i32, i32
  }
  func.func @transform_16(%arg0: i32, %arg1: i32) -> (i32, i32) {
    %c0_i32 = arith.constant 0 : i32
    %c0_i32_0 = arith.constant 0 : i32
    %c0_i32_1 = arith.constant 0 : i32
    return %c0_i32, %c0_i32_0 : i32, i32
  }
  func.func @transform_17(%arg0: i32, %arg1: i32) -> (i32, i32, i32) {
    %c0_i32 = arith.constant 0 : i32
    %c0_i32_0 = arith.constant 0 : i32
    return %arg0, %arg1, %c0_i32 : i32, i32, i32
  }
}

module attributes {stable_mosaic.version = 11 : i64} {
  func.func @encoder_layer_kernel(%arg0: i32, %arg1: i32, %arg2: memref<1x8x32xf32, #tpu.memory_space<vmem>>, %arg3: memref<32x32xbf16, #tpu.memory_space<vmem>>, %arg4: memref<1x32xf32, #tpu.memory_space<vmem>>, %arg5: memref<32x32xbf16, #tpu.memory_space<vmem>>, %arg6: memref<1x32xf32, #tpu.memory_space<vmem>>, %arg7: memref<32x32xbf16, #tpu.memory_space<vmem>>, %arg8: memref<1x32xf32, #tpu.memory_space<vmem>>, %arg9: memref<32x32xbf16, #tpu.memory_space<vmem>>, %arg10: memref<1x32xf32, #tpu.memory_space<vmem>>, %arg11: memref<1x32xf32, #tpu.memory_space<vmem>>, %arg12: memref<1x32xf32, #tpu.memory_space<vmem>>, %arg13: memref<32x64xbf16, #tpu.memory_space<vmem>>, %arg14: memref<1x64xf32, #tpu.memory_space<vmem>>, %arg15: memref<64x32xbf16, #tpu.memory_space<vmem>>, %arg16: memref<1x32xf32, #tpu.memory_space<vmem>>, %arg17: memref<1x32xf32, #tpu.memory_space<vmem>>, %arg18: memref<1x32xf32, #tpu.memory_space<vmem>>, %arg19: memref<1x8x32xf32, #tpu.memory_space<vmem>>, %arg20: memref<8x32xbf16, #tpu.memory_space<vmem>>, %arg21: memref<4x8x8xbf16, #tpu.memory_space<vmem>>, %arg22: memref<4x8x8xbf16, #tpu.memory_space<vmem>>) attributes {dimension_semantics = [#tpu.dimension_semantics<parallel>, #tpu.dimension_semantics<arbitrary>], iteration_bounds = array<i64: 2, 1>, scalar_prefetch = 0 : i64, scratch_operands = 3 : i64, tpu.core_type = #tpu.core_type<tc>, window_params = [{transform_indices = @transform_0, window_bounds = array<i64: 1, 8, 32>}, {pipeline_mode = #tpu.pipeline_mode<synchronous>, transform_indices = @transform_1, window_bounds = array<i64: 32, 32>}, {pipeline_mode = #tpu.pipeline_mode<synchronous>, transform_indices = @transform_2, window_bounds = array<i64: 1, 32>}, {pipeline_mode = #tpu.pipeline_mode<synchronous>, transform_indices = @transform_3, window_bounds = array<i64: 32, 32>}, {pipeline_mode = #tpu.pipeline_mode<synchronous>, transform_indices = @transform_4, window_bounds = array<i64: 1, 32>}, {pipeline_mode = #tpu.pipeline_mode<synchronous>, transform_indices = @transform_5, window_bounds = array<i64: 32, 32>}, {pipeline_mode = #tpu.pipeline_mode<synchronous>, transform_indices = @transform_6, window_bounds = array<i64: 1, 32>}, {pipeline_mode = #tpu.pipeline_mode<synchronous>, transform_indices = @transform_7, window_bounds = array<i64: 32, 32>}, {pipeline_mode = #tpu.pipeline_mode<synchronous>, transform_indices = @transform_8, window_bounds = array<i64: 1, 32>}, {pipeline_mode = #tpu.pipeline_mode<synchronous>, transform_indices = @transform_9, window_bounds = array<i64: 1, 32>}, {pipeline_mode = #tpu.pipeline_mode<synchronous>, transform_indices = @transform_10, window_bounds = array<i64: 1, 32>}, {pipeline_mode = #tpu.pipeline_mode<synchronous>, transform_indices = @transform_11, window_bounds = array<i64: 32, 64>}, {pipeline_mode = #tpu.pipeline_mode<synchronous>, transform_indices = @transform_12, window_bounds = array<i64: 1, 64>}, {pipeline_mode = #tpu.pipeline_mode<synchronous>, transform_indices = @transform_13, window_bounds = array<i64: 64, 32>}, {pipeline_mode = #tpu.pipeline_mode<synchronous>, transform_indices = @transform_14, window_bounds = array<i64: 1, 32>}, {pipeline_mode = #tpu.pipeline_mode<synchronous>, transform_indices = @transform_15, window_bounds = array<i64: 1, 32>}, {pipeline_mode = #tpu.pipeline_mode<synchronous>, transform_indices = @transform_16, window_bounds = array<i64: 1, 32>}, {transform_indices = @transform_17, window_bounds = array<i64: 1, 8, 32>}]} {
    %c0_i32 = arith.constant 0 : i32
    %0 = arith.cmpi eq, %arg1, %c0_i32 : i32
    %1 = arith.extui %0 : i1 to i32
    %c0_i32_0 = arith.constant 0 : i32
    %2 = arith.cmpi ne, %1, %c0_i32_0 : i32
    scf.if %2 {
      %c0_55 = arith.constant 0 : index
      %c0_56 = arith.constant 0 : index
      %c0_57 = arith.constant 0 : index
      %106 = vector.load %arg2[%c0_55, %c0_56, %c0_57] : memref<1x8x32xf32, #tpu.memory_space<vmem>>, vector<1x8x32xf32>
      %107 = vector.shape_cast %106 : vector<1x8x32xf32> to vector<8x32xf32>
      %108 = arith.truncf %107 : vector<8x32xf32> to vector<8x32xbf16>
      %c0_58 = arith.constant 0 : index
      %c0_59 = arith.constant 0 : index
      %109 = vector.load %arg20[%c0_58, %c0_59] : memref<8x32xbf16, #tpu.memory_space<vmem>>, vector<8x32xbf16>
      tpu.vector_store %arg20[%c0_58, %c0_59], %108 {strides = array<i32>} : memref<8x32xbf16, #tpu.memory_space<vmem>>, vector<8x32xbf16>,
      %c0_60 = arith.constant 0 : index
      %c0_61 = arith.constant 0 : index
      %110 = vector.load %arg5[%c0_60, %c0_61] : memref<32x32xbf16, #tpu.memory_space<vmem>>, vector<32x32xbf16>
      %cst_62 = arith.constant dense<0.000000e+00> : vector<8x32xf32>
      %111 = tpu.matmul %108, %110, %cst_62 {dimension_numbers = #tpu.dot_dimension_numbers<[1], [0], [0], [1], [0, 0, 1, 1], [], []>} : vector<8x32xbf16>, vector<32x32xbf16>, vector<8x32xf32> -> vector<8x32xf32>
      %c0_63 = arith.constant 0 : index
      %c0_64 = arith.constant 0 : index
      %112 = vector.load %arg6[%c0_63, %c0_64] : memref<1x32xf32, #tpu.memory_space<vmem>>, vector<1x32xf32>
      %113 = vector.broadcast %112 : vector<1x32xf32> to vector<8x32xf32>
      %114 = arith.addf %111, %113 : vector<8x32xf32>
      %c0_65 = arith.constant 0 : index
      %c0_66 = arith.constant 0 : index
      %115 = vector.load %arg7[%c0_65, %c0_66] : memref<32x32xbf16, #tpu.memory_space<vmem>>, vector<32x32xbf16>
      %cst_67 = arith.constant dense<0.000000e+00> : vector<8x32xf32>
      %116 = tpu.matmul %108, %115, %cst_67 {dimension_numbers = #tpu.dot_dimension_numbers<[1], [0], [0], [1], [0, 0, 1, 1], [], []>} : vector<8x32xbf16>, vector<32x32xbf16>, vector<8x32xf32> -> vector<8x32xf32>
      %c0_68 = arith.constant 0 : index
      %c0_69 = arith.constant 0 : index
      %117 = vector.load %arg8[%c0_68, %c0_69] : memref<1x32xf32, #tpu.memory_space<vmem>>, vector<1x32xf32>
      %118 = vector.broadcast %117 : vector<1x32xf32> to vector<8x32xf32>
      %119 = arith.addf %116, %118 : vector<8x32xf32>
      %120 = vector.shape_cast %114 : vector<8x32xf32> to vector<8x4x8xf32>
      %121 = tpu.transpose %120, [1, 0, 2] : vector<8x4x8xf32> -> vector<4x8x8xf32>
      %122 = arith.truncf %121 : vector<4x8x8xf32> to vector<4x8x8xbf16>
      %c0_70 = arith.constant 0 : index
      %c0_71 = arith.constant 0 : index
      %c0_72 = arith.constant 0 : index
      %123 = vector.load %arg21[%c0_70, %c0_71, %c0_72] : memref<4x8x8xbf16, #tpu.memory_space<vmem>>, vector<4x8x8xbf16>
      tpu.vector_store %arg21[%c0_70, %c0_71, %c0_72], %122 {strides = array<i32>} : memref<4x8x8xbf16, #tpu.memory_space<vmem>>, vector<4x8x8xbf16>,
      %124 = vector.shape_cast %119 : vector<8x32xf32> to vector<8x4x8xf32>
      %125 = tpu.transpose %124, [1, 0, 2] : vector<8x4x8xf32> -> vector<4x8x8xf32>
      %126 = arith.truncf %125 : vector<4x8x8xf32> to vector<4x8x8xbf16>
      %c0_73 = arith.constant 0 : index
      %c0_74 = arith.constant 0 : index
      %c0_75 = arith.constant 0 : index
      %127 = vector.load %arg22[%c0_73, %c0_74, %c0_75] : memref<4x8x8xbf16, #tpu.memory_space<vmem>>, vector<4x8x8xbf16>
      tpu.vector_store %arg22[%c0_73, %c0_74, %c0_75], %126 {strides = array<i32>} : memref<4x8x8xbf16, #tpu.memory_space<vmem>>, vector<4x8x8xbf16>,
    } else {
    }
    %c8_i32 = arith.constant 8 : i32
    %3 = arith.muli %arg1, %c8_i32 : i32
    %4 = tpu.assume_multiple %3, 8 : i32
    %c0 = arith.constant 0 : index
    %5 = arith.index_cast %4 : i32 to index
    %c0_1 = arith.constant 0 : index
    %6 = vector.load %arg2[%c0, %5, %c0_1] : memref<1x8x32xf32, #tpu.memory_space<vmem>>, vector<1x8x32xf32>
    %7 = vector.shape_cast %6 : vector<1x8x32xf32> to vector<8x32xf32>
    %8 = arith.index_cast %4 : i32 to index
    %c0_2 = arith.constant 0 : index
    %9 = vector.load %arg20[%8, %c0_2] : memref<8x32xbf16, #tpu.memory_space<vmem>>, vector<8x32xbf16>
    %c0_3 = arith.constant 0 : index
    %c0_4 = arith.constant 0 : index
    %10 = vector.load %arg3[%c0_3, %c0_4] : memref<32x32xbf16, #tpu.memory_space<vmem>>, vector<32x32xbf16>
    %cst = arith.constant dense<0.000000e+00> : vector<8x32xf32>
    %11 = tpu.matmul %9, %10, %cst {dimension_numbers = #tpu.dot_dimension_numbers<[1], [0], [0], [1], [0, 0, 1, 1], [], []>} : vector<8x32xbf16>, vector<32x32xbf16>, vector<8x32xf32> -> vector<8x32xf32>
    %c0_5 = arith.constant 0 : index
    %c0_6 = arith.constant 0 : index
    %12 = vector.load %arg4[%c0_5, %c0_6] : memref<1x32xf32, #tpu.memory_space<vmem>>, vector<1x32xf32>
    %13 = vector.broadcast %12 : vector<1x32xf32> to vector<8x32xf32>
    %14 = arith.addf %11, %13 : vector<8x32xf32>
    %cst_7 = arith.constant 0.353553385 : f32
    %15 = vector.broadcast %cst_7 : f32 to vector<8x32xf32>
    %16 = arith.mulf %14, %15 : vector<8x32xf32>
    %17 = vector.shape_cast %16 : vector<8x32xf32> to vector<8x4x8xf32>
    %18 = tpu.transpose %17, [1, 0, 2] : vector<8x4x8xf32> -> vector<4x8x8xf32>
    %19 = arith.truncf %18 : vector<4x8x8xf32> to vector<4x8x8xbf16>
    %c0_8 = arith.constant 0 : index
    %c0_9 = arith.constant 0 : index
    %c0_10 = arith.constant 0 : index
    %20 = vector.load %arg21[%c0_8, %c0_9, %c0_10] : memref<4x8x8xbf16, #tpu.memory_space<vmem>>, vector<4x8x8xbf16>
    "tpu.trace_start"() <{level = 10 : i32, message = "hqd,hkd->hqk"}> : () -> ()
    %cst_11 = arith.constant dense<0.000000e+00> : vector<4x8x8xf32>
    %21 = tpu.matmul %19, %20, %cst_11 {dimension_numbers = #tpu.dot_dimension_numbers<[2], [2], [1], [1], [0, 0, 0, 1, 1, 1], [0], [0]>} : vector<4x8x8xbf16>, vector<4x8x8xbf16>, vector<4x8x8xf32> -> vector<4x8x8xf32>
    "tpu.trace_stop"() : () -> ()
    %cst_12 = arith.constant dense<0xFF800000> : vector<4x8xf32>
    %22 = vector.multi_reduction <maximumf>, %21, %cst_12 [2] : vector<4x8x8xf32> to vector<4x8xf32>
    %23 = vector.shape_cast %22 : vector<4x8xf32> to vector<4x8x1xf32>
    %24 = vector.broadcast %23 : vector<4x8x1xf32> to vector<4x8x8xf32>
    %25 = arith.subf %21, %24 : vector<4x8x8xf32>
    %26 = math.exp %25 : vector<4x8x8xf32>
    %cst_13 = arith.constant dense<0.000000e+00> : vector<4x8xf32>
    %27 = vector.multi_reduction <add>, %26, %cst_13 [2] : vector<4x8x8xf32> to vector<4x8xf32>
    %28 = vector.shape_cast %27 : vector<4x8xf32> to vector<4x8x1xf32>
    %29 = arith.truncf %26 : vector<4x8x8xf32> to vector<4x8x8xbf16>
    %c0_14 = arith.constant 0 : index
    %c0_15 = arith.constant 0 : index
    %c0_16 = arith.constant 0 : index
    %30 = vector.load %arg22[%c0_14, %c0_15, %c0_16] : memref<4x8x8xbf16, #tpu.memory_space<vmem>>, vector<4x8x8xbf16>
    "tpu.trace_start"() <{level = 10 : i32, message = "hqk,hkd->hqd"}> : () -> ()
    %cst_17 = arith.constant dense<0.000000e+00> : vector<4x8x8xf32>
    %31 = tpu.matmul %29, %30, %cst_17 {dimension_numbers = #tpu.dot_dimension_numbers<[2], [1], [1], [2], [0, 0, 0, 1, 1, 2], [0], [0]>} : vector<4x8x8xbf16>, vector<4x8x8xbf16>, vector<4x8x8xf32> -> vector<4x8x8xf32>
    "tpu.trace_stop"() : () -> ()
    %32 = tpu.reciprocal %28 {approx = true} : vector<4x8x1xf32> -> vector<4x8x1xf32>
    %33 = vector.broadcast %32 : vector<4x8x1xf32> to vector<4x8x8xf32>
    %34 = arith.mulf %31, %33 : vector<4x8x8xf32>
    %35 = tpu.transpose %34, [1, 0, 2] : vector<4x8x8xf32> -> vector<8x4x8xf32>
    %36 = vector.shape_cast %35 : vector<8x4x8xf32> to vector<8x32xf32>
    %37 = arith.truncf %36 : vector<8x32xf32> to vector<8x32xbf16>
    %c0_18 = arith.constant 0 : index
    %c0_19 = arith.constant 0 : index
    %38 = vector.load %arg9[%c0_18, %c0_19] : memref<32x32xbf16, #tpu.memory_space<vmem>>, vector<32x32xbf16>
    %cst_20 = arith.constant dense<0.000000e+00> : vector<8x32xf32>
    %39 = tpu.matmul %37, %38, %cst_20 {dimension_numbers = #tpu.dot_dimension_numbers<[1], [0], [0], [1], [0, 0, 1, 1], [], []>} : vector<8x32xbf16>, vector<32x32xbf16>, vector<8x32xf32> -> vector<8x32xf32>
    %c0_21 = arith.constant 0 : index
    %c0_22 = arith.constant 0 : index
    %40 = vector.load %arg10[%c0_21, %c0_22] : memref<1x32xf32, #tpu.memory_space<vmem>>, vector<1x32xf32>
    %41 = vector.broadcast %40 : vector<1x32xf32> to vector<8x32xf32>
    %42 = arith.addf %39, %41 : vector<8x32xf32>
    %43 = arith.addf %7, %42 : vector<8x32xf32>
    %c0_23 = arith.constant 0 : index
    %c0_24 = arith.constant 0 : index
    %44 = vector.load %arg11[%c0_23, %c0_24] : memref<1x32xf32, #tpu.memory_space<vmem>>, vector<1x32xf32>
    %c0_25 = arith.constant 0 : index
    %c0_26 = arith.constant 0 : index
    %45 = vector.load %arg12[%c0_25, %c0_26] : memref<1x32xf32, #tpu.memory_space<vmem>>, vector<1x32xf32>
    %cst_27 = arith.constant dense<0.000000e+00> : vector<8xf32>
    %46 = vector.multi_reduction <add>, %43, %cst_27 [1] : vector<8x32xf32> to vector<8xf32>
    %47 = vector.shape_cast %46 : vector<8xf32> to vector<8x1xf32>
    %cst_28 = arith.constant 3.200000e+01 : f32
    %48 = vector.broadcast %cst_28 : f32 to vector<8x1xf32>
    %49 = arith.divf %47, %48 : vector<8x1xf32>
    %50 = vector.broadcast %49 : vector<8x1xf32> to vector<8x32xf32>
    %51 = arith.subf %43, %50 : vector<8x32xf32>
    %52 = arith.mulf %51, %51 : vector<8x32xf32>
    %cst_29 = arith.constant dense<0.000000e+00> : vector<8xf32>
    %53 = vector.multi_reduction <add>, %52, %cst_29 [1] : vector<8x32xf32> to vector<8xf32>
    %54 = vector.shape_cast %53 : vector<8xf32> to vector<8x1xf32>
    %cst_30 = arith.constant 3.200000e+01 : f32
    %55 = vector.broadcast %cst_30 : f32 to vector<8x1xf32>
    %56 = arith.divf %54, %55 : vector<8x1xf32>
    %cst_31 = arith.constant 9.99999974E-6 : f32
    %57 = vector.broadcast %cst_31 : f32 to vector<8x1xf32>
    %58 = arith.addf %56, %57 : vector<8x1xf32>
    %59 = math.rsqrt %58 : vector<8x1xf32>
    %60 = vector.broadcast %59 : vector<8x1xf32> to vector<8x32xf32>
    %61 = arith.mulf %51, %60 : vector<8x32xf32>
    %62 = vector.broadcast %44 : vector<1x32xf32> to vector<8x32xf32>
    %63 = arith.mulf %61, %62 : vector<8x32xf32>
    %64 = vector.broadcast %45 : vector<1x32xf32> to vector<8x32xf32>
    %65 = arith.addf %63, %64 : vector<8x32xf32>
    %66 = arith.truncf %65 : vector<8x32xf32> to vector<8x32xbf16>
    %c0_32 = arith.constant 0 : index
    %c0_33 = arith.constant 0 : index
    %67 = vector.load %arg13[%c0_32, %c0_33] : memref<32x64xbf16, #tpu.memory_space<vmem>>, vector<32x64xbf16>
    %cst_34 = arith.constant dense<0.000000e+00> : vector<8x64xf32>
    %68 = tpu.matmul %66, %67, %cst_34 {dimension_numbers = #tpu.dot_dimension_numbers<[1], [0], [0], [1], [0, 0, 1, 1], [], []>} : vector<8x32xbf16>, vector<32x64xbf16>, vector<8x64xf32> -> vector<8x64xf32>
    %c0_35 = arith.constant 0 : index
    %c0_36 = arith.constant 0 : index
    %69 = vector.load %arg14[%c0_35, %c0_36] : memref<1x64xf32, #tpu.memory_space<vmem>>, vector<1x64xf32>
    %70 = vector.broadcast %69 : vector<1x64xf32> to vector<8x64xf32>
    %71 = arith.addf %68, %70 : vector<8x64xf32>
    %cst_37 = arith.constant 0.000000e+00 : f32
    %72 = vector.broadcast %cst_37 : f32 to vector<8x64xf32>
    %73 = arith.maximumf %71, %72 : vector<8x64xf32>
    %74 = arith.truncf %73 : vector<8x64xf32> to vector<8x64xbf16>
    %c0_38 = arith.constant 0 : index
    %c0_39 = arith.constant 0 : index
    %75 = vector.load %arg15[%c0_38, %c0_39] : memref<64x32xbf16, #tpu.memory_space<vmem>>, vector<64x32xbf16>
    %cst_40 = arith.constant dense<0.000000e+00> : vector<8x32xf32>
    %76 = tpu.matmul %74, %75, %cst_40 {dimension_numbers = #tpu.dot_dimension_numbers<[1], [0], [0], [1], [0, 0, 1, 1], [], []>} : vector<8x64xbf16>, vector<64x32xbf16>, vector<8x32xf32> -> vector<8x32xf32>
    %c0_41 = arith.constant 0 : index
    %c0_42 = arith.constant 0 : index
    %77 = vector.load %arg16[%c0_41, %c0_42] : memref<1x32xf32, #tpu.memory_space<vmem>>, vector<1x32xf32>
    %78 = vector.broadcast %77 : vector<1x32xf32> to vector<8x32xf32>
    %79 = arith.addf %76, %78 : vector<8x32xf32>
    %80 = arith.addf %65, %79 : vector<8x32xf32>
    %c0_43 = arith.constant 0 : index
    %c0_44 = arith.constant 0 : index
    %81 = vector.load %arg17[%c0_43, %c0_44] : memref<1x32xf32, #tpu.memory_space<vmem>>, vector<1x32xf32>
    %c0_45 = arith.constant 0 : index
    %c0_46 = arith.constant 0 : index
    %82 = vector.load %arg18[%c0_45, %c0_46] : memref<1x32xf32, #tpu.memory_space<vmem>>, vector<1x32xf32>
    %cst_47 = arith.constant dense<0.000000e+00> : vector<8xf32>
    %83 = vector.multi_reduction <add>, %80, %cst_47 [1] : vector<8x32xf32> to vector<8xf32>
    %84 = vector.shape_cast %83 : vector<8xf32> to vector<8x1xf32>
    %cst_48 = arith.constant 3.200000e+01 : f32
    %85 = vector.broadcast %cst_48 : f32 to vector<8x1xf32>
    %86 = arith.divf %84, %85 : vector<8x1xf32>
    %87 = vector.broadcast %86 : vector<8x1xf32> to vector<8x32xf32>
    %88 = arith.subf %80, %87 : vector<8x32xf32>
    %89 = arith.mulf %88, %88 : vector<8x32xf32>
    %cst_49 = arith.constant dense<0.000000e+00> : vector<8xf32>
    %90 = vector.multi_reduction <add>, %89, %cst_49 [1] : vector<8x32xf32> to vector<8xf32>
    %91 = vector.shape_cast %90 : vector<8xf32> to vector<8x1xf32>
    %cst_50 = arith.constant 3.200000e+01 : f32
    %92 = vector.broadcast %cst_50 : f32 to vector<8x1xf32>
    %93 = arith.divf %91, %92 : vector<8x1xf32>
    %cst_51 = arith.constant 9.99999974E-6 : f32
    %94 = vector.broadcast %cst_51 : f32 to vector<8x1xf32>
    %95 = arith.addf %93, %94 : vector<8x1xf32>
    %96 = math.rsqrt %95 : vector<8x1xf32>
    %97 = vector.broadcast %96 : vector<8x1xf32> to vector<8x32xf32>
    %98 = arith.mulf %88, %97 : vector<8x32xf32>
    %99 = vector.broadcast %81 : vector<1x32xf32> to vector<8x32xf32>
    %100 = arith.mulf %98, %99 : vector<8x32xf32>
    %101 = vector.broadcast %82 : vector<1x32xf32> to vector<8x32xf32>
    %102 = arith.addf %100, %101 : vector<8x32xf32>
    %c0_52 = arith.constant 0 : index
    %c0_53 = arith.constant 0 : index
    %c0_54 = arith.constant 0 : index
    %103 = vector.load %arg19[%c0_52, %c0_53, %c0_54] : memref<1x8x32xf32, #tpu.memory_space<vmem>>, vector<1x8x32xf32>
    %104 = vector.shape_cast %103 : vector<1x8x32xf32> to vector<8x32xf32>
    %105 = vector.shape_cast %102 : vector<8x32xf32> to vector<1x8x32xf32>
    tpu.vector_store %arg19[%c0_52, %c0_53, %c0_54], %105 {strides = array<i32>} : memref<1x8x32xf32, #tpu.memory_space<vmem>>, vector<1x8x32xf32>,
    return
  }
  func.func @transform_0(%arg0: i32, %arg1: i32) -> (i32, i32, i32) {
    %c0_i32 = arith.constant 0 : i32
    %c0_i32_0 = arith.constant 0 : i32
    %c0_i32_1 = arith.constant 0 : i32
    return %arg0, %c0_i32, %c0_i32_0 : i32, i32, i32
  }
  func.func @transform_1(%arg0: i32, %arg1: i32) -> (i32, i32) {
    %c0_i32 = arith.constant 0 : i32
    %c0_i32_0 = arith.constant 0 : i32
    %c0_i32_1 = arith.constant 0 : i32
    return %c0_i32, %c0_i32_0 : i32, i32
  }
  func.func @transform_2(%arg0: i32, %arg1: i32) -> (i32, i32) {
    %c0_i32 = arith.constant 0 : i32
    %c0_i32_0 = arith.constant 0 : i32
    %c0_i32_1 = arith.constant 0 : i32
    return %c0_i32, %c0_i32_0 : i32, i32
  }
  func.func @transform_3(%arg0: i32, %arg1: i32) -> (i32, i32) {
    %c0_i32 = arith.constant 0 : i32
    %c0_i32_0 = arith.constant 0 : i32
    %c0_i32_1 = arith.constant 0 : i32
    return %c0_i32, %c0_i32_0 : i32, i32
  }
  func.func @transform_4(%arg0: i32, %arg1: i32) -> (i32, i32) {
    %c0_i32 = arith.constant 0 : i32
    %c0_i32_0 = arith.constant 0 : i32
    %c0_i32_1 = arith.constant 0 : i32
    return %c0_i32, %c0_i32_0 : i32, i32
  }
  func.func @transform_5(%arg0: i32, %arg1: i32) -> (i32, i32) {
    %c0_i32 = arith.constant 0 : i32
    %c0_i32_0 = arith.constant 0 : i32
    %c0_i32_1 = arith.constant 0 : i32
    return %c0_i32, %c0_i32_0 : i32, i32
  }
  func.func @transform_6(%arg0: i32, %arg1: i32) -> (i32, i32) {
    %c0_i32 = arith.constant 0 : i32
    %c0_i32_0 = arith.constant 0 : i32
    %c0_i32_1 = arith.constant 0 : i32
    return %c0_i32, %c0_i32_0 : i32, i32
  }
  func.func @transform_7(%arg0: i32, %arg1: i32) -> (i32, i32) {
    %c0_i32 = arith.constant 0 : i32
    %c0_i32_0 = arith.constant 0 : i32
    %c0_i32_1 = arith.constant 0 : i32
    return %c0_i32, %c0_i32_0 : i32, i32
  }
  func.func @transform_8(%arg0: i32, %arg1: i32) -> (i32, i32) {
    %c0_i32 = arith.constant 0 : i32
    %c0_i32_0 = arith.constant 0 : i32
    %c0_i32_1 = arith.constant 0 : i32
    return %c0_i32, %c0_i32_0 : i32, i32
  }
  func.func @transform_9(%arg0: i32, %arg1: i32) -> (i32, i32) {
    %c0_i32 = arith.constant 0 : i32
    %c0_i32_0 = arith.constant 0 : i32
    %c0_i32_1 = arith.constant 0 : i32
    return %c0_i32, %c0_i32_0 : i32, i32
  }
  func.func @transform_10(%arg0: i32, %arg1: i32) -> (i32, i32) {
    %c0_i32 = arith.constant 0 : i32
    %c0_i32_0 = arith.constant 0 : i32
    %c0_i32_1 = arith.constant 0 : i32
    return %c0_i32, %c0_i32_0 : i32, i32
  }
  func.func @transform_11(%arg0: i32, %arg1: i32) -> (i32, i32) {
    %c0_i32 = arith.constant 0 : i32
    %c0_i32_0 = arith.constant 0 : i32
    %c0_i32_1 = arith.constant 0 : i32
    return %c0_i32, %c0_i32_0 : i32, i32
  }
  func.func @transform_12(%arg0: i32, %arg1: i32) -> (i32, i32) {
    %c0_i32 = arith.constant 0 : i32
    %c0_i32_0 = arith.constant 0 : i32
    %c0_i32_1 = arith.constant 0 : i32
    return %c0_i32, %c0_i32_0 : i32, i32
  }
  func.func @transform_13(%arg0: i32, %arg1: i32) -> (i32, i32) {
    %c0_i32 = arith.constant 0 : i32
    %c0_i32_0 = arith.constant 0 : i32
    %c0_i32_1 = arith.constant 0 : i32
    return %c0_i32, %c0_i32_0 : i32, i32
  }
  func.func @transform_14(%arg0: i32, %arg1: i32) -> (i32, i32) {
    %c0_i32 = arith.constant 0 : i32
    %c0_i32_0 = arith.constant 0 : i32
    %c0_i32_1 = arith.constant 0 : i32
    return %c0_i32, %c0_i32_0 : i32, i32
  }
  func.func @transform_15(%arg0: i32, %arg1: i32) -> (i32, i32) {
    %c0_i32 = arith.constant 0 : i32
    %c0_i32_0 = arith.constant 0 : i32
    %c0_i32_1 = arith.constant 0 : i32
    return %c0_i32, %c0_i32_0 : i32, i32
  }
  func.func @transform_16(%arg0: i32, %arg1: i32) -> (i32, i32) {
    %c0_i32 = arith.constant 0 : i32
    %c0_i32_0 = arith.constant 0 : i32
    %c0_i32_1 = arith.constant 0 : i32
    return %c0_i32, %c0_i32_0 : i32, i32
  }
  func.func @transform_17(%arg0: i32, %arg1: i32) -> (i32, i32, i32) {
    %c0_i32 = arith.constant 0 : i32
    %c0_i32_0 = arith.constant 0 : i32
    return %arg0, %arg1, %c0_i32 : i32, i32, i32
  }
}

</mosaic_0001>

<bundles_post_ra>
// kernel: tpu_custom_call.1
= control target key start
LH: loop header
LB: loop body
LE: loop exit
PB: predicated region body
PF: predicated region fallthrough
CT: control target
= control target key end

     0   :  { %s3476_s0 = inlined_call_operand.vmem [shape: f32[2,8,32], index: 0, kind: input, shape index: {}]   ;;  %s3477_s1 = inlined_call_operand.vmem [shape: bf16[32,32], index: 1, kind: input, shape index: {}]   ;;  %s3478_s2 = inlined_call_operand.vmem [shape: f32[1,32], index: 2, kind: input, shape index: {}]   ;;  %s3479_s3 = inlined_call_operand.vmem [shape: bf16[32,32], index: 3, kind: input, shape index: {}]   ;;  %s3480_s4 = inlined_call_operand.vmem [shape: f32[1,32], index: 4, kind: input, shape index: {}]   ;;  %s3481_s5 = inlined_call_operand.hbm [shape: bf16[32,32], index: 5, kind: input, shape index: {}]   ;;  %s3482_s6 = inlined_call_operand.hbm [shape: f32[1,32], index: 6, kind: input, shape index: {}]   ;;  %s3483_s7 = inlined_call_operand.hbm [shape: bf16[32,32], index: 7, kind: input, shape index: {}]   ;;  %s3484_s8 = inlined_call_operand.hbm [shape: f32[1,32], index: 8, kind: input, shape index: {}]   ;;  %s3485_s9 = inlined_call_operand.hbm [shape: f32[1,32], index: 9, kind: input, shape index: {}]   ;;  %s3486_s10 = inlined_call_operand.vmem [shape: f32[1,32], index: 10, kind: input, shape index: {}]   ;;  %s3487_s11 = inlined_call_operand.vmem [shape: bf16[32,64], index: 11, kind: input, shape index: {}]   ;;  %s3488_s12 = inlined_call_operand.vmem [shape: f32[1,64], index: 12, kind: input, shape index: {}]   ;;  %s3489_s13 = inlined_call_operand.vmem [shape: bf16[64,32], index: 13, kind: input, shape index: {}]   ;;  %s3490_s14 = inlined_call_operand.vmem [shape: f32[1,32], index: 14, kind: input, shape index: {}]   ;;  %s3491_s15 = inlined_call_operand.vmem [shape: f32[1,32], index: 15, kind: input, shape index: {}]   ;;  %s3492_s16 = inlined_call_operand.vmem [shape: f32[1,32], index: 16, kind: input, shape index: {}]   ;;  %s3493_s17 = inlined_call_operand.hbm [shape: f32[2,8,32], index: 17, kind: output, shape index: {}]  }
   0x1   :  { %3509 = sst [smem:[#allocation27_spill]] %s3476_s0 }
   0x2   :  { %3510 = sst [smem:[#allocation28_spill]] %s3477_s1 }
   0x3   :  { %3511 = sst [smem:[#allocation29_spill]] %s3482_s6 }
   0x4   :  { %3512 = sst [smem:[#allocation30_spill]] %s3484_s8 }
   0x5   :  { %3513 = sst [smem:[#allocation31_spill]] %s3491_s15 }
   0x6   :  { %3514 = sst [smem:[#allocation32_spill]] %s3492_s16 }
   0x7   :  { %3515 = sst [smem:[#allocation33_spill]] %s3493_s17 }
   0x8   :  { %22 = vsyncpa [#allocation6], 0 }
   0x9   :  { %23 = vsyncpa [#allocation9], 0 }
   0xa   :  { %24 = vsyncpa [#allocation12], 0 }
   0xb   :  { %25 = vsyncpa [#allocation7], 0 }
   0xc   :  { %27 = vsyncpa [#allocation7 + $0x1], 0  ;;  %s2991_s24 = smov 0   ;;  %s2993_s25 = smov 0  }
   0xd   :  { %s2995_s26 = smov 0   ;;  %s2997_s27 = smov 0  }
   0xe   :  { %s2999_s28 = smov 0   ;;  %s3001_s29 = smov 0  }
   0xf LB: > { %3516 = sst [smem:[#allocation19_spill]] %s2861_s24  ;;  %s2296_s0 = sadd.s32 4294967295, %s2881_s29   ;;  %s2881_s29 = sphi %s3001_s29, %s33_s29   ;;  %s2877_s28 = sphi %s2999_s28, %s3548_s28   ;;  %s2873_s27 = sphi %s2997_s27, %s3547_s27   ;;  %s2869_s26 = sphi %s2995_s26, %s3546_s26   ;;  %s2865_s25 = sphi %s2993_s25, %s3550_s25   ;;  %s2861_s24 = sphi %s2991_s24, %s3549_s24  }
  0x10   : > { %3517 = sst [smem:[#allocation20_spill]] %s2869_s26  ;;  %s2297_s30 = sadd.s32 4294967294, %s2881_s29  }
  0x11   : > { %3518 = sst [smem:[#allocation21_spill]] %s2877_s28  ;;  %s45_s18 = sadd.s32 1, %s2877_s28 }
  0x12   : > { %3519 = sst [smem:[#allocation22_spill]] %s2881_s29  ;;  %s416_s19 = sadd.s32 1, %s2869_s26 }
  0x13   : > { %p47_p0 = scmp.ge.s32.totalorder %s45_s18, 2  ;;  %p426_p1 = scmp.ne.s32.totalorder %s2869_s26, %s2865_s25 }
  0x14   : > { %p427_p2 = scmp.eq.s32.totalorder %s2296_s0, 1  ;;  %p432_p3 = scmp.ne.s32.totalorder %s2865_s25, %s2861_s24 }
  0x15   : > { %s3552_s18 = smov (%p47_p0, %s45_s18), 0  ;;  %p433_p5 = scmp.eq.s32.totalorder %s2297_s30, 1 }
  0x16   : > { %3520 = sst [smem:[#allocation23_spill]] %s3552_s18  ;;  %p3031_p4 = por %p427_p2, %p426_p1 }
  0x17   : > { %s411_s20 = ssub.s32 %s2877_s28, %s3552_s18  ;;  %p2298_p6 = scmp.ge.s32.totalorder %s2881_s29, 1 }
  0x18   : > { %s3521_s1 = scalar_select %p3031_p4, 1, 0 }
  0x19   : > { %p414_p7 = scmp.eq.s32.totalorder %s411_s20, 0  ;;  %p3038_p8 = por %p433_p5, %p432_p3 }
  0x1a   : > { %3522 = sst [smem:[#allocation24_spill]] %s3521_s1  ;;  %p440_p9 = scmp.lt.s32.totalorder %s2881_s29, 3 }
  0x1b   : > { %s3523_s21 = scalar_select %p3038_p8, 1, 0 }
  0x1c   : > { %s3044_s22 = scalar_select %p414_p7, %s2869_s26, %s416_s19  }
  0x1d   : > { %3524 = sst [smem:[#allocation25_spill]] %s3523_s21  ;;  %p3046_p10 = pnand %p2298_p6, %p440_p9 }
  0x1e   : > { %3525 = sst [smem:[#allocation26_spill]] %s3044_s22  ;;  %p3050_p11 = scmp.eq.s32.totalorder %s2296_s0, 0 }
  0x1f   : > { %s3526_s23 = scalar_select %p3046_p10, 1, 0 }
  0x20   : > { %s3527_s24 = scalar_select %p3050_p11, 1, 0 }
  0x21   : > { %p2521_p12 = pneg %p3046_p10  ;;  %s2883_s30 = smov [#allocation8]  }
  0x22   : > { %s478_s20 = sshll.u32 %s2883_s30, 4  ;;  %s2884_s18 = smov [#allocation11]   ;;  %s479_s20 = int_to_ptr.vmem [resolvable:$true] %s478_s20 }
  0x23   : > { %s502_s28 = sshll.u32 %s2884_s18, 4  ;;  %p3058_p13 = pnand %p3050_p11, %p2521_p12  ;;  %s3062_s28 = int_to_ptr.vmem [resolvable:$true] %s502_s28 }
  0x24   : > { %s3529_s6 = sld [smem:[#allocation29_spill]] }
  0x25   : > { %p3072_p1 = pneg %p3058_p13 }
  0x2a   : > { %s2651_s26 = scalar_lea.hbm %s3529_s6, 16 }
  0x2b   : > { %p2652_p0 = scmp.ne.s32.totalorder %s3529_s6, %s2651_s26  ;;  %p2658_p5 = scmp.lt.u32.totalorder %s2651_s26, %s3529_s6 }
  0x2d   : > { %p2654_p2 = pnand %p3072_p1, %p2652_p0 }
  0x2f   : > { %p2655_p3 = pneg %p2654_p2 }
  0x31   : > { %p2660_p6 = pnand %p2658_p5, %p2655_p3 }
  0x33   : > { %2663 = shalt.err (!%p2660_p6)
}
  0x34   : > { %s2664_s22 = scalar_lea.vmem %s479_s20, 16  ;;  %s2671_s29 = scalar_lea.vmem %s479_s20, 32 }
  0x35   : > { %p2665_p7 = scmp.ne.s32.totalorder %s479_s20, %s2664_s22  ;;  %p2672_p8 = scmp.lt.s32.totalorder %s479_s20, %s479_s20 }
  0x36   : > { %p2673_p4 = scmp.lt.s32.totalorder %s2671_s29, %s2664_s22 }
  0x37   : > { %p2667_p9 = pnand %p2665_p7, %p3072_p1 }
  0x38   : > { %p2674_p11 = por %p2673_p4, %p2672_p8 }
  0x39   : > { %p2668_p12 = pneg %p2667_p9 }
  0x3b   : > { %p2675_p10 = pnand %p2674_p11, %p2668_p12 }
  0x3d   : > { %2678 = shalt.err (!%p2675_p10)
}
  0x3e   : > { %2527 = dma.hbm_to_vmem [thread:$0]  (!%p3058_p13), %s3529_s6, 16, %s479_s20, [#allocation9]  }
  0x3f   : > { %s3531_s8 = sld [smem:[#allocation30_spill]] }
  0x45   : > { %s2679_s18 = scalar_lea.hbm %s3531_s8, 16 }
  0x46   : > { %p2680_p0 = scmp.ne.s32.totalorder %s3531_s8, %s2679_s18  ;;  %p2686_p8 = scmp.lt.u32.totalorder %s2679_s18, %s3531_s8 }
  0x48   : > { %p2682_p2 = pnand %p2680_p0, %p3072_p1 }
  0x4a   : > { %p2683_p4 = pneg %p2682_p2 }
  0x4c   : > { %p2688_p10 = pnand %p2686_p8, %p2683_p4 }
  0x4e   : > { %2691 = shalt.err (!%p2688_p10)
}
  0x4f   : > { %s2692_s20 = scalar_lea.vmem %s3062_s28, 16  ;;  %s2699_s15 = scalar_lea.vmem %s3062_s28, 32 }
  0x50   : > { %p2693_p11 = scmp.ne.s32.totalorder %s3062_s28, %s2692_s20  ;;  %p2700_p6 = scmp.lt.s32.totalorder %s3062_s28, %s3062_s28 }
  0x51   : > { %p2701_p7 = scmp.lt.s32.totalorder %s2699_s15, %s2692_s20 }
  0x52   : > { %p2695_p3 = pnand %p2693_p11, %p3072_p1 }
  0x53   : > { %p2702_p9 = por %p2701_p7, %p2700_p6 }
  0x54   : > { %p2696_p5 = pneg %p2695_p3 }
  0x56   : > { %p2703_p12 = pnand %p2702_p9, %p2696_p5 }
  0x58   : > { %2706 = shalt.err (!%p2703_p12)
}
  0x59   : > { %2533 = dma.hbm_to_vmem [thread:$0]  (!%p3058_p13), %s3531_s8, 16, %s3062_s28, [#allocation12]  }
  0x5a   : > { %s2885_s0 = smov [#allocation5]   ;;  %s2707_s22 = scalar_lea.hbm %s3481_s5, 256 }
  0x5b   : > { %s464_s17 = sshll.u32 %s2885_s0, 4  ;;  %p2708_p0 = scmp.ne.s32.totalorder %s3481_s5, %s2707_s22  ;;  %s465_s17 = int_to_ptr.vmem [resolvable:$true] %s464_s17 }
  0x5c   : > { %p2714_p8 = scmp.lt.u32.totalorder %s2707_s22, %s3481_s5 }
  0x5d   : > { %p2710_p2 = pnand %p2708_p0, %p3072_p1 }
  0x5f   : > { %p2711_p4 = pneg %p2710_p2 }
  0x61   : > { %p2716_p10 = pnand %p2714_p8, %p2711_p4 }
  0x63   : > { %2719 = shalt.err (!%p2716_p10)
}
  0x64   : > { %s2720_s28 = scalar_lea.vmem %s465_s17, 256  ;;  %p2728_p6 = scmp.lt.s32.totalorder %s465_s17, %s465_s17 }
  0x65   : > { %p2721_p11 = scmp.ne.s32.totalorder %s465_s17, %s2720_s28  ;;  %p2729_p7 = scmp.lt.s32.totalorder %s2720_s28, %s2720_s28 }
  0x67   : > { %p2723_p3 = pnand %p2721_p11, %p3072_p1  ;;  %p2730_p9 = por %p2729_p7, %p2728_p6 }
  0x69   : > { %p2724_p5 = pneg %p2723_p3 }
  0x6b   : > { %p2731_p12 = pnand %p2730_p9, %p2724_p5 }
  0x6d   : > { %2734 = shalt.err (!%p2731_p12)
}
  0x6e   : > { %s2886_s16 = smov 64   ;;  %s2887_s21 = smov 4  }
  0x6f   : > { %2524 = dma.hbm_to_vmem [thread:$0]  (!%p3058_p13), %s3481_s5, 256, %s465_s17, [#allocation6], %s2886_s16, %s2886_s16, %s2887_s21  }
  0x70   : > { %s2888_s26 = smov [#allocation10]   ;;  %s2889_s22 = smov [#allocation13]  }
  0x71   : > { %s488_s18 = sshll.u32 %s2888_s26, 4  ;;  %s513_s29 = sshll.u32 %s2889_s22, 4  ;;  %s489_s18 = int_to_ptr.vmem [resolvable:$true] %s488_s18  ;;  %s3130_s29 = int_to_ptr.vmem [resolvable:$true] %s513_s29 }
  0x72   : > { %s2735_s28 = scalar_lea.hbm %s3483_s7, 256 }
  0x73   : > { %p2736_p0 = scmp.ne.s32.totalorder %s3483_s7, %s2735_s28  ;;  %p2742_p8 = scmp.lt.u32.totalorder %s2735_s28, %s3483_s7 }
  0x75   : > { %p2738_p2 = pnand %p2736_p0, %p3072_p1 }
  0x77   : > { %p2739_p4 = pneg %p2738_p2 }
  0x79   : > { %p2744_p10 = pnand %p2742_p8, %p2739_p4 }
  0x7b   : > { %2747 = shalt.err (!%p2744_p10)
}
  0x7c   : > { %s2748_s0 = scalar_lea.vmem %s489_s18, 256  ;;  %p2756_p6 = scmp.lt.s32.totalorder %s489_s18, %s489_s18 }
  0x7d   : > { %p2749_p11 = scmp.ne.s32.totalorder %s489_s18, %s2748_s0  ;;  %p2757_p7 = scmp.lt.s32.totalorder %s2748_s0, %s2748_s0 }
  0x7f   : > { %p2751_p3 = pnand %p2749_p11, %p3072_p1  ;;  %p2758_p9 = por %p2757_p7, %p2756_p6 }
  0x81   : > { %p2752_p5 = pneg %p2751_p3 }
  0x83   : > { %p2759_p12 = pnand %p2758_p9, %p2752_p5 }
  0x85   : > { %2762 = shalt.err (!%p2759_p12)
}
  0x86   : > { %2530 = dma.hbm_to_vmem [thread:$0]  (!%p3058_p13), %s3483_s7, 256, %s489_s18, [#allocation9], %s2886_s16, %s2886_s16, %s2887_s21  }
  0x87   : > { %s2763_s20 = scalar_lea.hbm %s3485_s9, 16 }
  0x88   : > { %p2764_p0 = scmp.ne.s32.totalorder %s3485_s9, %s2763_s20  ;;  %p2770_p8 = scmp.lt.u32.totalorder %s2763_s20, %s3485_s9 }
  0x8a   : > { %p2766_p2 = pnand %p2764_p0, %p3072_p1 }
  0x8c   : > { %p2767_p4 = pneg %p2766_p2 }
  0x8e   : > { %p2772_p10 = pnand %p2770_p8, %p2767_p4 }
  0x90   : > { %2775 = shalt.err (!%p2772_p10)
}
  0x91   : > { %s2776_s16 = scalar_lea.vmem %s3130_s29, 16  ;;  %s2783_s21 = scalar_lea.vmem %s3130_s29, 32 }
  0x92   : > { %p2777_p11 = scmp.ne.s32.totalorder %s3130_s29, %s2776_s16  ;;  %p2784_p6 = scmp.lt.s32.totalorder %s3130_s29, %s3130_s29 }
  0x93   : > { %p2785_p7 = scmp.lt.s32.totalorder %s2783_s21, %s2776_s16 }
  0x94   : > { %p2779_p3 = pnand %p2777_p11, %p3072_p1 }
  0x95   : > { %p2786_p9 = por %p2785_p7, %p2784_p6 }
  0x96   : > { %p2780_p5 = pneg %p2779_p3 }
  0x98   : > { %p2787_p12 = pnand %p2786_p9, %p2780_p5 }
  0x9a   : > { %2790 = shalt.err (!%p2787_p12)
}
  0x9b   : > { %2536 = dma.hbm_to_vmem [thread:$0]  (!%p3058_p13), %s3485_s9, 16, %s3130_s29, [#allocation12]  }
  0x9c   : > { %p3532_p0 = scmp.ne.s32.totalorder %s3526_s23, 0 }
  0x9d   : > { %p3533_p1 = scmp.ne.s32.totalorder (!%p3532_p0), %s3527_s24, 0 }
  0x9e   : > { %554 = sbr.rel (%p3532_p0) target bundleno = 2576 (0xa10), region = 88 }
  0xa5   : > { %2844 = dma.done.wait (%p3533_p1), [#allocation6], 256  }
  0xa6   : > { %2846 = vsyncadd (%p3533_p1), [#allocation6], 4294967040 }
  0xa7   : > { %2848 = dma.done.wait (%p3533_p1), [#allocation9], 272  }
  0xa8   : > { %2850 = vsyncadd (%p3533_p1), [#allocation9], 4294967024 }
  0xa9   : > { %2852 = dma.done.wait (%p3533_p1), [#allocation12], 32  }
  0xaa   : > { %2854 = vsyncadd (%p3533_p1), [#allocation12], 4294967264  ;;  %p621_p13 = scmp.lt.s32.totalorder %s2873_s27, 1  ;;  %v2890_v0 = vmov 0.0   ;;  %vm2891_vm0 = vmmov 0   ;;  %s3534_s29 = sld [smem:[#allocation27_spill]]  ;;  %v779_v31 = vlaneseq }
  0xab   : > { %2399 = vmatprep.subr.bf16.mxu0 %v2890_v0  ;;  %2403 = vmatprep.mubr.msk.bf16.mxu0 %vm2891_vm0, %v2890_v0  ;;  %v2617_v1 = vld [vmem:[%s3479_s3] sm:$0xff]   ;;  %v2618_v2 = vld [vmem:[%s3479_s3 + $0x8] sm:$0xff]   ;;  %vm632_vm1 = vcmask 257024   ;;  %vm657_vm2 = vcmask 261120   ;;  %s3535_s6 = sld [smem:[#allocation28_spill]]  ;;  %s2892_s0 = smov 104  }
  0xac   : > { %s622_s23 = scalar_select %p621_p13, %s2873_s27, 1  ;;  %2407 = vmatprep.subr.bf16.mxu1 %v2890_v0  ;;  %2411 = vmatprep.mubr.msk.bf16.mxu1 %vm2891_vm0, %v2890_v0  ;;  %v2621_v6 = vld [vmem:[#allocation5] sm:$0xff]   ;;  %v2622_v9 = vld [vmem:[#allocation5 + $0x8] sm:$0xff]   ;;  %v2313_v10 = vld [vmem:[%s3480_s4] ss:$0 sm:$0xff]  ;;  %v780_v35 = vshrl.u32 %v779_v31, 7 }
  0xad   : > { %2400 = vmatpush3.bf16.msra.mxu0 %v2617_v1  ;;  %2408 = vmatpush3.bf16.msra.mxu1 %v2621_v6  ;;  %v2325_v16 = vld [vmem:[%s3478_s2] ss:$0 sm:$0xff]  ;;  %s2894_s24 = smov 112   ;;  %v2317_v23 = vld [vmem:[#allocation8] ss:$0 sm:$0xff]  ;;  %vm914_vm3 = vcmask 60416  }
  0xae   : > { %s2312_s19 = sshll.u32 %s622_s23, 3  ;;  %2401 = vmatprep.subr.bf16.mxu0 %v2890_v0  ;;  %2409 = vmatprep.subr.bf16.mxu1 %v2890_v0  ;;  %s2893_s23 = smov 120   ;;  %v2895_v29 = vmov 1983009808   ;;  %v2896_v32 = vmov 1934713408  }
  0xaf   : > { %v777_v30 = vunpack.c.l.s4 %v2895_v29  ;;  %v809_v33 = vunpack.c.l.s4 %v2896_v32  ;;  %vm1303_vm4 = vcmask 64512   ;;  %vm1535_vm5 = vcmask 1043456   ;;  %s2899_s1 = smov 24   ;;  %s618_s22 = sand.u32 1, %s2865_s25  }
  0xb0   : > { %s624_s8 = scalar_lea.vmem %s3534_s29, %s2312_s19  ;;  %s2897_s29 = smov 16   ;;  %vm1874_vm6 = vcmask 130048   ;;  %vm1876_vm7 = vcmask 195584   ;;  %vm2084_vm8 = vcmask 523264  }
  0xb1   : > { %v3205_v3 = vld [vmem:[%s624_s8] sm:$0xff]  ;;  %2402 = vmatpush3.bf16.msra.mxu0 %v2618_v2  ;;  %v2620_v7 = vld [vmem:[%s3535_s6 + $0x8] sm:$0xff]   ;;  %2410 = vmatpush3.bf16.msra.mxu1 %v2622_v9  ;;  %v778_v34 = vunpack.c.0.s8 %v777_v30  ;;  %v810_v38 = vunpack.c.0.s8 %v809_v33  ;;  %s2898_s8 = smov 8   ;;  %s2311_s20 = sshll.u32 %s618_s22, 3 }
  0xb2   : > { %v631_v4 = vpack.c.bf16 %v3205_v3, %v3205_v3  ;;  %v2619_v5 = vld [vmem:[%s3535_s6] sm:$0xff]   ;;  %2415 = vmatprep.subr.bf16.mxu0 %v2890_v0  ;;  %2423 = vmatprep.subr.bf16.mxu1 %v2890_v0  ;;  %s3536_s15 = sld [smem:[#allocation24_spill]]  ;;  %s3537_s16 = sld [smem:[#allocation31_spill]] }
  0xb3   : > { %v3246_v39 = vsub.s32 %v778_v34, %v780_v35  ;;  %v3248_v45 = vsub.s32 %v810_v38, %v780_v35  ;;  %s620_s19 = scalar_lea.vmem [#allocation14], %s2311_s20  ;;  %s2160_s26 = scalar_lea.sflag [#allocation7], %s618_s22 }
  0xb4   : > { %633 = vst.msk [vmem:[#allocation2] sm:$0xf] %vm632_vm1, %v631_v4  ;;  %2404 = vmatmul.mubr.msk.bf16.vlgmr.msra.gmra.mrb[0].mxu0 %vm657_vm2, %v631_v4  ;;  %2412 = vmatmul.mubr.msk.bf16.vlgmr.msra.gmra.mrb[0].mxu1 %vm657_vm2, %v631_v4  ;;  %s2174_s30 = sshll.u32 %s620_s19, 4  ;;  %s3430_s30 = int_to_ptr.vmem [resolvable:$true] %s2174_s30 }
  0xb5   : > { %2416 = vmatpush3.bf16.msra.mxu0 %v2619_v5  ;;  %2419 = vmatprep.mubr.msk.bf16.mxu0 %vm2891_vm0, %v2890_v0  ;;  %s2791_s28 = scalar_lea.vmem %s3430_s30, 128 }
  0xb6   : > { %2417 = vmatprep.subr.bf16.mxu0 %v2890_v0  ;;  %2425 = vmatprep.mubr.msk.bf16.mxu1 %vm2891_vm0, %v2890_v0  ;;  %p2792_p2 = scmp.ne.s32.totalorder %s3430_s30, %s2791_s28 }
  0xb8   : > { %p3540_p4 = scmp.ne.s32.totalorder %s3536_s15, 0 }
  0xb9   : > { %2418 = vmatpush3.bf16.msra.mxu0 %v2620_v7 }
  0xba   : > { %2429 = vmatprep.subr.bf16.mxu0 %v2890_v0  ;;  %p2793_p8 = pnand %p2792_p2, %p3540_p4 }
  0xbb   : > { %v1080_v8 = vld [vmem:[#allocation2] sm:$0xf] }
  0xbc   : > { %2420 = vmatmul.mubr.msk.bf16.vlgmr.msra.gmra.mrb[4].mxu0 %vm657_vm2, %v1080_v8  ;;  %p2794_p10 = pneg %p2793_p8 }
  0xbd   : > { %2431 = vmatprep.mubr.msk.bf16.mxu0 %vm2891_vm0, %v2890_v0 }
 0x187   : > { %v695_v11 = vpop.f32.mrb[0].mxu0  ;;  %v758_v24 = vpop.f32.mrb[0].mxu1 }
 0x188   : > { %v696_v12 = vadd.f32 %v2313_v10, %v695_v11  ;;  %v2405_v13 = vpop.f32.mrb[1].mxu0  ;;  %v3241_v25 = vadd.f32 %v2317_v23, %v758_v24  ;;  %v2413_v26 = vpop.f32.mrb[1].mxu1 }
 0x189   : > { %v698_v14 = vpop.f32.mrb[2].mxu0  ;;  %v761_v27 = vpop.f32.mrb[2].mxu1 }
 0x18a   : > { %771 = vrot.lane.b32.xlu1 %v696_v12, %s2892_s0  ;;  %765 = vrot.lane.b32.xlu0 %v696_v12, %s2893_s23  ;;  %v2406_v15 = vpop.f32.mrb[3].mxu0  ;;  %v2414_v28 = vpop.f32.mrb[3].mxu1 }
 0x18e   : > { %768 = vrot.lane.b32.xlu0 %v696_v12, %s2894_s24 }
 0x18f   : > { %v1142_v17 = vpop.f32.mrb[4].mxu0 }
 0x190   : > { %v1143_v18 = vadd.f32 %v2325_v16, %v1142_v17  ;;  %v2421_v19 = vpop.f32.mrb[5].mxu0 }
 0x191   : > { %v1145_v20 = vpop.f32.mrb[6].mxu0 }
 0x192   : > { %v3236_v21 = vmul.f32 0.35355338, %v1143_v18  ;;  %v2422_v22 = vpop.f32.mrb[7].mxu0 }
 0x194   : > { %1153 = vrot.lane.b32.xlu0 %v3236_v21, %s2894_s24  ;;  %1150 = vrot.lane.b32.xlu1 %v3236_v21, %s2893_s23 }
 0x198   : > { %1156 = vrot.lane.b32.xlu1 %v3236_v21, %s2892_s0  ;;  %920 = vrot.lane.b32.xlu0 %v3241_v25, %s2893_s23  ;;  %s2360_s23 = sshll.u32 %s2873_s27, 7  ;;  %s2900_s27 = smov [#allocation14]  }
 0x199   : > { %s2795_s20 = sshll.u32 %s2900_s27, 4  ;;  %s2796_s20 = int_to_ptr.vmem [resolvable:$false] %s2795_s20 }
 0x19a   : > { %s2797_s17 = scalar_lea.vmem %s2796_s20, 256  ;;  %p2798_p11 = scmp.lt.s32.totalorder %s3430_s30, %s2796_s20 }
 0x19b   : > { %p2799_p3 = scmp.lt.s32.totalorder %s2797_s17, %s2791_s28 }
 0x19c   : > { %923 = vrot.lane.b32.xlu1 %v3241_v25, %s2894_s24  ;;  %926 = vrot.lane.b32.xlu0 %v3241_v25, %s2892_s0  ;;  %s3538_s0 = sld [smem:[#allocation32_spill]] }
 0x19d   : > { %p2800_p5 = por %p2799_p3, %p2798_p11 }
 0x19f   : > { %p2801_p6 = pnand %p2800_p5, %p2794_p10 }
 0x1fc   : > { %v772_v36 = vpop.permute.xlu1 %771  ;;  %v766_v37 = vpop.permute.xlu0 %765 }
 0x1fd   : > { %v790_v40 = vcombine.low %v766_v37, %v772_v36  ;;  %v791_v41 = vcombine.high %v766_v37, %v772_v36 }
 0x1ff   : > { %v798_v46 = vrot.slane %v790_v40, %v3246_v39  ;;  %v805_v47 = vrot.slane %v791_v41, %v3246_v39 }
 0x200   : > { %v769_v42 = vpop.permute.xlu0 %768 }
 0x201   : > { %v774_v43 = vcombine.low %v696_v12, %v769_v42  ;;  %v775_v44 = vcombine.high %v696_v12, %v769_v42 }
 0x203   : > { %v782_v48 = vrot.slane %v774_v43, %v3246_v39  ;;  %v789_v49 = vrot.slane %v775_v44, %v3246_v39 }
 0x205   : > { %v806_v50 = vcombine.low %v782_v48, %v798_v46  ;;  %v807_v51 = vcombine.high %v782_v48, %v798_v46  ;;  %v822_v52 = vcombine.low %v789_v49, %v805_v47  ;;  %v823_v53 = vcombine.high %v789_v49, %v805_v47 }
 0x206   : > { %v1151_v54 = vpop.permute.xlu1 %1150  ;;  %v1154_v59 = vpop.permute.xlu0 %1153 }
 0x207   : > { %v814_v55 = vrot.slane %v806_v50, %v3248_v45  ;;  %v821_v56 = vrot.slane %v807_v51, %v3248_v45  ;;  %v830_v57 = vrot.slane %v822_v52, %v3248_v45  ;;  %v837_v58 = vrot.slane %v823_v53, %v3248_v45 }
 0x208   : > { %v1159_v1 = vcombine.low %v3236_v21, %v1154_v59  ;;  %v1160_v2 = vcombine.high %v3236_v21, %v1154_v59 }
 0x209   : > { %v842_v60 = vcombine.low %v814_v55, %v821_v56  ;;  %v2321_v61 = vcombine.high %v814_v55, %v821_v56  ;;  %v858_v62 = vcombine.low %v830_v57, %v837_v58  ;;  %v2322_v63 = vcombine.high %v830_v57, %v837_v58 }
 0x20a   : > { %v1157_v4 = vpop.permute.xlu1 %1156  ;;  %v1167_v15 = vrot.slane %v1159_v1, %v3246_v39  ;;  %v1174_v16 = vrot.slane %v1160_v2, %v3246_v39 }
 0x20b   : > { %v849_v5 = vrot.slane %v842_v60, %v3246_v39  ;;  %v857_v6 = vrot.slane %v2321_v61, %v3246_v39  ;;  %v865_v7 = vrot.slane %v858_v62, %v3246_v39  ;;  %v873_v8 = vrot.slane %v2322_v63, %v3246_v39 }
 0x20c   : > { %v1175_v9 = vcombine.low %v1151_v54, %v1157_v4  ;;  %v1176_v10 = vcombine.high %v1151_v54, %v1157_v4 }
 0x20d   : > { %v874_v11 = vcombine.low %v849_v5, %v857_v6  ;;  %v875_v12 = vcombine.high %v849_v5, %v857_v6  ;;  %v890_v13 = vcombine.low %v865_v7, %v873_v8  ;;  %v891_v14 = vcombine.high %v865_v7, %v873_v8 }
 0x20e   : > { %v1183_v17 = vrot.slane %v1175_v9, %v3246_v39  ;;  %v1190_v18 = vrot.slane %v1176_v10, %v3246_v39 }
 0x20f   : > { %v882_v19 = vrot.slane %v874_v11, %v3248_v45  ;;  %v889_v20 = vrot.slane %v875_v12, %v3248_v45  ;;  %v898_v21 = vrot.slane %v890_v13, %v3248_v45  ;;  %v905_v22 = vrot.slane %v891_v14, %v3248_v45  ;;  %v921_v12 = vpop.permute.xlu0 %920  ;;  %v924_v13 = vpop.permute.xlu1 %923 }
 0x210   : > { %v1191_v23 = vcombine.low %v1167_v15, %v1183_v17  ;;  %v1192_v24 = vcombine.high %v1167_v15, %v1183_v17  ;;  %v1207_v26 = vcombine.low %v1174_v16, %v1190_v18  ;;  %v1208_v27 = vcombine.high %v1174_v16, %v1190_v18 }
 0x211   : > { %v906_v28 = vcombine.low %v882_v19, %v898_v21  ;;  %v907_v29 = vcombine.high %v882_v19, %v898_v21  ;;  %v908_v30 = vcombine.low %v889_v20, %v905_v22  ;;  %v909_v31 = vcombine.high %v889_v20, %v905_v22 }
 0x212   : > { %v1199_v32 = vrot.slane %v1191_v23, %v3248_v45  ;;  %v1206_v33 = vrot.slane %v1192_v24, %v3248_v45  ;;  %v1215_v34 = vrot.slane %v1207_v26, %v3248_v45  ;;  %v1222_v35 = vrot.slane %v1208_v27, %v3248_v45 }
 0x213   : > { %v910_v36 = vpack.c.bf16 %v906_v28, %v906_v28  ;;  %v911_v37 = vpack.c.bf16 %v907_v29, %v907_v29  ;;  %v912_v38 = vpack.c.bf16 %v908_v30, %v908_v30  ;;  %v913_v40 = vpack.c.bf16 %v909_v31, %v909_v31  ;;  %v927_v16 = vpop.permute.xlu0 %926 }
 0x214   : > { %v1227_v41 = vcombine.low %v1199_v32, %v1206_v33  ;;  %v2329_v42 = vcombine.high %v1199_v32, %v1206_v33  ;;  %v1243_v43 = vcombine.low %v1215_v34, %v1222_v35  ;;  %v2330_v44 = vcombine.high %v1215_v34, %v1222_v35 }
 0x215   : > { %915 = vst.msk [vmem:[#allocation3] sm:$0xf] %vm914_vm3, %v910_v36  ;;  %916 = vst.msk [vmem:[#allocation3 + $0x4] sm:$0xf] %vm914_vm3, %v911_v37  ;;  %v929_v14 = vcombine.low %v3241_v25, %v924_v13  ;;  %v930_v15 = vcombine.high %v3241_v25, %v924_v13  ;;  %v945_v17 = vcombine.low %v921_v12, %v927_v16 }
 0x216   : > { %917 = vst.msk [vmem:[#allocation3 + $0x8] sm:$0xf] %vm914_vm3, %v912_v38  ;;  %918 = vst.msk [vmem:[#allocation3 + $0xc] sm:$0xf] %vm914_vm3, %v913_v40  ;;  %v1234_v46 = vrot.slane %v1227_v41, %v3246_v39  ;;  %v1242_v47 = vrot.slane %v2329_v42, %v3246_v39  ;;  %v1250_v48 = vrot.slane %v1243_v43, %v3246_v39 }
 0x217   : > { %v1258_v49 = vrot.slane %v2330_v44, %v3246_v39  ;;  %v946_v18 = vcombine.high %v921_v12, %v927_v16  ;;  %v937_v19 = vrot.slane %v929_v14, %v3246_v39  ;;  %v944_v20 = vrot.slane %v930_v15, %v3246_v39 }
 0x218   : > { %v1259_v50 = vcombine.low %v1234_v46, %v1242_v47  ;;  %v1260_v58 = vcombine.high %v1234_v46, %v1242_v47  ;;  %v953_v21 = vrot.slane %v945_v17, %v3246_v39 }
 0x219   : > { %v1275_v51 = vcombine.low %v1250_v48, %v1258_v49  ;;  %v1276_v59 = vcombine.high %v1250_v48, %v1258_v49  ;;  %v960_v22 = vrot.slane %v946_v18, %v3246_v39 }
 0x21a   : > { %v1267_v52 = vrot.slane %v1259_v50, %v3248_v45  ;;  %v1274_v4 = vrot.slane %v1260_v58, %v3248_v45  ;;  %v961_v23 = vcombine.low %v937_v19, %v953_v21  ;;  %v962_v24 = vcombine.high %v937_v19, %v953_v21 }
 0x21b   : > { %v1283_v53 = vrot.slane %v1275_v51, %v3248_v45  ;;  %v1290_v5 = vrot.slane %v1276_v59, %v3248_v45  ;;  %v977_v26 = vcombine.low %v944_v20, %v960_v22  ;;  %v978_v27 = vcombine.high %v944_v20, %v960_v22 }
 0x21c   : > { %v1299_v54 = vld [vmem:[#allocation3] sm:$0xf]  ;;  %v1300_v55 = vld [vmem:[#allocation3 + $0x4] sm:$0xf]  ;;  %v969_v28 = vrot.slane %v961_v23, %v3248_v45  ;;  %v976_v29 = vrot.slane %v962_v24, %v3248_v45 }
 0x21d   : > { %v1308_v56 = vsel %vm1303_vm4, %v1299_v54, 0  ;;  %v1354_v57 = vsel %vm1303_vm4, %v1300_v55, 0  ;;  %v1291_v60 = vcombine.low %v1267_v52, %v1283_v53  ;;  %v1292_v61 = vcombine.high %v1267_v52, %v1283_v53  ;;  %v1301_v62 = vld [vmem:[#allocation3 + $0x8] sm:$0xf]  ;;  %v1302_v63 = vld [vmem:[#allocation3 + $0xc] sm:$0xf] }
 0x21e   : > { %2424 = vmatpush3.bf16.xpose.msra.mxu1 %v1308_v56  ;;  %2430 = vmatpush3.bf16.xpose.msra.mxu0 %v1354_v57  ;;  %v1400_v6 = vsel %vm1303_vm4, %v1301_v62, 0  ;;  %v1446_v7 = vsel %vm1303_vm4, %v1302_v63, 0  ;;  %v1293_v8 = vcombine.low %v1274_v4, %v1290_v5  ;;  %v1294_v9 = vcombine.high %v1274_v4, %v1290_v5 }
 0x21f   : > { %2435 = vmatprep.subr.bf16.mxu1 %v2890_v0  ;;  %2441 = vmatprep.subr.bf16.mxu0 %v2890_v0  ;;  %v1295_v1 = vpack.c.bf16 %v1291_v60, %v1291_v60  ;;  %v1296_v2 = vpack.c.bf16 %v1292_v61, %v1292_v61  ;;  %v985_v25 = vrot.slane %v977_v26, %v3248_v45 }
 0x220   : > { %v1297_v10 = vpack.c.bf16 %v1293_v8, %v1293_v8  ;;  %v1298_v11 = vpack.c.bf16 %v1294_v9, %v1294_v9  ;;  %v992_v30 = vrot.slane %v978_v27, %v3248_v45  ;;  %v997_v31 = vcombine.low %v969_v28, %v976_v29 }
 0x221   : > { %v2323_v32 = vcombine.high %v969_v28, %v976_v29 }
 0x222   : > { %v1013_v33 = vcombine.low %v985_v25, %v992_v30  ;;  %v2324_v34 = vcombine.high %v985_v25, %v992_v30  ;;  %v1004_v35 = vrot.slane %v997_v31, %v3246_v39 }
 0x223   : > { %v1012_v36 = vrot.slane %v2323_v32, %v3246_v39 }
 0x224   : > { %v1020_v37 = vrot.slane %v1013_v33, %v3246_v39  ;;  %v1028_v38 = vrot.slane %v2324_v34, %v3246_v39 }
 0x225   : > { %2426 = vmatmul.mubr.msk.bf16.vlgmr.msra.gmra.mrb[4].mxu1 %vm1303_vm4, %v1295_v1  ;;  %2432 = vmatmul.mubr.msk.bf16.vlgmr.msra.gmra.mrb[8].mxu0 %vm1303_vm4, %v1296_v2  ;;  %v1029_v40 = vcombine.low %v1004_v35, %v1012_v36  ;;  %v1030_v41 = vcombine.high %v1004_v35, %v1012_v36 }
 0x226   : > { %2436 = vmatpush3.bf16.xpose.msra.mxu1 %v1400_v6  ;;  %2442 = vmatpush3.bf16.xpose.msra.mxu0 %v1446_v7  ;;  %v1045_v42 = vcombine.low %v1020_v37, %v1028_v38  ;;  %v1046_v43 = vcombine.high %v1020_v37, %v1028_v38 }
 0x227   : > { %2437 = vmatprep.mubr.msk.bf16.mxu1 %vm2891_vm0, %v2890_v0  ;;  %2443 = vmatprep.mubr.msk.bf16.mxu0 %vm2891_vm0, %v2890_v0  ;;  %v1037_v44 = vrot.slane %v1029_v40, %v3248_v45  ;;  %v1044_v46 = vrot.slane %v1030_v41, %v3248_v45 }
 0x228   : > { %2447 = vmatprep.subr.bf16.mxu1 %v2890_v0  ;;  %2453 = vmatprep.subr.bf16.mxu0 %v2890_v0  ;;  %v1053_v47 = vrot.slane %v1045_v42, %v3248_v45  ;;  %v1060_v48 = vrot.slane %v1046_v43, %v3248_v45 }
 0x22a   : > { %v1061_v49 = vcombine.low %v1037_v44, %v1053_v47  ;;  %v1062_v50 = vcombine.high %v1037_v44, %v1053_v47  ;;  %v1063_v51 = vcombine.low %v1044_v46, %v1060_v48  ;;  %v1064_v52 = vcombine.high %v1044_v46, %v1060_v48 }
 0x22c   : > { %v1065_v53 = vpack.c.bf16 %v1061_v49, %v1061_v49  ;;  %v1066_v54 = vpack.c.bf16 %v1062_v50, %v1062_v50  ;;  %v1067_v55 = vpack.c.bf16 %v1063_v51, %v1063_v51  ;;  %v1068_v56 = vpack.c.bf16 %v1064_v52, %v1064_v52 }
 0x22d   : > { %2438 = vmatmul.mubr.msk.bf16.vlgmr.msra.gmra.mrb[8].mxu1 %vm1303_vm4, %v1297_v10  ;;  %2444 = vmatmul.mubr.msk.bf16.vlgmr.msra.gmra.mrb[12].mxu0 %vm1303_vm4, %v1298_v11 }
 0x22e   : > { %2449 = vmatprep.mubr.msk.bf16.mxu1 %vm2891_vm0, %v2890_v0  ;;  %2455 = vmatprep.mubr.msk.bf16.mxu0 %vm2891_vm0, %v2890_v0  ;;  %1069 = vst.msk [vmem:[#allocation4] sm:$0xf] %vm914_vm3, %v1065_v53  ;;  %1070 = vst.msk [vmem:[#allocation4 + $0x4] sm:$0xf] %vm914_vm3, %v1066_v54 }
 0x22f   : > { %1071 = vst.msk [vmem:[#allocation4 + $0x8] sm:$0xf] %vm914_vm3, %v1067_v55  ;;  %1072 = vst.msk [vmem:[#allocation4 + $0xc] sm:$0xf] %vm914_vm3, %v1068_v56 }
 0x235   : > { %v1528_v57 = vld [vmem:[#allocation4] sm:$0xf]  ;;  %v1529_v58 = vld [vmem:[#allocation4 + $0x4] sm:$0xf] }
 0x236   : > { %v1537_v59 = vsel %vm1535_vm5, %v1528_v57, 0  ;;  %v1583_v60 = vsel %vm1535_vm5, %v1529_v58, 0  ;;  %v1530_v32 = vld [vmem:[#allocation4 + $0x8] sm:$0xf]  ;;  %v1531_v36 = vld [vmem:[#allocation4 + $0xc] sm:$0xf] }
 0x237   : > { %2448 = vmatpush3.bf16.msra.mxu1 %v1537_v59  ;;  %2454 = vmatpush3.bf16.msra.mxu0 %v1583_v60  ;;  %v1629_v40 = vsel %vm1535_vm5, %v1530_v32, 0  ;;  %v1675_v41 = vsel %vm1535_vm5, %v1531_v36, 0  ;;  %v2624_v36 = vld [vmem:[#allocation10 + $0x8] sm:$0xff]  }
 0x238   : > { %2459 = vmatprep.subr.bf16.mxu1 %v2890_v0  ;;  %2465 = vmatprep.subr.bf16.mxu0 %v2890_v0 }
 0x2f8   : > { %v1344_v61 = vpop.f32.mrb[4].mxu1  ;;  %v1390_v62 = vpop.f32.mrb[8].mxu0 }
 0x2f9   : > { %v2427_v63 = vpop.f32.mrb[5].mxu1  ;;  %v2433_v1 = vpop.f32.mrb[9].mxu0  ;;  %v1488_v2 = vsel %vm1303_vm4, %v1344_v61, -inf  ;;  %v1491_v4 = vsel %vm1303_vm4, %v1390_v62, -inf }
 0x2fa   : > { %1489 = vmax.xlane.f32.xlu1 %v1488_v2  ;;  %v1347_v5 = vpop.f32.mrb[6].mxu1  ;;  %1492 = vmax.xlane.f32.xlu0 %v1491_v4  ;;  %v1393_v6 = vpop.f32.mrb[10].mxu0 }
 0x2fb   : > { %v2428_v7 = vpop.f32.mrb[7].mxu1  ;;  %v2434_v8 = vpop.f32.mrb[11].mxu0 }
 0x300   : > { %v1436_v9 = vpop.f32.mrb[8].mxu1  ;;  %v1482_v10 = vpop.f32.mrb[12].mxu0 }
 0x301   : > { %v2439_v11 = vpop.f32.mrb[9].mxu1  ;;  %v2445_v12 = vpop.f32.mrb[13].mxu0  ;;  %v1494_v13 = vsel %vm1303_vm4, %v1436_v9, -inf  ;;  %v1497_v14 = vsel %vm1303_vm4, %v1482_v10, -inf }
 0x302   : > { %v1439_v15 = vpop.f32.mrb[10].mxu1  ;;  %1495 = vmax.xlane.f32.xlu0 %v1494_v13  ;;  %1498 = vmax.xlane.f32.xlu1 %v1497_v14  ;;  %v1485_v16 = vpop.f32.mrb[14].mxu0 }
 0x303   : > { %v2440_v17 = vpop.f32.mrb[11].mxu1  ;;  %v2446_v18 = vpop.f32.mrb[15].mxu0 }
 0x387   : > { %v1490_v19 = vpop.xlane.xlu1 %1489  ;;  %v1493_v20 = vpop.xlane.xlu0 %1492 }
 0x388   : > { %v1500_v21 = vsub.f32 %v1344_v61, %v1490_v19  ;;  %v1501_v22 = vsub.f32 %v1390_v62, %v1493_v20 }
 0x38a   : > { %v1504_v23 = vmul.f32 1.442695, %v1500_v21  ;;  %v1506_v24 = vmul.f32 1.442695, %v1501_v22 }
 0x38c   : > { %2631 = vpow2.f32 %v1504_v23 }
 0x38d   : > { %2633 = vpow2.f32 %v1506_v24 }
 0x38f   : > { %v1496_v26 = vpop.xlane.xlu0 %1495  ;;  %v1499_v27 = vpop.xlane.xlu1 %1498 }
 0x390   : > { %v1502_v28 = vsub.f32 %v1436_v9, %v1496_v26  ;;  %v1503_v29 = vsub.f32 %v1482_v10, %v1499_v27 }
 0x392   : > { %v1508_v25 = vmul.f32 1.442695, %v1502_v28  ;;  %v1510_v30 = vmul.f32 1.442695, %v1503_v29  ;;  %v2623_v28 = vld [vmem:[#allocation10] sm:$0xff]  }
 0x394   : > { %2635 = vpow2.f32 %v1508_v25 }
 0x395   : > { %2637 = vpow2.f32 %v1510_v30 }
 0x396   : > { %v2632_v31 = vpop.eup %2631 }
 0x397   : > { %v2634_v33 = vpop.eup %2633  ;;  %v1512_v34 = vsel %vm1303_vm4, %v2632_v31, 0.0  ;;  %v1524_v35 = vpack.c.bf16 %v2632_v31, %v2632_v31 }
 0x398   : > { %1513 = vadd.xlane.f32.xlu0 %v1512_v34  ;;  %v1515_v37 = vsel %vm1303_vm4, %v2634_v33, 0.0  ;;  %v1525_v38 = vpack.c.bf16 %v2634_v33, %v2634_v33 }
 0x399   : > { %1516 = vadd.xlane.f32.xlu1 %v1515_v37  ;;  %2450 = vmatmul.mubr.msk.bf16.vlgmr.msra.gmra.mrb[12].mxu1 %vm1303_vm4, %v1524_v35 }
 0x39a   : > { %2456 = vmatmul.mubr.msk.bf16.vlgmr.msra.gmra.mrb[16].mxu0 %vm1303_vm4, %v1525_v38  ;;  %2460 = vmatpush3.bf16.msra.mxu1 %v1629_v40 }
 0x39b   : > { %2466 = vmatpush3.bf16.msra.mxu0 %v1675_v41  ;;  %2461 = vmatprep.mubr.msk.bf16.mxu1 %vm2891_vm0, %v2890_v0 }
 0x39c   : > { %2467 = vmatprep.mubr.msk.bf16.mxu0 %vm2891_vm0, %v2890_v0  ;;  %2471 = vmatprep.subr.bf16.mxu1 %v2890_v0 }
 0x39d   : > { %2479 = vmatprep.subr.bf16.mxu0 %v2890_v0 }
 0x39e   : > { %v2636_v42 = vpop.eup %2635 }
 0x39f   : > { %v2638_v43 = vpop.eup %2637  ;;  %v1518_v44 = vsel %vm1303_vm4, %v2636_v42, 0.0  ;;  %v1526_v46 = vpack.c.bf16 %v2636_v42, %v2636_v42 }
 0x3a0   : > { %1519 = vadd.xlane.f32.xlu0 %v1518_v44  ;;  %v1521_v47 = vsel %vm1303_vm4, %v2638_v43, 0.0  ;;  %v1527_v48 = vpack.c.bf16 %v2638_v43, %v2638_v43 }
 0x3a1   : > { %1522 = vadd.xlane.f32.xlu1 %v1521_v47  ;;  %2462 = vmatmul.mubr.msk.bf16.vlgmr.msra.gmra.mrb[16].mxu1 %vm1303_vm4, %v1526_v46 }
 0x3a2   : > { %2468 = vmatmul.mubr.msk.bf16.vlgmr.msra.gmra.mrb[20].mxu0 %vm1303_vm4, %v1527_v48  ;;  %2475 = vmatprep.mubr.msk.bf16.mxu1 %vm2891_vm0, %v2890_v0 }
 0x3a3   : > { %2483 = vmatprep.mubr.msk.bf16.mxu0 %vm2891_vm0, %v2890_v0  ;;  %2472 = vmatpush3.bf16.msra.mxu1 %v2623_v28 }
 0x3a4   : > { %2473 = vmatprep.subr.bf16.mxu1 %v2890_v0 }
 0x3a7   : > { %2474 = vmatpush3.bf16.msra.mxu1 %v2624_v36 }
 0x3a8   : > { %2487 = vmatprep.subr.bf16.mxu1 %v2890_v0 }
 0x425   : > { %v1514_v49 = vpop.xlane.xlu0 %1513 }
 0x426   : > { %v1517_v50 = vpop.xlane.xlu1 %1516  ;;  %2639 = vrcp.f32 %v1514_v49 }
 0x427   : > { %2641 = vrcp.f32 %v1517_v50 }
 0x42d   : > { %v1520_v51 = vpop.xlane.xlu0 %1519 }
 0x42e   : > { %v1523_v52 = vpop.xlane.xlu1 %1522  ;;  %2643 = vrcp.f32 %v1520_v51 }
 0x42f   : > { %2645 = vrcp.f32 %v1523_v52 }
 0x430   : > { %v2640_v61 = vpop.eup %2639 }
 0x431   : > { %v2642_v62 = vpop.eup %2641 }
 0x438   : > { %v2644_v63 = vpop.eup %2643 }
 0x439   : > { %v2646_v2 = vpop.eup %2645 }
 0x46c   : > { %v1573_v53 = vpop.f32.mrb[12].mxu1 }
 0x46d   : > { %v1619_v54 = vpop.f32.mrb[16].mxu0  ;;  %v2451_v55 = vpop.f32.mrb[13].mxu1  ;;  %v1721_v4 = vmul.f32 %v2640_v61, %v1573_v53 }
 0x46e   : > { %v2457_v56 = vpop.f32.mrb[17].mxu0  ;;  %v1576_v57 = vpop.f32.mrb[14].mxu1  ;;  %v1722_v8 = vmul.f32 %v2642_v62, %v1619_v54 }
 0x46f   : > { %v1622_v58 = vpop.f32.mrb[18].mxu0  ;;  %v2452_v59 = vpop.f32.mrb[15].mxu1 }
 0x470   : > { %v2458_v60 = vpop.f32.mrb[19].mxu0 }
 0x471   : > { %v2341_v60 = vld [vmem:[#allocation11] ss:$0 sm:$0xff] }
 0x474   : > { %v1665_v1 = vpop.f32.mrb[16].mxu1 }
 0x475   : > { %v1723_v5 = vmul.f32 %v2644_v63, %v1665_v1  ;;  %v1711_v6 = vpop.f32.mrb[20].mxu0  ;;  %v2463_v7 = vpop.f32.mrb[17].mxu1 }
 0x476   : > { %v1724_v9 = vmul.f32 %v2646_v2, %v1711_v6  ;;  %v2469_v10 = vpop.f32.mrb[21].mxu0  ;;  %v1668_v11 = vpop.f32.mrb[18].mxu1 }
 0x477   : > { %v1725_v12 = vcombine.low %v1721_v4, %v1723_v5  ;;  %v1726_v13 = vcombine.high %v1721_v4, %v1723_v5  ;;  %v1714_v14 = vpop.f32.mrb[22].mxu0  ;;  %v2464_v15 = vpop.f32.mrb[19].mxu1  ;;  %v2625_v11 = vld [vmem:[%s3487_s11] sm:$0xff]  }
 0x478   : > { %v1741_v16 = vcombine.low %v1722_v8, %v1724_v9  ;;  %v1742_v17 = vcombine.high %v1722_v8, %v1724_v9  ;;  %v2470_v18 = vpop.f32.mrb[23].mxu0  ;;  %2480 = vmatpush3.bf16.msra.mxu0 %v2625_v11 }
 0x479   : > { %v1733_v19 = vrot.slane %v1725_v12, %v3246_v39  ;;  %v1740_v20 = vrot.slane %v1726_v13, %v3246_v39  ;;  %v2626_v12 = vld [vmem:[%s3487_s11 + $0x8] sm:$0xff]   ;;  %2481 = vmatprep.subr.bf16.mxu0 %v2890_v0 }
 0x47a   : > { %v1749_v21 = vrot.slane %v1741_v16, %v3246_v39  ;;  %v1756_v22 = vrot.slane %v1742_v17, %v3246_v39  ;;  %v2628_v13 = vld [vmem:[%s3489_s13 + $0x8] sm:$0xff]  }
 0x47b   : > { %v2345_v18 = vld [vmem:[#allocation13] ss:$0 sm:$0xff] }
 0x47c   : > { %v1757_v23 = vcombine.low %v1733_v19, %v1749_v21  ;;  %v1758_v24 = vcombine.high %v1733_v19, %v1749_v21  ;;  %v1773_v26 = vcombine.low %v1740_v20, %v1756_v22  ;;  %v1774_v27 = vcombine.high %v1740_v20, %v1756_v22  ;;  %2482 = vmatpush3.bf16.msra.mxu0 %v2626_v12  ;;  %v2346_v20 = vld [vmem:[%s3486_s10] ss:$0 sm:$0xff] }
 0x47e   : > { %v1765_v29 = vrot.slane %v1757_v23, %v3248_v45  ;;  %v1772_v25 = vrot.slane %v1758_v24, %v3248_v45  ;;  %v1781_v30 = vrot.slane %v1773_v26, %v3248_v45  ;;  %v1788_v31 = vrot.slane %v1774_v27, %v3248_v45  ;;  %v2629_v24 = vld [vmem:[%s3489_s13 + $0x10] sm:$0xff]   ;;  %v2630_v26 = vld [vmem:[%s3489_s13 + $0x18] sm:$0xff]   ;;  %v2347_v27 = vld [vmem:[%s3488_s12] ss:$0 sm:$0xff] }
 0x480   : > { %v1793_v32 = vcombine.low %v1765_v29, %v1772_v25  ;;  %v2339_v33 = vcombine.high %v1765_v29, %v1772_v25  ;;  %v1809_v34 = vcombine.low %v1781_v30, %v1788_v31  ;;  %v2340_v35 = vcombine.high %v1781_v30, %v1788_v31 }
 0x482   : > { %v1800_v37 = vrot.slane %v1793_v32, %v3246_v39  ;;  %v1808_v38 = vrot.slane %v2339_v33, %v3246_v39  ;;  %v1816_v40 = vrot.slane %v1809_v34, %v3246_v39  ;;  %v1824_v41 = vrot.slane %v2340_v35, %v3246_v39 }
 0x484   : > { %v1826_v42 = vcombine.high %v1800_v37, %v1808_v38  ;;  %v1842_v43 = vcombine.high %v1816_v40, %v1824_v41  ;;  %v1825_v44 = vcombine.low %v1800_v37, %v1808_v38  ;;  %v1841_v46 = vcombine.low %v1816_v40, %v1824_v41 }
 0x486   : > { %v1840_v47 = vrot.slane %v1826_v42, %v3248_v45  ;;  %v1856_v48 = vrot.slane %v1842_v43, %v3248_v45  ;;  %v1833_v49 = vrot.slane %v1825_v44, %v3248_v45  ;;  %v1849_v50 = vrot.slane %v1841_v46, %v3248_v45 }
 0x488   : > { %v1859_v51 = vcombine.low %v1840_v47, %v1856_v48  ;;  %v1858_v52 = vcombine.high %v1833_v49, %v1849_v50  ;;  %v1860_v53 = vcombine.high %v1840_v47, %v1856_v48  ;;  %v1857_v54 = vcombine.low %v1833_v49, %v1849_v50 }
 0x48a   : > { %1866 = vrot.lane.b32.xlu1 %v1859_v51, %s2897_s29  ;;  %1862 = vrot.lane.b32.xlu0 %v1858_v52, %s2898_s8  ;;  %v2357_v52 = vld [vmem:[%s3537_s16] ss:$0 sm:$0xff]  ;;  %s3539_s8 = sld [smem:[#allocation33_spill]] }
 0x48e   : > { %1870 = vrot.lane.b32.xlu1 %v1860_v53, %s2899_s1 }
 0x490   : > { %s3428_s1 = scalar_lea.hbm %s3539_s8, %s2360_s23 }
 0x4fc   : > { %v1867_v39 = vpop.permute.xlu1 %1866  ;;  %v1863_v55 = vpop.permute.xlu0 %1862 }
 0x4fd   : > { %v1873_v56 = vsel %vm1303_vm4, %v1857_v54, %v1863_v55  ;;  %v2358_v54 = vld [vmem:[%s3538_s0] ss:$0 sm:$0xff] }
 0x4fe   : > { %v1875_v58 = vsel %vm1874_vm6, %v1873_v56, %v1867_v39 }
 0x500   : > { %v1871_v57 = vpop.permute.xlu1 %1870 }
 0x501   : > { %v1877_v59 = vsel %vm1876_vm7, %v1875_v58, %v1871_v57 }
 0x502   : > { %v1878_v45 = vpack.c.bf16 %v1877_v59, %v1877_v59 }
 0x504   : > { %2476 = vmatmul.mubr.msk.bf16.vlgmr.msra.gmra.mrb[20].mxu1 %vm657_vm2, %v1878_v45 }
 0x505   : > { %2495 = vmatprep.mubr.msk.bf16.mxu1 %vm2891_vm0, %v2890_v0 }
 0x5d7   : > { %v1939_v61 = vpop.f32.mrb[20].mxu1 }
 0x5d8   : > { %v1940_v62 = vadd.f32 %v2341_v60, %v1939_v61  ;;  %v2477_v63 = vpop.f32.mrb[21].mxu1 }
 0x5d9   : > { %v1942_v1 = vpop.f32.mrb[22].mxu1 }
 0x5da   : > { %v2478_v2 = vpop.f32.mrb[23].mxu1  ;;  %v1945_v4 = vadd.f32 %v1940_v62, %v3205_v3  ;;  %v2627_v3 = vld [vmem:[%s3489_s13] sm:$0xff]  }
 0x5db   : > { %2488 = vmatpush3.bf16.msra.mxu1 %v2627_v3 }
 0x5dc   : > { %v1948_v5 = vsel %vm657_vm2, %v1945_v4, 0.0  ;;  %2489 = vmatprep.subr.bf16.mxu1 %v2890_v0 }
 0x5dd   : > { %1949 = vadd.xlane.f32.xlu0 %v1948_v5 }
 0x5df   : > { %2490 = vmatpush3.bf16.msra.mxu1 %v2628_v13 }
 0x5e0   : > { %2491 = vmatprep.subr.bf16.mxu1 %v2890_v0 }
 0x5e3   : > { %2492 = vmatpush3.bf16.msra.mxu1 %v2629_v24 }
 0x5e4   : > { %2493 = vmatprep.subr.bf16.mxu1 %v2890_v0  ;;  %v2351_v0 = vld [vmem:[%s3490_s14] ss:$0 sm:$0xff] }
 0x5e7   : > { %2494 = vmatpush3.bf16.msra.mxu1 %v2630_v26 }
 0x66a   : > { %v1950_v6 = vpop.xlane.xlu0 %1949 }
 0x66b   : > { %v1952_v7 = vmul.f32 0.03125, %v1950_v6 }
 0x66d   : > { %v1953_v8 = vsub.f32 %v1945_v4, %v1952_v7 }
 0x66f   : > { %v1954_v9 = vmul.f32 %v1953_v8, %v1953_v8 }
 0x671   : > { %v1955_v10 = vsel %vm657_vm2, %v1954_v9, 0.0 }
 0x672   : > { %1956 = vadd.xlane.f32.xlu1 %v1955_v10 }
 0x6ff   : > { %v1957_v14 = vpop.xlane.xlu1 %1956 }
 0x700   : > { %v1958_v15 = vmul.f32 0.03125, %v1957_v14 }
 0x702   : > { %v1959_v16 = vadd.f32 1e-05, %v1958_v15 }
 0x704   : > { %2647 = vrsqrt.f32 %v1959_v16 }
 0x70e   : > { %v2648_v17 = vpop.eup %2647 }
 0x70f   : > { %v1961_v19 = vmul.f32 %v2648_v17, %v1953_v8 }
 0x711   : > { %v1968_v21 = vmul.f32 %v2345_v18, %v1961_v19 }
 0x713   : > { %v1975_v22 = vadd.f32 %v2346_v20, %v1968_v21 }
 0x715   : > { %v1976_v23 = vpack.c.bf16 %v1975_v22, %v1975_v22 }
 0x717   : > { %2484 = vmatmul.mubr.msk.bf16.vlgmr.msra.gmra.mrb[24].mxu0 %vm657_vm2, %v1976_v23 }
 0x7ea   : > { %v2037_v28 = vpop.f32.mrb[24].mxu0 }
 0x7eb   : > { %v2038_v29 = vadd.f32 %v2347_v27, %v2037_v28  ;;  %v2485_v25 = vpop.f32.mrb[25].mxu0 }
 0x7ec   : > { %v2040_v30 = vpop.f32.mrb[26].mxu0 }
 0x7ed   : > { %v2043_v31 = vmax.f32 %v2038_v29, 0.0  ;;  %v2486_v32 = vpop.f32.mrb[27].mxu0 }
 0x7ef   : > { %v2044_v33 = vpack.c.bf16 %v2043_v31, %v2043_v31 }
 0x7f1   : > { %2496 = vmatmul.mubr.msk.bf16.vlgmr.msra.gmra.mrb[24].mxu1 %vm2084_vm8, %v2044_v33 }
 0x8c4   : > { %v2122_v34 = vpop.f32.mrb[24].mxu1 }
 0x8c5   : > { %v2123_v35 = vadd.f32 %v2351_v0, %v2122_v34  ;;  %v2497_v36 = vpop.f32.mrb[25].mxu1 }
 0x8c6   : > { %v2125_v37 = vpop.f32.mrb[26].mxu1 }
 0x8c7   : > { %v2498_v38 = vpop.f32.mrb[27].mxu1  ;;  %v2128_v40 = vadd.f32 %v2123_v35, %v1975_v22 }
 0x8c9   : > { %v2131_v41 = vsel %vm657_vm2, %v2128_v40, 0.0 }
 0x8ca   : > { %2132 = vadd.xlane.f32.xlu0 %v2131_v41 }
 0x957   : > { %v2133_v42 = vpop.xlane.xlu0 %2132 }
 0x958   : > { %v2134_v43 = vmul.f32 0.03125, %v2133_v42 }
 0x95a   : > { %v2135_v44 = vsub.f32 %v2128_v40, %v2134_v43 }
 0x95c   : > { %v2136_v46 = vmul.f32 %v2135_v44, %v2135_v44 }
 0x95e   : > { %v2137_v47 = vsel %vm657_vm2, %v2136_v46, 0.0 }
 0x95f   : > { %2138 = vadd.xlane.f32.xlu0 %v2137_v47 }
 0x9ec   : > { %v2139_v48 = vpop.xlane.xlu0 %2138 }
 0x9ed   : > { %v2140_v49 = vmul.f32 0.03125, %v2139_v48 }
 0x9ef   : > { %v2141_v50 = vadd.f32 1e-05, %v2140_v49 }
 0x9f1   : > { %2649 = vrsqrt.f32 %v2141_v50 }
 0x9fb   : > { %v2650_v51 = vpop.eup %2649 }
 0x9fc   : > { %v2143_v53 = vmul.f32 %v2650_v51, %v2135_v44 }
 0x9fe   : > { %v2150_v39 = vmul.f32 %v2357_v52, %v2143_v53 }
 0xa00   : > { %v2157_v55 = vadd.f32 %v2358_v54, %v2150_v39 }
 0xa02   : > { %2158 = vst.msk [vmem:[%s620_s19] sm:$0xff] %vm657_vm2, %v2157_v55 }
 0xa03   : > { %2804 = shalt.err (!%p2801_p6)
}
 0xa04   : > { %s2805_s22 = scalar_lea.hbm %s3428_s1, 128  ;;  %s2809_s18 = scalar_lea.hbm %s3539_s8, 256 }
 0xa05   : > { %p2806_p7 = scmp.ne.s32.totalorder %s3428_s1, %s2805_s22  ;;  %p2810_p0 = scmp.lt.u32.totalorder %s3428_s1, %s3539_s8 }
 0xa06   : > { %p2811_p1 = scmp.lt.u32.totalorder %s2809_s18, %s2805_s22  ;;  %p2813_p2 = scmp.lt.u32.totalorder %s2805_s22, %s3428_s1 }
 0xa07   : > { %p2807_p9 = pnand %p2806_p7, %p3540_p4 }
 0xa08   : > { %p2812_p13 = por %p2811_p1, %p2810_p0 }
 0xa09   : > { %p2808_p12 = pneg %p2807_p9 }
 0xa0a   : > { %p2814_p8 = por %p2813_p2, %p2812_p13 }
 0xa0c   : > { %p2815_p10 = pnand %p2814_p8, %p2808_p12 }
 0xa0e   : > { %2818 = shalt.err (!%p2815_p10)
}
 0xa0f   : > { %2519 = dma.vmem_to_hbm [thread:$0]  (%p3540_p4), %s3430_s30, 128, %s3428_s1, %s2160_s26  }
 0xa10 PF: > { %s3541_s19 = sld [smem:[#allocation22_spill]]  ;;  %s3542_s24 = sld [smem:[#allocation19_spill]] }
 0xa11   : > { %s3543_s29 = sld [smem:[#allocation25_spill]] }
 0xa16   : > { %p2551_p11 = scmp.ge.s32.totalorder %s3541_s19, 2  ;;  %s2186_s28 = sand.u32 1, %s3542_s24  }
 0xa17   : > { %p3544_p3 = scmp.ne.s32.totalorder %s3543_s29, 0  ;;  %s2187_s27 = scalar_lea.sflag [#allocation7], %s2186_s28 }
 0xa19   : > { %p2538_p5 = pnand %p2551_p11, %p3544_p3 }
 0xa1b   : > { %2856 = dma.done.wait (!%p2538_p5), %s2187_s27, 128  }
 0xa1c   : > { %2858 = vsyncadd (!%p2538_p5), %s2187_s27, 4294967168  ;;  %s33_s29 = sadd.s32 1, %s3541_s19   ;;  %s3545_s20 = sld [smem:[#allocation20_spill]] }
 0xa1d   : > { %p30_p6 = scmp.ge.s32.totalorder %s33_s29, 4   ;;  %s3546_s26 = sld [smem:[#allocation26_spill]] }
 0xa1e   : > { %s3547_s27 = sld [smem:[#allocation21_spill]]  ;;  %s3548_s28 = sld [smem:[#allocation23_spill]] }
 0xa1f   : > { %s3549_s24 = smov %s2865_s25  ;;  %32 = sbr.rel (!%p30_p6) target bundleno = 15 (0xf), region = 150 }
 0xa22   : > { %s3550_s25 = smov %s3545_s20 }
 0xa26   :  { %2192 = vsyncpa [#allocation6], 1 }
 0xa27   :  { %2194 = vsyncpa [#allocation6 + $0x1], 1 }
 0xa28   :  { %2195 = vsyncpa [#allocation9], 1 }
 0xa29   :  { %2196 = vsyncpa [#allocation12], 1 }
 0xa2a   :  { %2197 = vsyncpa [#allocation7], 1 }
 0xa2b   :  { %2199 = vsyncpa [#allocation7 + $0x1], 1 }

// kernel: tpu_custom_call.1
= control target key start
LH: loop header
LB: loop body
LE: loop exit
PB: predicated region body
PF: predicated region fallthrough
CT: control target
= control target key end

     0   :  { %s3476_s0 = inlined_call_operand.vmem [shape: f32[2,8,32], index: 0, kind: input, shape index: {}]   ;;  %s3477_s1 = inlined_call_operand.vmem [shape: bf16[32,32], index: 1, kind: input, shape index: {}]   ;;  %s3478_s2 = inlined_call_operand.vmem [shape: f32[1,32], index: 2, kind: input, shape index: {}]   ;;  %s3479_s3 = inlined_call_operand.vmem [shape: bf16[32,32], index: 3, kind: input, shape index: {}]   ;;  %s3480_s4 = inlined_call_operand.vmem [shape: f32[1,32], index: 4, kind: input, shape index: {}]   ;;  %s3481_s5 = inlined_call_operand.hbm [shape: bf16[32,32], index: 5, kind: input, shape index: {}]   ;;  %s3482_s6 = inlined_call_operand.hbm [shape: f32[1,32], index: 6, kind: input, shape index: {}]   ;;  %s3483_s7 = inlined_call_operand.hbm [shape: bf16[32,32], index: 7, kind: input, shape index: {}]   ;;  %s3484_s8 = inlined_call_operand.hbm [shape: f32[1,32], index: 8, kind: input, shape index: {}]   ;;  %s3485_s9 = inlined_call_operand.hbm [shape: f32[1,32], index: 9, kind: input, shape index: {}]   ;;  %s3486_s10 = inlined_call_operand.vmem [shape: f32[1,32], index: 10, kind: input, shape index: {}]   ;;  %s3487_s11 = inlined_call_operand.vmem [shape: bf16[32,64], index: 11, kind: input, shape index: {}]   ;;  %s3488_s12 = inlined_call_operand.vmem [shape: f32[1,64], index: 12, kind: input, shape index: {}]   ;;  %s3489_s13 = inlined_call_operand.vmem [shape: bf16[64,32], index: 13, kind: input, shape index: {}]   ;;  %s3490_s14 = inlined_call_operand.vmem [shape: f32[1,32], index: 14, kind: input, shape index: {}]   ;;  %s3491_s15 = inlined_call_operand.vmem [shape: f32[1,32], index: 15, kind: input, shape index: {}]   ;;  %s3492_s16 = inlined_call_operand.vmem [shape: f32[1,32], index: 16, kind: input, shape index: {}]   ;;  %s3493_s17 = inlined_call_operand.hbm [shape: f32[2,8,32], index: 17, kind: output, shape index: {}]  }
   0x1   :  { %3509 = sst [smem:[#allocation27_spill]] %s3476_s0 }
   0x2   :  { %3510 = sst [smem:[#allocation28_spill]] %s3477_s1 }
   0x3   :  { %3511 = sst [smem:[#allocation29_spill]] %s3482_s6 }
   0x4   :  { %3512 = sst [smem:[#allocation30_spill]] %s3484_s8 }
   0x5   :  { %3513 = sst [smem:[#allocation31_spill]] %s3491_s15 }
   0x6   :  { %3514 = sst [smem:[#allocation32_spill]] %s3492_s16 }
   0x7   :  { %3515 = sst [smem:[#allocation33_spill]] %s3493_s17 }
   0x8   :  { %22 = vsyncpa [#allocation6], 0 }
   0x9   :  { %23 = vsyncpa [#allocation9], 0 }
   0xa   :  { %24 = vsyncpa [#allocation12], 0 }
   0xb   :  { %25 = vsyncpa [#allocation7], 0 }
   0xc   :  { %27 = vsyncpa [#allocation7 + $0x1], 0  ;;  %s2991_s24 = smov 0   ;;  %s2993_s25 = smov 0  }
   0xd   :  { %s2995_s26 = smov 0   ;;  %s2997_s27 = smov 0  }
   0xe   :  { %s2999_s28 = smov 0   ;;  %s3001_s29 = smov 0  }
   0xf LB: > { %3516 = sst [smem:[#allocation19_spill]] %s2861_s24  ;;  %s2296_s0 = sadd.s32 4294967295, %s2881_s29   ;;  %s2881_s29 = sphi %s3001_s29, %s33_s29   ;;  %s2877_s28 = sphi %s2999_s28, %s3548_s28   ;;  %s2873_s27 = sphi %s2997_s27, %s3547_s27   ;;  %s2869_s26 = sphi %s2995_s26, %s3546_s26   ;;  %s2865_s25 = sphi %s2993_s25, %s3550_s25   ;;  %s2861_s24 = sphi %s2991_s24, %s3549_s24  }
  0x10   : > { %3517 = sst [smem:[#allocation20_spill]] %s2869_s26  ;;  %s2297_s30 = sadd.s32 4294967294, %s2881_s29  }
  0x11   : > { %3518 = sst [smem:[#allocation21_spill]] %s2877_s28  ;;  %s45_s18 = sadd.s32 1, %s2877_s28 }
  0x12   : > { %3519 = sst [smem:[#allocation22_spill]] %s2881_s29  ;;  %s416_s19 = sadd.s32 1, %s2869_s26 }
  0x13   : > { %p47_p0 = scmp.ge.s32.totalorder %s45_s18, 2  ;;  %p426_p1 = scmp.ne.s32.totalorder %s2869_s26, %s2865_s25 }
  0x14   : > { %p427_p2 = scmp.eq.s32.totalorder %s2296_s0, 1  ;;  %p432_p3 = scmp.ne.s32.totalorder %s2865_s25, %s2861_s24 }
  0x15   : > { %s3552_s18 = smov (%p47_p0, %s45_s18), 0  ;;  %p433_p5 = scmp.eq.s32.totalorder %s2297_s30, 1 }
  0x16   : > { %3520 = sst [smem:[#allocation23_spill]] %s3552_s18  ;;  %p3031_p4 = por %p427_p2, %p426_p1 }
  0x17   : > { %s411_s20 = ssub.s32 %s2877_s28, %s3552_s18  ;;  %p2298_p6 = scmp.ge.s32.totalorder %s2881_s29, 1 }
  0x18   : > { %s3521_s1 = scalar_select %p3031_p4, 1, 0 }
  0x19   : > { %p414_p7 = scmp.eq.s32.totalorder %s411_s20, 0  ;;  %p3038_p8 = por %p433_p5, %p432_p3 }
  0x1a   : > { %3522 = sst [smem:[#allocation24_spill]] %s3521_s1  ;;  %p440_p9 = scmp.lt.s32.totalorder %s2881_s29, 3 }
  0x1b   : > { %s3523_s21 = scalar_select %p3038_p8, 1, 0 }
  0x1c   : > { %s3044_s22 = scalar_select %p414_p7, %s2869_s26, %s416_s19  }
  0x1d   : > { %3524 = sst [smem:[#allocation25_spill]] %s3523_s21  ;;  %p3046_p10 = pnand %p2298_p6, %p440_p9 }
  0x1e   : > { %3525 = sst [smem:[#allocation26_spill]] %s3044_s22  ;;  %p3050_p11 = scmp.eq.s32.totalorder %s2296_s0, 0 }
  0x1f   : > { %s3526_s23 = scalar_select %p3046_p10, 1, 0 }
  0x20   : > { %s3527_s24 = scalar_select %p3050_p11, 1, 0 }
  0x21   : > { %p2521_p12 = pneg %p3046_p10  ;;  %s2883_s30 = smov [#allocation8]  }
  0x22   : > { %s478_s20 = sshll.u32 %s2883_s30, 4  ;;  %s2884_s18 = smov [#allocation11]   ;;  %s479_s20 = int_to_ptr.vmem [resolvable:$true] %s478_s20 }
  0x23   : > { %s502_s28 = sshll.u32 %s2884_s18, 4  ;;  %p3058_p13 = pnand %p3050_p11, %p2521_p12  ;;  %s3062_s28 = int_to_ptr.vmem [resolvable:$true] %s502_s28 }
  0x24   : > { %s3529_s6 = sld [smem:[#allocation29_spill]] }
  0x25   : > { %p3072_p1 = pneg %p3058_p13 }
  0x2a   : > { %s2651_s26 = scalar_lea.hbm %s3529_s6, 16 }
  0x2b   : > { %p2652_p0 = scmp.ne.s32.totalorder %s3529_s6, %s2651_s26  ;;  %p2658_p5 = scmp.lt.u32.totalorder %s2651_s26, %s3529_s6 }
  0x2d   : > { %p2654_p2 = pnand %p3072_p1, %p2652_p0 }
  0x2f   : > { %p2655_p3 = pneg %p2654_p2 }
  0x31   : > { %p2660_p6 = pnand %p2658_p5, %p2655_p3 }
  0x33   : > { %2663 = shalt.err (!%p2660_p6)
}
  0x34   : > { %s2664_s22 = scalar_lea.vmem %s479_s20, 16  ;;  %s2671_s29 = scalar_lea.vmem %s479_s20, 32 }
  0x35   : > { %p2665_p7 = scmp.ne.s32.totalorder %s479_s20, %s2664_s22  ;;  %p2672_p8 = scmp.lt.s32.totalorder %s479_s20, %s479_s20 }
  0x36   : > { %p2673_p4 = scmp.lt.s32.totalorder %s2671_s29, %s2664_s22 }
  0x37   : > { %p2667_p9 = pnand %p2665_p7, %p3072_p1 }
  0x38   : > { %p2674_p11 = por %p2673_p4, %p2672_p8 }
  0x39   : > { %p2668_p12 = pneg %p2667_p9 }
  0x3b   : > { %p2675_p10 = pnand %p2674_p11, %p2668_p12 }
  0x3d   : > { %2678 = shalt.err (!%p2675_p10)
}
  0x3e   : > { %2527 = dma.hbm_to_vmem [thread:$0]  (!%p3058_p13), %s3529_s6, 16, %s479_s20, [#allocation9]  }
  0x3f   : > { %s3531_s8 = sld [smem:[#allocation30_spill]] }
  0x45   : > { %s2679_s18 = scalar_lea.hbm %s3531_s8, 16 }
  0x46   : > { %p2680_p0 = scmp.ne.s32.totalorder %s3531_s8, %s2679_s18  ;;  %p2686_p8 = scmp.lt.u32.totalorder %s2679_s18, %s3531_s8 }
  0x48   : > { %p2682_p2 = pnand %p2680_p0, %p3072_p1 }
  0x4a   : > { %p2683_p4 = pneg %p2682_p2 }
  0x4c   : > { %p2688_p10 = pnand %p2686_p8, %p2683_p4 }
  0x4e   : > { %2691 = shalt.err (!%p2688_p10)
}
  0x4f   : > { %s2692_s20 = scalar_lea.vmem %s3062_s28, 16  ;;  %s2699_s15 = scalar_lea.vmem %s3062_s28, 32 }
  0x50   : > { %p2693_p11 = scmp.ne.s32.totalorder %s3062_s28, %s2692_s20  ;;  %p2700_p6 = scmp.lt.s32.totalorder %s3062_s28, %s3062_s28 }
  0x51   : > { %p2701_p7 = scmp.lt.s32.totalorder %s2699_s15, %s2692_s20 }
  0x52   : > { %p2695_p3 = pnand %p2693_p11, %p3072_p1 }
  0x53   : > { %p2702_p9 = por %p2701_p7, %p2700_p6 }
  0x54   : > { %p2696_p5 = pneg %p2695_p3 }
  0x56   : > { %p2703_p12 = pnand %p2702_p9, %p2696_p5 }
  0x58   : > { %2706 = shalt.err (!%p2703_p12)
}
  0x59   : > { %2533 = dma.hbm_to_vmem [thread:$0]  (!%p3058_p13), %s3531_s8, 16, %s3062_s28, [#allocation12]  }
  0x5a   : > { %s2885_s0 = smov [#allocation5]   ;;  %s2707_s22 = scalar_lea.hbm %s3481_s5, 256 }
  0x5b   : > { %s464_s17 = sshll.u32 %s2885_s0, 4  ;;  %p2708_p0 = scmp.ne.s32.totalorder %s3481_s5, %s2707_s22  ;;  %s465_s17 = int_to_ptr.vmem [resolvable:$true] %s464_s17 }
  0x5c   : > { %p2714_p8 = scmp.lt.u32.totalorder %s2707_s22, %s3481_s5 }
  0x5d   : > { %p2710_p2 = pnand %p2708_p0, %p3072_p1 }
  0x5f   : > { %p2711_p4 = pneg %p2710_p2 }
  0x61   : > { %p2716_p10 = pnand %p2714_p8, %p2711_p4 }
  0x63   : > { %2719 = shalt.err (!%p2716_p10)
}
  0x64   : > { %s2720_s28 = scalar_lea.vmem %s465_s17, 256  ;;  %p2728_p6 = scmp.lt.s32.totalorder %s465_s17, %s465_s17 }
  0x65   : > { %p2721_p11 = scmp.ne.s32.totalorder %s465_s17, %s2720_s28  ;;  %p2729_p7 = scmp.lt.s32.totalorder %s2720_s28, %s2720_s28 }
  0x67   : > { %p2723_p3 = pnand %p2721_p11, %p3072_p1  ;;  %p2730_p9 = por %p2729_p7, %p2728_p6 }
  0x69   : > { %p2724_p5 = pneg %p2723_p3 }
  0x6b   : > { %p2731_p12 = pnand %p2730_p9, %p2724_p5 }
  0x6d   : > { %2734 = shalt.err (!%p2731_p12)
}
  0x6e   : > { %s2886_s16 = smov 64   ;;  %s2887_s21 = smov 4  }
  0x6f   : > { %2524 = dma.hbm_to_vmem [thread:$0]  (!%p3058_p13), %s3481_s5, 256, %s465_s17, [#allocation6], %s2886_s16, %s2886_s16, %s2887_s21  }
  0x70   : > { %s2888_s26 = smov [#allocation10]   ;;  %s2889_s22 = smov [#allocation13]  }
  0x71   : > { %s488_s18 = sshll.u32 %s2888_s26, 4  ;;  %s513_s29 = sshll.u32 %s2889_s22, 4  ;;  %s489_s18 = int_to_ptr.vmem [resolvable:$true] %s488_s18  ;;  %s3130_s29 = int_to_ptr.vmem [resolvable:$true] %s513_s29 }
  0x72   : > { %s2735_s28 = scalar_lea.hbm %s3483_s7, 256 }
  0x73   : > { %p2736_p0 = scmp.ne.s32.totalorder %s3483_s7, %s2735_s28  ;;  %p2742_p8 = scmp.lt.u32.totalorder %s2735_s28, %s3483_s7 }
  0x75   : > { %p2738_p2 = pnand %p2736_p0, %p3072_p1 }
  0x77   : > { %p2739_p4 = pneg %p2738_p2 }
  0x79   : > { %p2744_p10 = pnand %p2742_p8, %p2739_p4 }
  0x7b   : > { %2747 = shalt.err (!%p2744_p10)
}
  0x7c   : > { %s2748_s0 = scalar_lea.vmem %s489_s18, 256  ;;  %p2756_p6 = scmp.lt.s32.totalorder %s489_s18, %s489_s18 }
  0x7d   : > { %p2749_p11 = scmp.ne.s32.totalorder %s489_s18, %s2748_s0  ;;  %p2757_p7 = scmp.lt.s32.totalorder %s2748_s0, %s2748_s0 }
  0x7f   : > { %p2751_p3 = pnand %p2749_p11, %p3072_p1  ;;  %p2758_p9 = por %p2757_p7, %p2756_p6 }
  0x81   : > { %p2752_p5 = pneg %p2751_p3 }
  0x83   : > { %p2759_p12 = pnand %p2758_p9, %p2752_p5 }
  0x85   : > { %2762 = shalt.err (!%p2759_p12)
}
  0x86   : > { %2530 = dma.hbm_to_vmem [thread:$0]  (!%p3058_p13), %s3483_s7, 256, %s489_s18, [#allocation9], %s2886_s16, %s2886_s16, %s2887_s21  }
  0x87   : > { %s2763_s20 = scalar_lea.hbm %s3485_s9, 16 }
  0x88   : > { %p2764_p0 = scmp.ne.s32.totalorder %s3485_s9, %s2763_s20  ;;  %p2770_p8 = scmp.lt.u32.totalorder %s2763_s20, %s3485_s9 }
  0x8a   : > { %p2766_p2 = pnand %p2764_p0, %p3072_p1 }
  0x8c   : > { %p2767_p4 = pneg %p2766_p2 }
  0x8e   : > { %p2772_p10 = pnand %p2770_p8, %p2767_p4 }
  0x90   : > { %2775 = shalt.err (!%p2772_p10)
}
  0x91   : > { %s2776_s16 = scalar_lea.vmem %s3130_s29, 16  ;;  %s2783_s21 = scalar_lea.vmem %s3130_s29, 32 }
  0x92   : > { %p2777_p11 = scmp.ne.s32.totalorder %s3130_s29, %s2776_s16  ;;  %p2784_p6 = scmp.lt.s32.totalorder %s3130_s29, %s3130_s29 }
  0x93   : > { %p2785_p7 = scmp.lt.s32.totalorder %s2783_s21, %s2776_s16 }
  0x94   : > { %p2779_p3 = pnand %p2777_p11, %p3072_p1 }
  0x95   : > { %p2786_p9 = por %p2785_p7, %p2784_p6 }
  0x96   : > { %p2780_p5 = pneg %p2779_p3 }
  0x98   : > { %p2787_p12 = pnand %p2786_p9, %p2780_p5 }
  0x9a   : > { %2790 = shalt.err (!%p2787_p12)
}
  0x9b   : > { %2536 = dma.hbm_to_vmem [thread:$0]  (!%p3058_p13), %s3485_s9, 16, %s3130_s29, [#allocation12]  }
  0x9c   : > { %p3532_p0 = scmp.ne.s32.totalorder %s3526_s23, 0 }
  0x9d   : > { %p3533_p1 = scmp.ne.s32.totalorder (!%p3532_p0), %s3527_s24, 0 }
  0x9e   : > { %554 = sbr.rel (%p3532_p0) target bundleno = 2576 (0xa10), region = 88 }
  0xa5   : > { %2844 = dma.done.wait (%p3533_p1), [#allocation6], 256  }
  0xa6   : > { %2846 = vsyncadd (%p3533_p1), [#allocation6], 4294967040 }
  0xa7   : > { %2848 = dma.done.wait (%p3533_p1), [#allocation9], 272  }
  0xa8   : > { %2850 = vsyncadd (%p3533_p1), [#allocation9], 4294967024 }
  0xa9   : > { %2852 = dma.done.wait (%p3533_p1), [#allocation12], 32  }
  0xaa   : > { %2854 = vsyncadd (%p3533_p1), [#allocation12], 4294967264  ;;  %p621_p13 = scmp.lt.s32.totalorder %s2873_s27, 1  ;;  %v2890_v0 = vmov 0.0   ;;  %vm2891_vm0 = vmmov 0   ;;  %s3534_s29 = sld [smem:[#allocation27_spill]]  ;;  %v779_v31 = vlaneseq }
  0xab   : > { %2399 = vmatprep.subr.bf16.mxu0 %v2890_v0  ;;  %2403 = vmatprep.mubr.msk.bf16.mxu0 %vm2891_vm0, %v2890_v0  ;;  %v2617_v1 = vld [vmem:[%s3479_s3] sm:$0xff]   ;;  %v2618_v2 = vld [vmem:[%s3479_s3 + $0x8] sm:$0xff]   ;;  %vm632_vm1 = vcmask 257024   ;;  %vm657_vm2 = vcmask 261120   ;;  %s3535_s6 = sld [smem:[#allocation28_spill]]  ;;  %s2892_s0 = smov 104  }
  0xac   : > { %s622_s23 = scalar_select %p621_p13, %s2873_s27, 1  ;;  %2407 = vmatprep.subr.bf16.mxu1 %v2890_v0  ;;  %2411 = vmatprep.mubr.msk.bf16.mxu1 %vm2891_vm0, %v2890_v0  ;;  %v2621_v6 = vld [vmem:[#allocation5] sm:$0xff]   ;;  %v2622_v9 = vld [vmem:[#allocation5 + $0x8] sm:$0xff]   ;;  %v2313_v10 = vld [vmem:[%s3480_s4] ss:$0 sm:$0xff]  ;;  %v780_v35 = vshrl.u32 %v779_v31, 7 }
  0xad   : > { %2400 = vmatpush3.bf16.msra.mxu0 %v2617_v1  ;;  %2408 = vmatpush3.bf16.msra.mxu1 %v2621_v6  ;;  %v2325_v16 = vld [vmem:[%s3478_s2] ss:$0 sm:$0xff]  ;;  %s2894_s24 = smov 112   ;;  %v2317_v23 = vld [vmem:[#allocation8] ss:$0 sm:$0xff]  ;;  %vm914_vm3 = vcmask 60416  }
  0xae   : > { %s2312_s19 = sshll.u32 %s622_s23, 3  ;;  %2401 = vmatprep.subr.bf16.mxu0 %v2890_v0  ;;  %2409 = vmatprep.subr.bf16.mxu1 %v2890_v0  ;;  %s2893_s23 = smov 120   ;;  %v2895_v29 = vmov 1983009808   ;;  %v2896_v32 = vmov 1934713408  }
  0xaf   : > { %v777_v30 = vunpack.c.l.s4 %v2895_v29  ;;  %v809_v33 = vunpack.c.l.s4 %v2896_v32  ;;  %vm1303_vm4 = vcmask 64512   ;;  %vm1535_vm5 = vcmask 1043456   ;;  %s2899_s1 = smov 24   ;;  %s618_s22 = sand.u32 1, %s2865_s25  }
  0xb0   : > { %s624_s8 = scalar_lea.vmem %s3534_s29, %s2312_s19  ;;  %s2897_s29 = smov 16   ;;  %vm1874_vm6 = vcmask 130048   ;;  %vm1876_vm7 = vcmask 195584   ;;  %vm2084_vm8 = vcmask 523264  }
  0xb1   : > { %v3205_v3 = vld [vmem:[%s624_s8] sm:$0xff]  ;;  %2402 = vmatpush3.bf16.msra.mxu0 %v2618_v2  ;;  %v2620_v7 = vld [vmem:[%s3535_s6 + $0x8] sm:$0xff]   ;;  %2410 = vmatpush3.bf16.msra.mxu1 %v2622_v9  ;;  %v778_v34 = vunpack.c.0.s8 %v777_v30  ;;  %v810_v38 = vunpack.c.0.s8 %v809_v33  ;;  %s2898_s8 = smov 8   ;;  %s2311_s20 = sshll.u32 %s618_s22, 3 }
  0xb2   : > { %v631_v4 = vpack.c.bf16 %v3205_v3, %v3205_v3  ;;  %v2619_v5 = vld [vmem:[%s3535_s6] sm:$0xff]   ;;  %2415 = vmatprep.subr.bf16.mxu0 %v2890_v0  ;;  %2423 = vmatprep.subr.bf16.mxu1 %v2890_v0  ;;  %s3536_s15 = sld [smem:[#allocation24_spill]]  ;;  %s3537_s16 = sld [smem:[#allocation31_spill]] }
  0xb3   : > { %v3246_v39 = vsub.s32 %v778_v34, %v780_v35  ;;  %v3248_v45 = vsub.s32 %v810_v38, %v780_v35  ;;  %s620_s19 = scalar_lea.vmem [#allocation14], %s2311_s20  ;;  %s2160_s26 = scalar_lea.sflag [#allocation7], %s618_s22 }
  0xb4   : > { %633 = vst.msk [vmem:[#allocation2] sm:$0xf] %vm632_vm1, %v631_v4  ;;  %2404 = vmatmul.mubr.msk.bf16.vlgmr.msra.gmra.mrb[0].mxu0 %vm657_vm2, %v631_v4  ;;  %2412 = vmatmul.mubr.msk.bf16.vlgmr.msra.gmra.mrb[0].mxu1 %vm657_vm2, %v631_v4  ;;  %s2174_s30 = sshll.u32 %s620_s19, 4  ;;  %s3430_s30 = int_to_ptr.vmem [resolvable:$true] %s2174_s30 }
  0xb5   : > { %2416 = vmatpush3.bf16.msra.mxu0 %v2619_v5  ;;  %2419 = vmatprep.mubr.msk.bf16.mxu0 %vm2891_vm0, %v2890_v0  ;;  %s2791_s28 = scalar_lea.vmem %s3430_s30, 128 }
  0xb6   : > { %2417 = vmatprep.subr.bf16.mxu0 %v2890_v0  ;;  %2425 = vmatprep.mubr.msk.bf16.mxu1 %vm2891_vm0, %v2890_v0  ;;  %p2792_p2 = scmp.ne.s32.totalorder %s3430_s30, %s2791_s28 }
  0xb8   : > { %p3540_p4 = scmp.ne.s32.totalorder %s3536_s15, 0 }
  0xb9   : > { %2418 = vmatpush3.bf16.msra.mxu0 %v2620_v7 }
  0xba   : > { %2429 = vmatprep.subr.bf16.mxu0 %v2890_v0  ;;  %p2793_p8 = pnand %p2792_p2, %p3540_p4 }
  0xbb   : > { %v1080_v8 = vld [vmem:[#allocation2] sm:$0xf] }
  0xbc   : > { %2420 = vmatmul.mubr.msk.bf16.vlgmr.msra.gmra.mrb[4].mxu0 %vm657_vm2, %v1080_v8  ;;  %p2794_p10 = pneg %p2793_p8 }
  0xbd   : > { %2431 = vmatprep.mubr.msk.bf16.mxu0 %vm2891_vm0, %v2890_v0 }
 0x187   : > { %v695_v11 = vpop.f32.mrb[0].mxu0  ;;  %v758_v24 = vpop.f32.mrb[0].mxu1 }
 0x188   : > { %v696_v12 = vadd.f32 %v2313_v10, %v695_v11  ;;  %v2405_v13 = vpop.f32.mrb[1].mxu0  ;;  %v3241_v25 = vadd.f32 %v2317_v23, %v758_v24  ;;  %v2413_v26 = vpop.f32.mrb[1].mxu1 }
 0x189   : > { %v698_v14 = vpop.f32.mrb[2].mxu0  ;;  %v761_v27 = vpop.f32.mrb[2].mxu1 }
 0x18a   : > { %771 = vrot.lane.b32.xlu1 %v696_v12, %s2892_s0  ;;  %765 = vrot.lane.b32.xlu0 %v696_v12, %s2893_s23  ;;  %v2406_v15 = vpop.f32.mrb[3].mxu0  ;;  %v2414_v28 = vpop.f32.mrb[3].mxu1 }
 0x18e   : > { %768 = vrot.lane.b32.xlu0 %v696_v12, %s2894_s24 }
 0x18f   : > { %v1142_v17 = vpop.f32.mrb[4].mxu0 }
 0x190   : > { %v1143_v18 = vadd.f32 %v2325_v16, %v1142_v17  ;;  %v2421_v19 = vpop.f32.mrb[5].mxu0 }
 0x191   : > { %v1145_v20 = vpop.f32.mrb[6].mxu0 }
 0x192   : > { %v3236_v21 = vmul.f32 0.35355338, %v1143_v18  ;;  %v2422_v22 = vpop.f32.mrb[7].mxu0 }
 0x194   : > { %1153 = vrot.lane.b32.xlu0 %v3236_v21, %s2894_s24  ;;  %1150 = vrot.lane.b32.xlu1 %v3236_v21, %s2893_s23 }
 0x198   : > { %1156 = vrot.lane.b32.xlu1 %v3236_v21, %s2892_s0  ;;  %920 = vrot.lane.b32.xlu0 %v3241_v25, %s2893_s23  ;;  %s2360_s23 = sshll.u32 %s2873_s27, 7  ;;  %s2900_s27 = smov [#allocation14]  }
 0x199   : > { %s2795_s20 = sshll.u32 %s2900_s27, 4  ;;  %s2796_s20 = int_to_ptr.vmem [resolvable:$false] %s2795_s20 }
 0x19a   : > { %s2797_s17 = scalar_lea.vmem %s2796_s20, 256  ;;  %p2798_p11 = scmp.lt.s32.totalorder %s3430_s30, %s2796_s20 }
 0x19b   : > { %p2799_p3 = scmp.lt.s32.totalorder %s2797_s17, %s2791_s28 }
 0x19c   : > { %923 = vrot.lane.b32.xlu1 %v3241_v25, %s2894_s24  ;;  %926 = vrot.lane.b32.xlu0 %v3241_v25, %s2892_s0  ;;  %s3538_s0 = sld [smem:[#allocation32_spill]] }
 0x19d   : > { %p2800_p5 = por %p2799_p3, %p2798_p11 }
 0x19f   : > { %p2801_p6 = pnand %p2800_p5, %p2794_p10 }
 0x1fc   : > { %v772_v36 = vpop.permute.xlu1 %771  ;;  %v766_v37 = vpop.permute.xlu0 %765 }
 0x1fd   : > { %v790_v40 = vcombine.low %v766_v37, %v772_v36  ;;  %v791_v41 = vcombine.high %v766_v37, %v772_v36 }
 0x1ff   : > { %v798_v46 = vrot.slane %v790_v40, %v3246_v39  ;;  %v805_v47 = vrot.slane %v791_v41, %v3246_v39 }
 0x200   : > { %v769_v42 = vpop.permute.xlu0 %768 }
 0x201   : > { %v774_v43 = vcombine.low %v696_v12, %v769_v42  ;;  %v775_v44 = vcombine.high %v696_v12, %v769_v42 }
 0x203   : > { %v782_v48 = vrot.slane %v774_v43, %v3246_v39  ;;  %v789_v49 = vrot.slane %v775_v44, %v3246_v39 }
 0x205   : > { %v806_v50 = vcombine.low %v782_v48, %v798_v46  ;;  %v807_v51 = vcombine.high %v782_v48, %v798_v46  ;;  %v822_v52 = vcombine.low %v789_v49, %v805_v47  ;;  %v823_v53 = vcombine.high %v789_v49, %v805_v47 }
 0x206   : > { %v1151_v54 = vpop.permute.xlu1 %1150  ;;  %v1154_v59 = vpop.permute.xlu0 %1153 }
 0x207   : > { %v814_v55 = vrot.slane %v806_v50, %v3248_v45  ;;  %v821_v56 = vrot.slane %v807_v51, %v3248_v45  ;;  %v830_v57 = vrot.slane %v822_v52, %v3248_v45  ;;  %v837_v58 = vrot.slane %v823_v53, %v3248_v45 }
 0x208   : > { %v1159_v1 = vcombine.low %v3236_v21, %v1154_v59  ;;  %v1160_v2 = vcombine.high %v3236_v21, %v1154_v59 }
 0x209   : > { %v842_v60 = vcombine.low %v814_v55, %v821_v56  ;;  %v2321_v61 = vcombine.high %v814_v55, %v821_v56  ;;  %v858_v62 = vcombine.low %v830_v57, %v837_v58  ;;  %v2322_v63 = vcombine.high %v830_v57, %v837_v58 }
 0x20a   : > { %v1157_v4 = vpop.permute.xlu1 %1156  ;;  %v1167_v15 = vrot.slane %v1159_v1, %v3246_v39  ;;  %v1174_v16 = vrot.slane %v1160_v2, %v3246_v39 }
 0x20b   : > { %v849_v5 = vrot.slane %v842_v60, %v3246_v39  ;;  %v857_v6 = vrot.slane %v2321_v61, %v3246_v39  ;;  %v865_v7 = vrot.slane %v858_v62, %v3246_v39  ;;  %v873_v8 = vrot.slane %v2322_v63, %v3246_v39 }
 0x20c   : > { %v1175_v9 = vcombine.low %v1151_v54, %v1157_v4  ;;  %v1176_v10 = vcombine.high %v1151_v54, %v1157_v4 }
 0x20d   : > { %v874_v11 = vcombine.low %v849_v5, %v857_v6  ;;  %v875_v12 = vcombine.high %v849_v5, %v857_v6  ;;  %v890_v13 = vcombine.low %v865_v7, %v873_v8  ;;  %v891_v14 = vcombine.high %v865_v7, %v873_v8 }
 0x20e   : > { %v1183_v17 = vrot.slane %v1175_v9, %v3246_v39  ;;  %v1190_v18 = vrot.slane %v1176_v10, %v3246_v39 }
 0x20f   : > { %v882_v19 = vrot.slane %v874_v11, %v3248_v45  ;;  %v889_v20 = vrot.slane %v875_v12, %v3248_v45  ;;  %v898_v21 = vrot.slane %v890_v13, %v3248_v45  ;;  %v905_v22 = vrot.slane %v891_v14, %v3248_v45  ;;  %v921_v12 = vpop.permute.xlu0 %920  ;;  %v924_v13 = vpop.permute.xlu1 %923 }
 0x210   : > { %v1191_v23 = vcombine.low %v1167_v15, %v1183_v17  ;;  %v1192_v24 = vcombine.high %v1167_v15, %v1183_v17  ;;  %v1207_v26 = vcombine.low %v1174_v16, %v1190_v18  ;;  %v1208_v27 = vcombine.high %v1174_v16, %v1190_v18 }
 0x211   : > { %v906_v28 = vcombine.low %v882_v19, %v898_v21  ;;  %v907_v29 = vcombine.high %v882_v19, %v898_v21  ;;  %v908_v30 = vcombine.low %v889_v20, %v905_v22  ;;  %v909_v31 = vcombine.high %v889_v20, %v905_v22 }
 0x212   : > { %v1199_v32 = vrot.slane %v1191_v23, %v3248_v45  ;;  %v1206_v33 = vrot.slane %v1192_v24, %v3248_v45  ;;  %v1215_v34 = vrot.slane %v1207_v26, %v3248_v45  ;;  %v1222_v35 = vrot.slane %v1208_v27, %v3248_v45 }
 0x213   : > { %v910_v36 = vpack.c.bf16 %v906_v28, %v906_v28  ;;  %v911_v37 = vpack.c.bf16 %v907_v29, %v907_v29  ;;  %v912_v38 = vpack.c.bf16 %v908_v30, %v908_v30  ;;  %v913_v40 = vpack.c.bf16 %v909_v31, %v909_v31  ;;  %v927_v16 = vpop.permute.xlu0 %926 }
 0x214   : > { %v1227_v41 = vcombine.low %v1199_v32, %v1206_v33  ;;  %v2329_v42 = vcombine.high %v1199_v32, %v1206_v33  ;;  %v1243_v43 = vcombine.low %v1215_v34, %v1222_v35  ;;  %v2330_v44 = vcombine.high %v1215_v34, %v1222_v35 }
 0x215   : > { %915 = vst.msk [vmem:[#allocation3] sm:$0xf] %vm914_vm3, %v910_v36  ;;  %916 = vst.msk [vmem:[#allocation3 + $0x4] sm:$0xf] %vm914_vm3, %v911_v37  ;;  %v929_v14 = vcombine.low %v3241_v25, %v924_v13  ;;  %v930_v15 = vcombine.high %v3241_v25, %v924_v13  ;;  %v945_v17 = vcombine.low %v921_v12, %v927_v16 }
 0x216   : > { %917 = vst.msk [vmem:[#allocation3 + $0x8] sm:$0xf] %vm914_vm3, %v912_v38  ;;  %918 = vst.msk [vmem:[#allocation3 + $0xc] sm:$0xf] %vm914_vm3, %v913_v40  ;;  %v1234_v46 = vrot.slane %v1227_v41, %v3246_v39  ;;  %v1242_v47 = vrot.slane %v2329_v42, %v3246_v39  ;;  %v1250_v48 = vrot.slane %v1243_v43, %v3246_v39 }
 0x217   : > { %v1258_v49 = vrot.slane %v2330_v44, %v3246_v39  ;;  %v946_v18 = vcombine.high %v921_v12, %v927_v16  ;;  %v937_v19 = vrot.slane %v929_v14, %v3246_v39  ;;  %v944_v20 = vrot.slane %v930_v15, %v3246_v39 }
 0x218   : > { %v1259_v50 = vcombine.low %v1234_v46, %v1242_v47  ;;  %v1260_v58 = vcombine.high %v1234_v46, %v1242_v47  ;;  %v953_v21 = vrot.slane %v945_v17, %v3246_v39 }
 0x219   : > { %v1275_v51 = vcombine.low %v1250_v48, %v1258_v49  ;;  %v1276_v59 = vcombine.high %v1250_v48, %v1258_v49  ;;  %v960_v22 = vrot.slane %v946_v18, %v3246_v39 }
 0x21a   : > { %v1267_v52 = vrot.slane %v1259_v50, %v3248_v45  ;;  %v1274_v4 = vrot.slane %v1260_v58, %v3248_v45  ;;  %v961_v23 = vcombine.low %v937_v19, %v953_v21  ;;  %v962_v24 = vcombine.high %v937_v19, %v953_v21 }
 0x21b   : > { %v1283_v53 = vrot.slane %v1275_v51, %v3248_v45  ;;  %v1290_v5 = vrot.slane %v1276_v59, %v3248_v45  ;;  %v977_v26 = vcombine.low %v944_v20, %v960_v22  ;;  %v978_v27 = vcombine.high %v944_v20, %v960_v22 }
 0x21c   : > { %v1299_v54 = vld [vmem:[#allocation3] sm:$0xf]  ;;  %v1300_v55 = vld [vmem:[#allocation3 + $0x4] sm:$0xf]  ;;  %v969_v28 = vrot.slane %v961_v23, %v3248_v45  ;;  %v976_v29 = vrot.slane %v962_v24, %v3248_v45 }
 0x21d   : > { %v1308_v56 = vsel %vm1303_vm4, %v1299_v54, 0  ;;  %v1354_v57 = vsel %vm1303_vm4, %v1300_v55, 0  ;;  %v1291_v60 = vcombine.low %v1267_v52, %v1283_v53  ;;  %v1292_v61 = vcombine.high %v1267_v52, %v1283_v53  ;;  %v1301_v62 = vld [vmem:[#allocation3 + $0x8] sm:$0xf]  ;;  %v1302_v63 = vld [vmem:[#allocation3 + $0xc] sm:$0xf] }
 0x21e   : > { %2424 = vmatpush3.bf16.xpose.msra.mxu1 %v1308_v56  ;;  %2430 = vmatpush3.bf16.xpose.msra.mxu0 %v1354_v57  ;;  %v1400_v6 = vsel %vm1303_vm4, %v1301_v62, 0  ;;  %v1446_v7 = vsel %vm1303_vm4, %v1302_v63, 0  ;;  %v1293_v8 = vcombine.low %v1274_v4, %v1290_v5  ;;  %v1294_v9 = vcombine.high %v1274_v4, %v1290_v5 }
 0x21f   : > { %2435 = vmatprep.subr.bf16.mxu1 %v2890_v0  ;;  %2441 = vmatprep.subr.bf16.mxu0 %v2890_v0  ;;  %v1295_v1 = vpack.c.bf16 %v1291_v60, %v1291_v60  ;;  %v1296_v2 = vpack.c.bf16 %v1292_v61, %v1292_v61  ;;  %v985_v25 = vrot.slane %v977_v26, %v3248_v45 }
 0x220   : > { %v1297_v10 = vpack.c.bf16 %v1293_v8, %v1293_v8  ;;  %v1298_v11 = vpack.c.bf16 %v1294_v9, %v1294_v9  ;;  %v992_v30 = vrot.slane %v978_v27, %v3248_v45  ;;  %v997_v31 = vcombine.low %v969_v28, %v976_v29 }
 0x221   : > { %v2323_v32 = vcombine.high %v969_v28, %v976_v29 }
 0x222   : > { %v1013_v33 = vcombine.low %v985_v25, %v992_v30  ;;  %v2324_v34 = vcombine.high %v985_v25, %v992_v30  ;;  %v1004_v35 = vrot.slane %v997_v31, %v3246_v39 }
 0x223   : > { %v1012_v36 = vrot.slane %v2323_v32, %v3246_v39 }
 0x224   : > { %v1020_v37 = vrot.slane %v1013_v33, %v3246_v39  ;;  %v1028_v38 = vrot.slane %v2324_v34, %v3246_v39 }
 0x225   : > { %2426 = vmatmul.mubr.msk.bf16.vlgmr.msra.gmra.mrb[4].mxu1 %vm1303_vm4, %v1295_v1  ;;  %2432 = vmatmul.mubr.msk.bf16.vlgmr.msra.gmra.mrb[8].mxu0 %vm1303_vm4, %v1296_v2  ;;  %v1029_v40 = vcombine.low %v1004_v35, %v1012_v36  ;;  %v1030_v41 = vcombine.high %v1004_v35, %v1012_v36 }
 0x226   : > { %2436 = vmatpush3.bf16.xpose.msra.mxu1 %v1400_v6  ;;  %2442 = vmatpush3.bf16.xpose.msra.mxu0 %v1446_v7  ;;  %v1045_v42 = vcombine.low %v1020_v37, %v1028_v38  ;;  %v1046_v43 = vcombine.high %v1020_v37, %v1028_v38 }
 0x227   : > { %2437 = vmatprep.mubr.msk.bf16.mxu1 %vm2891_vm0, %v2890_v0  ;;  %2443 = vmatprep.mubr.msk.bf16.mxu0 %vm2891_vm0, %v2890_v0  ;;  %v1037_v44 = vrot.slane %v1029_v40, %v3248_v45  ;;  %v1044_v46 = vrot.slane %v1030_v41, %v3248_v45 }
 0x228   : > { %2447 = vmatprep.subr.bf16.mxu1 %v2890_v0  ;;  %2453 = vmatprep.subr.bf16.mxu0 %v2890_v0  ;;  %v1053_v47 = vrot.slane %v1045_v42, %v3248_v45  ;;  %v1060_v48 = vrot.slane %v1046_v43, %v3248_v45 }
 0x22a   : > { %v1061_v49 = vcombine.low %v1037_v44, %v1053_v47  ;;  %v1062_v50 = vcombine.high %v1037_v44, %v1053_v47  ;;  %v1063_v51 = vcombine.low %v1044_v46, %v1060_v48  ;;  %v1064_v52 = vcombine.high %v1044_v46, %v1060_v48 }
 0x22c   : > { %v1065_v53 = vpack.c.bf16 %v1061_v49, %v1061_v49  ;;  %v1066_v54 = vpack.c.bf16 %v1062_v50, %v1062_v50  ;;  %v1067_v55 = vpack.c.bf16 %v1063_v51, %v1063_v51  ;;  %v1068_v56 = vpack.c.bf16 %v1064_v52, %v1064_v52 }
 0x22d   : > { %2438 = vmatmul.mubr.msk.bf16.vlgmr.msra.gmra.mrb[8].mxu1 %vm1303_vm4, %v1297_v10  ;;  %2444 = vmatmul.mubr.msk.bf16.vlgmr.msra.gmra.mrb[12].mxu0 %vm1303_vm4, %v1298_v11 }
 0x22e   : > { %2449 = vmatprep.mubr.msk.bf16.mxu1 %vm2891_vm0, %v2890_v0  ;;  %2455 = vmatprep.mubr.msk.bf16.mxu0 %vm2891_vm0, %v2890_v0  ;;  %1069 = vst.msk [vmem:[#allocation4] sm:$0xf] %vm914_vm3, %v1065_v53  ;;  %1070 = vst.msk [vmem:[#allocation4 + $0x4] sm:$0xf] %vm914_vm3, %v1066_v54 }
 0x22f   : > { %1071 = vst.msk [vmem:[#allocation4 + $0x8] sm:$0xf] %vm914_vm3, %v1067_v55  ;;  %1072 = vst.msk [vmem:[#allocation4 + $0xc] sm:$0xf] %vm914_vm3, %v1068_v56 }
 0x235   : > { %v1528_v57 = vld [vmem:[#allocation4] sm:$0xf]  ;;  %v1529_v58 = vld [vmem:[#allocation4 + $0x4] sm:$0xf] }
 0x236   : > { %v1537_v59 = vsel %vm1535_vm5, %v1528_v57, 0  ;;  %v1583_v60 = vsel %vm1535_vm5, %v1529_v58, 0  ;;  %v1530_v32 = vld [vmem:[#allocation4 + $0x8] sm:$0xf]  ;;  %v1531_v36 = vld [vmem:[#allocation4 + $0xc] sm:$0xf] }
 0x237   : > { %2448 = vmatpush3.bf16.msra.mxu1 %v1537_v59  ;;  %2454 = vmatpush3.bf16.msra.mxu0 %v1583_v60  ;;  %v1629_v40 = vsel %vm1535_vm5, %v1530_v32, 0  ;;  %v1675_v41 = vsel %vm1535_vm5, %v1531_v36, 0  ;;  %v2624_v36 = vld [vmem:[#allocation10 + $0x8] sm:$0xff]  }
 0x238   : > { %2459 = vmatprep.subr.bf16.mxu1 %v2890_v0  ;;  %2465 = vmatprep.subr.bf16.mxu0 %v2890_v0 }
 0x2f8   : > { %v1344_v61 = vpop.f32.mrb[4].mxu1  ;;  %v1390_v62 = vpop.f32.mrb[8].mxu0 }
 0x2f9   : > { %v2427_v63 = vpop.f32.mrb[5].mxu1  ;;  %v2433_v1 = vpop.f32.mrb[9].mxu0  ;;  %v1488_v2 = vsel %vm1303_vm4, %v1344_v61, -inf  ;;  %v1491_v4 = vsel %vm1303_vm4, %v1390_v62, -inf }
 0x2fa   : > { %1489 = vmax.xlane.f32.xlu1 %v1488_v2  ;;  %v1347_v5 = vpop.f32.mrb[6].mxu1  ;;  %1492 = vmax.xlane.f32.xlu0 %v1491_v4  ;;  %v1393_v6 = vpop.f32.mrb[10].mxu0 }
 0x2fb   : > { %v2428_v7 = vpop.f32.mrb[7].mxu1  ;;  %v2434_v8 = vpop.f32.mrb[11].mxu0 }
 0x300   : > { %v1436_v9 = vpop.f32.mrb[8].mxu1  ;;  %v1482_v10 = vpop.f32.mrb[12].mxu0 }
 0x301   : > { %v2439_v11 = vpop.f32.mrb[9].mxu1  ;;  %v2445_v12 = vpop.f32.mrb[13].mxu0  ;;  %v1494_v13 = vsel %vm1303_vm4, %v1436_v9, -inf  ;;  %v1497_v14 = vsel %vm1303_vm4, %v1482_v10, -inf }
 0x302   : > { %v1439_v15 = vpop.f32.mrb[10].mxu1  ;;  %1495 = vmax.xlane.f32.xlu0 %v1494_v13  ;;  %1498 = vmax.xlane.f32.xlu1 %v1497_v14  ;;  %v1485_v16 = vpop.f32.mrb[14].mxu0 }
 0x303   : > { %v2440_v17 = vpop.f32.mrb[11].mxu1  ;;  %v2446_v18 = vpop.f32.mrb[15].mxu0 }
 0x387   : > { %v1490_v19 = vpop.xlane.xlu1 %1489  ;;  %v1493_v20 = vpop.xlane.xlu0 %1492 }
 0x388   : > { %v1500_v21 = vsub.f32 %v1344_v61, %v1490_v19  ;;  %v1501_v22 = vsub.f32 %v1390_v62, %v1493_v20 }
 0x38a   : > { %v1504_v23 = vmul.f32 1.442695, %v1500_v21  ;;  %v1506_v24 = vmul.f32 1.442695, %v1501_v22 }
 0x38c   : > { %2631 = vpow2.f32 %v1504_v23 }
 0x38d   : > { %2633 = vpow2.f32 %v1506_v24 }
 0x38f   : > { %v1496_v26 = vpop.xlane.xlu0 %1495  ;;  %v1499_v27 = vpop.xlane.xlu1 %1498 }
 0x390   : > { %v1502_v28 = vsub.f32 %v1436_v9, %v1496_v26  ;;  %v1503_v29 = vsub.f32 %v1482_v10, %v1499_v27 }
 0x392   : > { %v1508_v25 = vmul.f32 1.442695, %v1502_v28  ;;  %v1510_v30 = vmul.f32 1.442695, %v1503_v29  ;;  %v2623_v28 = vld [vmem:[#allocation10] sm:$0xff]  }
 0x394   : > { %2635 = vpow2.f32 %v1508_v25 }
 0x395   : > { %2637 = vpow2.f32 %v1510_v30 }
 0x396   : > { %v2632_v31 = vpop.eup %2631 }
 0x397   : > { %v2634_v33 = vpop.eup %2633  ;;  %v1512_v34 = vsel %vm1303_vm4, %v2632_v31, 0.0  ;;  %v1524_v35 = vpack.c.bf16 %v2632_v31, %v2632_v31 }
 0x398   : > { %1513 = vadd.xlane.f32.xlu0 %v1512_v34  ;;  %v1515_v37 = vsel %vm1303_vm4, %v2634_v33, 0.0  ;;  %v1525_v38 = vpack.c.bf16 %v2634_v33, %v2634_v33 }
 0x399   : > { %1516 = vadd.xlane.f32.xlu1 %v1515_v37  ;;  %2450 = vmatmul.mubr.msk.bf16.vlgmr.msra.gmra.mrb[12].mxu1 %vm1303_vm4, %v1524_v35 }
 0x39a   : > { %2456 = vmatmul.mubr.msk.bf16.vlgmr.msra.gmra.mrb[16].mxu0 %vm1303_vm4, %v1525_v38  ;;  %2460 = vmatpush3.bf16.msra.mxu1 %v1629_v40 }
 0x39b   : > { %2466 = vmatpush3.bf16.msra.mxu0 %v1675_v41  ;;  %2461 = vmatprep.mubr.msk.bf16.mxu1 %vm2891_vm0, %v2890_v0 }
 0x39c   : > { %2467 = vmatprep.mubr.msk.bf16.mxu0 %vm2891_vm0, %v2890_v0  ;;  %2471 = vmatprep.subr.bf16.mxu1 %v2890_v0 }
 0x39d   : > { %2479 = vmatprep.subr.bf16.mxu0 %v2890_v0 }
 0x39e   : > { %v2636_v42 = vpop.eup %2635 }
 0x39f   : > { %v2638_v43 = vpop.eup %2637  ;;  %v1518_v44 = vsel %vm1303_vm4, %v2636_v42, 0.0  ;;  %v1526_v46 = vpack.c.bf16 %v2636_v42, %v2636_v42 }
 0x3a0   : > { %1519 = vadd.xlane.f32.xlu0 %v1518_v44  ;;  %v1521_v47 = vsel %vm1303_vm4, %v2638_v43, 0.0  ;;  %v1527_v48 = vpack.c.bf16 %v2638_v43, %v2638_v43 }
 0x3a1   : > { %1522 = vadd.xlane.f32.xlu1 %v1521_v47  ;;  %2462 = vmatmul.mubr.msk.bf16.vlgmr.msra.gmra.mrb[16].mxu1 %vm1303_vm4, %v1526_v46 }
 0x3a2   : > { %2468 = vmatmul.mubr.msk.bf16.vlgmr.msra.gmra.mrb[20].mxu0 %vm1303_vm4, %v1527_v48  ;;  %2475 = vmatprep.mubr.msk.bf16.mxu1 %vm2891_vm0, %v2890_v0 }
 0x3a3   : > { %2483 = vmatprep.mubr.msk.bf16.mxu0 %vm2891_vm0, %v2890_v0  ;;  %2472 = vmatpush3.bf16.msra.mxu1 %v2623_v28 }
 0x3a4   : > { %2473 = vmatprep.subr.bf16.mxu1 %v2890_v0 }
 0x3a7   : > { %2474 = vmatpush3.bf16.msra.mxu1 %v2624_v36 }
 0x3a8   : > { %2487 = vmatprep.subr.bf16.mxu1 %v2890_v0 }
 0x425   : > { %v1514_v49 = vpop.xlane.xlu0 %1513 }
 0x426   : > { %v1517_v50 = vpop.xlane.xlu1 %1516  ;;  %2639 = vrcp.f32 %v1514_v49 }
 0x427   : > { %2641 = vrcp.f32 %v1517_v50 }
 0x42d   : > { %v1520_v51 = vpop.xlane.xlu0 %1519 }
 0x42e   : > { %v1523_v52 = vpop.xlane.xlu1 %1522  ;;  %2643 = vrcp.f32 %v1520_v51 }
 0x42f   : > { %2645 = vrcp.f32 %v1523_v52 }
 0x430   : > { %v2640_v61 = vpop.eup %2639 }
 0x431   : > { %v2642_v62 = vpop.eup %2641 }
 0x438   : > { %v2644_v63 = vpop.eup %2643 }
 0x439   : > { %v2646_v2 = vpop.eup %2645 }
 0x46c   : > { %v1573_v53 = vpop.f32.mrb[12].mxu1 }
 0x46d   : > { %v1619_v54 = vpop.f32.mrb[16].mxu0  ;;  %v2451_v55 = vpop.f32.mrb[13].mxu1  ;;  %v1721_v4 = vmul.f32 %v2640_v61, %v1573_v53 }
 0x46e   : > { %v2457_v56 = vpop.f32.mrb[17].mxu0  ;;  %v1576_v57 = vpop.f32.mrb[14].mxu1  ;;  %v1722_v8 = vmul.f32 %v2642_v62, %v1619_v54 }
 0x46f   : > { %v1622_v58 = vpop.f32.mrb[18].mxu0  ;;  %v2452_v59 = vpop.f32.mrb[15].mxu1 }
 0x470   : > { %v2458_v60 = vpop.f32.mrb[19].mxu0 }
 0x471   : > { %v2341_v60 = vld [vmem:[#allocation11] ss:$0 sm:$0xff] }
 0x474   : > { %v1665_v1 = vpop.f32.mrb[16].mxu1 }
 0x475   : > { %v1723_v5 = vmul.f32 %v2644_v63, %v1665_v1  ;;  %v1711_v6 = vpop.f32.mrb[20].mxu0  ;;  %v2463_v7 = vpop.f32.mrb[17].mxu1 }
 0x476   : > { %v1724_v9 = vmul.f32 %v2646_v2, %v1711_v6  ;;  %v2469_v10 = vpop.f32.mrb[21].mxu0  ;;  %v1668_v11 = vpop.f32.mrb[18].mxu1 }
 0x477   : > { %v1725_v12 = vcombine.low %v1721_v4, %v1723_v5  ;;  %v1726_v13 = vcombine.high %v1721_v4, %v1723_v5  ;;  %v1714_v14 = vpop.f32.mrb[22].mxu0  ;;  %v2464_v15 = vpop.f32.mrb[19].mxu1  ;;  %v2625_v11 = vld [vmem:[%s3487_s11] sm:$0xff]  }
 0x478   : > { %v1741_v16 = vcombine.low %v1722_v8, %v1724_v9  ;;  %v1742_v17 = vcombine.high %v1722_v8, %v1724_v9  ;;  %v2470_v18 = vpop.f32.mrb[23].mxu0  ;;  %2480 = vmatpush3.bf16.msra.mxu0 %v2625_v11 }
 0x479   : > { %v1733_v19 = vrot.slane %v1725_v12, %v3246_v39  ;;  %v1740_v20 = vrot.slane %v1726_v13, %v3246_v39  ;;  %v2626_v12 = vld [vmem:[%s3487_s11 + $0x8] sm:$0xff]   ;;  %2481 = vmatprep.subr.bf16.mxu0 %v2890_v0 }
 0x47a   : > { %v1749_v21 = vrot.slane %v1741_v16, %v3246_v39  ;;  %v1756_v22 = vrot.slane %v1742_v17, %v3246_v39  ;;  %v2628_v13 = vld [vmem:[%s3489_s13 + $0x8] sm:$0xff]  }
 0x47b   : > { %v2345_v18 = vld [vmem:[#allocation13] ss:$0 sm:$0xff] }
 0x47c   : > { %v1757_v23 = vcombine.low %v1733_v19, %v1749_v21  ;;  %v1758_v24 = vcombine.high %v1733_v19, %v1749_v21  ;;  %v1773_v26 = vcombine.low %v1740_v20, %v1756_v22  ;;  %v1774_v27 = vcombine.high %v1740_v20, %v1756_v22  ;;  %2482 = vmatpush3.bf16.msra.mxu0 %v2626_v12  ;;  %v2346_v20 = vld [vmem:[%s3486_s10] ss:$0 sm:$0xff] }
 0x47e   : > { %v1765_v29 = vrot.slane %v1757_v23, %v3248_v45  ;;  %v1772_v25 = vrot.slane %v1758_v24, %v3248_v45  ;;  %v1781_v30 = vrot.slane %v1773_v26, %v3248_v45  ;;  %v1788_v31 = vrot.slane %v1774_v27, %v3248_v45  ;;  %v2629_v24 = vld [vmem:[%s3489_s13 + $0x10] sm:$0xff]   ;;  %v2630_v26 = vld [vmem:[%s3489_s13 + $0x18] sm:$0xff]   ;;  %v2347_v27 = vld [vmem:[%s3488_s12] ss:$0 sm:$0xff] }
 0x480   : > { %v1793_v32 = vcombine.low %v1765_v29, %v1772_v25  ;;  %v2339_v33 = vcombine.high %v1765_v29, %v1772_v25  ;;  %v1809_v34 = vcombine.low %v1781_v30, %v1788_v31  ;;  %v2340_v35 = vcombine.high %v1781_v30, %v1788_v31 }
 0x482   : > { %v1800_v37 = vrot.slane %v1793_v32, %v3246_v39  ;;  %v1808_v38 = vrot.slane %v2339_v33, %v3246_v39  ;;  %v1816_v40 = vrot.slane %v1809_v34, %v3246_v39  ;;  %v1824_v41 = vrot.slane %v2340_v35, %v3246_v39 }
 0x484   : > { %v1826_v42 = vcombine.high %v1800_v37, %v1808_v38  ;;  %v1842_v43 = vcombine.high %v1816_v40, %v1824_v41  ;;  %v1825_v44 = vcombine.low %v1800_v37, %v1808_v38  ;;  %v1841_v46 = vcombine.low %v1816_v40, %v1824_v41 }
 0x486   : > { %v1840_v47 = vrot.slane %v1826_v42, %v3248_v45  ;;  %v1856_v48 = vrot.slane %v1842_v43, %v3248_v45  ;;  %v1833_v49 = vrot.slane %v1825_v44, %v3248_v45  ;;  %v1849_v50 = vrot.slane %v1841_v46, %v3248_v45 }
 0x488   : > { %v1859_v51 = vcombine.low %v1840_v47, %v1856_v48  ;;  %v1858_v52 = vcombine.high %v1833_v49, %v1849_v50  ;;  %v1860_v53 = vcombine.high %v1840_v47, %v1856_v48  ;;  %v1857_v54 = vcombine.low %v1833_v49, %v1849_v50 }
 0x48a   : > { %1866 = vrot.lane.b32.xlu1 %v1859_v51, %s2897_s29  ;;  %1862 = vrot.lane.b32.xlu0 %v1858_v52, %s2898_s8  ;;  %v2357_v52 = vld [vmem:[%s3537_s16] ss:$0 sm:$0xff]  ;;  %s3539_s8 = sld [smem:[#allocation33_spill]] }
 0x48e   : > { %1870 = vrot.lane.b32.xlu1 %v1860_v53, %s2899_s1 }
 0x490   : > { %s3428_s1 = scalar_lea.hbm %s3539_s8, %s2360_s23 }
 0x4fc   : > { %v1867_v39 = vpop.permute.xlu1 %1866  ;;  %v1863_v55 = vpop.permute.xlu0 %1862 }
 0x4fd   : > { %v1873_v56 = vsel %vm1303_vm4, %v1857_v54, %v1863_v55  ;;  %v2358_v54 = vld [vmem:[%s3538_s0] ss:$0 sm:$0xff] }
 0x4fe   : > { %v1875_v58 = vsel %vm1874_vm6, %v1873_v56, %v1867_v39 }
 0x500   : > { %v1871_v57 = vpop.permute.xlu1 %1870 }
 0x501   : > { %v1877_v59 = vsel %vm1876_vm7, %v1875_v58, %v1871_v57 }
 0x502   : > { %v1878_v45 = vpack.c.bf16 %v1877_v59, %v1877_v59 }
 0x504   : > { %2476 = vmatmul.mubr.msk.bf16.vlgmr.msra.gmra.mrb[20].mxu1 %vm657_vm2, %v1878_v45 }
 0x505   : > { %2495 = vmatprep.mubr.msk.bf16.mxu1 %vm2891_vm0, %v2890_v0 }
 0x5d7   : > { %v1939_v61 = vpop.f32.mrb[20].mxu1 }
 0x5d8   : > { %v1940_v62 = vadd.f32 %v2341_v60, %v1939_v61  ;;  %v2477_v63 = vpop.f32.mrb[21].mxu1 }
 0x5d9   : > { %v1942_v1 = vpop.f32.mrb[22].mxu1 }
 0x5da   : > { %v2478_v2 = vpop.f32.mrb[23].mxu1  ;;  %v1945_v4 = vadd.f32 %v1940_v62, %v3205_v3  ;;  %v2627_v3 = vld [vmem:[%s3489_s13] sm:$0xff]  }
 0x5db   : > { %2488 = vmatpush3.bf16.msra.mxu1 %v2627_v3 }
 0x5dc   : > { %v1948_v5 = vsel %vm657_vm2, %v1945_v4, 0.0  ;;  %2489 = vmatprep.subr.bf16.mxu1 %v2890_v0 }
 0x5dd   : > { %1949 = vadd.xlane.f32.xlu0 %v1948_v5 }
 0x5df   : > { %2490 = vmatpush3.bf16.msra.mxu1 %v2628_v13 }
 0x5e0   : > { %2491 = vmatprep.subr.bf16.mxu1 %v2890_v0 }
 0x5e3   : > { %2492 = vmatpush3.bf16.msra.mxu1 %v2629_v24 }
 0x5e4   : > { %2493 = vmatprep.subr.bf16.mxu1 %v2890_v0  ;;  %v2351_v0 = vld [vmem:[%s3490_s14] ss:$0 sm:$0xff] }
 0x5e7   : > { %2494 = vmatpush3.bf16.msra.mxu1 %v2630_v26 }
 0x66a   : > { %v1950_v6 = vpop.xlane.xlu0 %1949 }
 0x66b   : > { %v1952_v7 = vmul.f32 0.03125, %v1950_v6 }
 0x66d   : > { %v1953_v8 = vsub.f32 %v1945_v4, %v1952_v7 }
 0x66f   : > { %v1954_v9 = vmul.f32 %v1953_v8, %v1953_v8 }
 0x671   : > { %v1955_v10 = vsel %vm657_vm2, %v1954_v9, 0.0 }
 0x672   : > { %1956 = vadd.xlane.f32.xlu1 %v1955_v10 }
 0x6ff   : > { %v1957_v14 = vpop.xlane.xlu1 %1956 }
 0x700   : > { %v1958_v15 = vmul.f32 0.03125, %v1957_v14 }
 0x702   : > { %v1959_v16 = vadd.f32 1e-05, %v1958_v15 }
 0x704   : > { %2647 = vrsqrt.f32 %v1959_v16 }
 0x70e   : > { %v2648_v17 = vpop.eup %2647 }
 0x70f   : > { %v1961_v19 = vmul.f32 %v2648_v17, %v1953_v8 }
 0x711   : > { %v1968_v21 = vmul.f32 %v2345_v18, %v1961_v19 }
 0x713   : > { %v1975_v22 = vadd.f32 %v2346_v20, %v1968_v21 }
 0x715   : > { %v1976_v23 = vpack.c.bf16 %v1975_v22, %v1975_v22 }
 0x717   : > { %2484 = vmatmul.mubr.msk.bf16.vlgmr.msra.gmra.mrb[24].mxu0 %vm657_vm2, %v1976_v23 }
 0x7ea   : > { %v2037_v28 = vpop.f32.mrb[24].mxu0 }
 0x7eb   : > { %v2038_v29 = vadd.f32 %v2347_v27, %v2037_v28  ;;  %v2485_v25 = vpop.f32.mrb[25].mxu0 }
 0x7ec   : > { %v2040_v30 = vpop.f32.mrb[26].mxu0 }
 0x7ed   : > { %v2043_v31 = vmax.f32 %v2038_v29, 0.0  ;;  %v2486_v32 = vpop.f32.mrb[27].mxu0 }
 0x7ef   : > { %v2044_v33 = vpack.c.bf16 %v2043_v31, %v2043_v31 }
 0x7f1   : > { %2496 = vmatmul.mubr.msk.bf16.vlgmr.msra.gmra.mrb[24].mxu1 %vm2084_vm8, %v2044_v33 }
 0x8c4   : > { %v2122_v34 = vpop.f32.mrb[24].mxu1 }
 0x8c5   : > { %v2123_v35 = vadd.f32 %v2351_v0, %v2122_v34  ;;  %v2497_v36 = vpop.f32.mrb[25].mxu1 }
 0x8c6   : > { %v2125_v37 = vpop.f32.mrb[26].mxu1 }
 0x8c7   : > { %v2498_v38 = vpop.f32.mrb[27].mxu1  ;;  %v2128_v40 = vadd.f32 %v2123_v35, %v1975_v22 }
 0x8c9   : > { %v2131_v41 = vsel %vm657_vm2, %v2128_v40, 0.0 }
 0x8ca   : > { %2132 = vadd.xlane.f32.xlu0 %v2131_v41 }
 0x957   : > { %v2133_v42 = vpop.xlane.xlu0 %2132 }
 0x958   : > { %v2134_v43 = vmul.f32 0.03125, %v2133_v42 }
 0x95a   : > { %v2135_v44 = vsub.f32 %v2128_v40, %v2134_v43 }
 0x95c   : > { %v2136_v46 = vmul.f32 %v2135_v44, %v2135_v44 }
 0x95e   : > { %v2137_v47 = vsel %vm657_vm2, %v2136_v46, 0.0 }
 0x95f   : > { %2138 = vadd.xlane.f32.xlu0 %v2137_v47 }
 0x9ec   : > { %v2139_v48 = vpop.xlane.xlu0 %2138 }
 0x9ed   : > { %v2140_v49 = vmul.f32 0.03125, %v2139_v48 }
 0x9ef   : > { %v2141_v50 = vadd.f32 1e-05, %v2140_v49 }
 0x9f1   : > { %2649 = vrsqrt.f32 %v2141_v50 }
 0x9fb   : > { %v2650_v51 = vpop.eup %2649 }
 0x9fc   : > { %v2143_v53 = vmul.f32 %v2650_v51, %v2135_v44 }
 0x9fe   : > { %v2150_v39 = vmul.f32 %v2357_v52, %v2143_v53 }
 0xa00   : > { %v2157_v55 = vadd.f32 %v2358_v54, %v2150_v39 }
 0xa02   : > { %2158 = vst.msk [vmem:[%s620_s19] sm:$0xff] %vm657_vm2, %v2157_v55 }
 0xa03   : > { %2804 = shalt.err (!%p2801_p6)
}
 0xa04   : > { %s2805_s22 = scalar_lea.hbm %s3428_s1, 128  ;;  %s2809_s18 = scalar_lea.hbm %s3539_s8, 256 }
 0xa05   : > { %p2806_p7 = scmp.ne.s32.totalorder %s3428_s1, %s2805_s22  ;;  %p2810_p0 = scmp.lt.u32.totalorder %s3428_s1, %s3539_s8 }
 0xa06   : > { %p2811_p1 = scmp.lt.u32.totalorder %s2809_s18, %s2805_s22  ;;  %p2813_p2 = scmp.lt.u32.totalorder %s2805_s22, %s3428_s1 }
 0xa07   : > { %p2807_p9 = pnand %p2806_p7, %p3540_p4 }
 0xa08   : > { %p2812_p13 = por %p2811_p1, %p2810_p0 }
 0xa09   : > { %p2808_p12 = pneg %p2807_p9 }
 0xa0a   : > { %p2814_p8 = por %p2813_p2, %p2812_p13 }
 0xa0c   : > { %p2815_p10 = pnand %p2814_p8, %p2808_p12 }
 0xa0e   : > { %2818 = shalt.err (!%p2815_p10)
}
 0xa0f   : > { %2519 = dma.vmem_to_hbm [thread:$0]  (%p3540_p4), %s3430_s30, 128, %s3428_s1, %s2160_s26  }
 0xa10 PF: > { %s3541_s19 = sld [smem:[#allocation22_spill]]  ;;  %s3542_s24 = sld [smem:[#allocation19_spill]] }
 0xa11   : > { %s3543_s29 = sld [smem:[#allocation25_spill]] }
 0xa16   : > { %p2551_p11 = scmp.ge.s32.totalorder %s3541_s19, 2  ;;  %s2186_s28 = sand.u32 1, %s3542_s24  }
 0xa17   : > { %p3544_p3 = scmp.ne.s32.totalorder %s3543_s29, 0  ;;  %s2187_s27 = scalar_lea.sflag [#allocation7], %s2186_s28 }
 0xa19   : > { %p2538_p5 = pnand %p2551_p11, %p3544_p3 }
 0xa1b   : > { %2856 = dma.done.wait (!%p2538_p5), %s2187_s27, 128  }
 0xa1c   : > { %2858 = vsyncadd (!%p2538_p5), %s2187_s27, 4294967168  ;;  %s33_s29 = sadd.s32 1, %s3541_s19   ;;  %s3545_s20 = sld [smem:[#allocation20_spill]] }
 0xa1d   : > { %p30_p6 = scmp.ge.s32.totalorder %s33_s29, 4   ;;  %s3546_s26 = sld [smem:[#allocation26_spill]] }
 0xa1e   : > { %s3547_s27 = sld [smem:[#allocation21_spill]]  ;;  %s3548_s28 = sld [smem:[#allocation23_spill]] }
 0xa1f   : > { %s3549_s24 = smov %s2865_s25  ;;  %32 = sbr.rel (!%p30_p6) target bundleno = 15 (0xf), region = 150 }
 0xa22   : > { %s3550_s25 = smov %s3545_s20 }
 0xa26   :  { %2192 = vsyncpa [#allocation6], 1 }
 0xa27   :  { %2194 = vsyncpa [#allocation6 + $0x1], 1 }
 0xa28   :  { %2195 = vsyncpa [#allocation9], 1 }
 0xa29   :  { %2196 = vsyncpa [#allocation12], 1 }
 0xa2a   :  { %2197 = vsyncpa [#allocation7], 1 }
 0xa2b   :  { %2199 = vsyncpa [#allocation7 + $0x1], 1 }

</bundles_post_ra>
